<compile_context>
chip_gen: v7x
topology: tpu7x:2x2x1
jax: 0.10.0
libtpu: 0.0.40
codegen_flags: <defaults>
</compile_context>

<pallas_src>
import math

import jax
import jax.numpy as jnp
from jax import lax
from jax.experimental import pallas as pl
from jax.experimental.pallas import tpu as pltpu


def _round_up(n, m):
    return (n + m - 1) // m * m


_GATE_PERM = (0, 1, 3, 2)   # PyTorch [i, f, g, o] -> kernel [i, f, o, g] (fused sigmoids)


def _lstm_kernel(x_ref, h0_ref, c0_ref, wih_ref, whh_ref, b_ref,
                 wout_ref, bout_ref,
                 out_ref, hn_ref, cn_ref,
                 gx_ref, hseq_ref):
    # x_ref:   (Tc, Bb, Ip)   bf16, time-major chunk of the batch block
    # h0/c0:   (Bb, Hp)       f32
    # wih_ref: (Ip, 4*Hp)     bf16 (pre-transposed, gate order [i,f,o,g], lane-padded)
    # whh_ref: (Hp, 4*Hp)     bf16
    # b_ref:   (1, 4*Hp)      f32  (b_ih + b_hh folded once)
    # wout:    (Hp, Op) bf16, bout: (1, Op) f32
    # out_ref: (Tc, Bb, Op)   bf16
    # hn/cn:   (Bb, Hp)       f32  -- resident across the time axis; double as the h/c carry
    # gx_ref:  (Tc, Bb, 4Hp)  f32 scratch; hseq_ref: (Tc, Bb, Hp) bf16 scratch
    Tc, Bb, Ip = x_ref.shape
    Hp = h0_ref.shape[1]
    Op = out_ref.shape[-1]

    @pl.when(pl.program_id(1) == 0)
    def _():
        hn_ref[...] = h0_ref[...]
        cn_ref[...] = c0_ref[...]

    # Bulk input->hidden gate pre-activations for this chunk: one bf16 MXU matmul with
    # f32 accumulation, both biases folded in once.
    x2d = x_ref[...].reshape(Tc * Bb, Ip)
    gx = jnp.dot(x2d, wih_ref[...], preferred_element_type=jnp.float32) + b_ref[...]
    gx_ref[...] = gx.reshape(Tc, Bb, 4 * Hp)

    def step(t, carry):
        h, c = carry                                 # h: bf16 (Bb,Hp), c: f32 (Bb,Hp)
        gh = jnp.dot(h, whh_ref[...], preferred_element_type=jnp.float32)
        g = gx_ref[t] + gh                           # (Bb, 4*Hp); lane-aligned slices
        s = jax.nn.sigmoid(g[:, :3 * Hp])            # fused i|f|o sigmoid (one EUP chain)
        i = s[:, 0 * Hp:1 * Hp]
        f = s[:, 1 * Hp:2 * Hp]
        o = s[:, 2 * Hp:3 * Hp]
        gg = jnp.tanh(g[:, 3 * Hp:])
        c_new = f * c + i * gg
        h_new = (o * jnp.tanh(c_new)).astype(jnp.bfloat16)
        hseq_ref[t] = h_new                          # bf16 full-tile store
        return (h_new, c_new)

    # TODO(synk): staging W_hh in MXU weight registers (pltpu.matmul_push_rhs /
    # matmul_acc_lhs / matmul_pop) could further shorten the per-step latency chain.
    unroll = Tc if Tc <= 16 else 4
    h_n, c_n = lax.fori_loop(0, Tc, step,
                             (hn_ref[...].astype(jnp.bfloat16), cn_ref[...]),
                             unroll=unroll)
    hn_ref[...] = h_n.astype(jnp.float32)
    cn_ref[...] = c_n

    # Output projection for this chunk: (Tc*Bb, Hp) @ (Hp, Op), bf16 in / f32 acc, bf16 out.
    hseq2d = hseq_ref[...].reshape(Tc * Bb, Hp)
    out = jnp.dot(hseq2d, wout_ref[...], preferred_element_type=jnp.float32) + bout_ref[...]
    out_ref[...] = out.astype(out_ref.dtype).reshape(Tc, Bb, Op)


def lstm_forward(x, hidden_state, params, *, batch_block=None, time_block=None,
                 single_buffer_weights=True):
    """x: (B, T, I) batch_first; hidden_state: (h0, c0), each (1, B, H).
    Returns (out (B, T, O) f32, (h_n (1,B,H), c_n (1,B,H))) -- same as the PyTorch module."""
    h0, c0 = hidden_state
    B, T, I = x.shape
    H = h0.shape[-1]
    O = params["w_out"].shape[0]

    Hp = _round_up(H, 128)
    Ip = _round_up(I, 128)
    Op = _round_up(O, 128)

    # Whole (padded) batch in one block -> a single serial recurrence, MXU M dim filled.
    if batch_block is None:
        batch_block = min(_round_up(B, 8), 128)
        # TODO(synk): on v7x (2 TensorCores) cap batch_block at Bp//2 for large B so the
        # "parallel" batch axis can shard across both cores.
    batch_block = _round_up(batch_block, 8)
    Bp = _round_up(B, batch_block)
    nb = Bp // batch_block

    # Time chunk: per-chunk gx/hseq/x/out keep VMEM O(time_block) instead of O(T).
    if time_block is None:
        time_block = T
        for cand in (32, 16, 8, 4):
            if T % cand == 0:
                time_block = cand
                break
    assert T % time_block == 0, "time_block must divide T"
    ntc = T // time_block

    # ---- pack / pad weights (plain-JAX glue) ----
    perm = jnp.array(_GATE_PERM)

    def pack_gates(w, kp):
        # (4H, K) PyTorch order [i,f,g,o] -> (Kp, 4*Hp) transposed, reordered [i,f,o,g],
        # gate g occupying lane-aligned columns [g*Hp, g*Hp + H).
        k = w.shape[1]
        w4 = w.reshape(4, H, k)[perm]                              # (4, H, K) reordered
        w4 = jnp.transpose(w4, (0, 2, 1))                          # (4, K, H)
        w4 = jnp.pad(w4, ((0, 0), (0, kp - k), (0, Hp - H)))       # (4, Kp, Hp)
        return jnp.transpose(w4, (1, 0, 2)).reshape(kp, 4 * Hp)

    wih_p = pack_gates(params["w_ih"], Ip).astype(jnp.bfloat16)    # (Ip, 4Hp)
    whh_p = pack_gates(params["w_hh"], Hp).astype(jnp.bfloat16)    # (Hp, 4Hp)

    b = (params["b_ih"] + params["b_hh"]).reshape(4, H)[perm]
    b_p = jnp.pad(b, ((0, 0), (0, Hp - H))).reshape(1, 4 * Hp).astype(jnp.float32)

    wout_p = jnp.pad(params["w_out"].T.astype(jnp.float32),
                     ((0, Hp - H), (0, Op - O))).astype(jnp.bfloat16)   # (Hp, Op)
    bout_p = jnp.pad(params["b_out"].astype(jnp.float32),
                     (0, Op - O)).reshape(1, Op)

    x_tm = jnp.transpose(x, (1, 0, 2))                             # (T, B, I)
    x_p = jnp.pad(x_tm, ((0, 0), (0, Bp - B), (0, Ip - I))).astype(jnp.bfloat16)

    h0_p = jnp.pad(h0.reshape(B, H), ((0, Bp - B), (0, Hp - H))).astype(jnp.float32)
    c0_p = jnp.pad(c0.reshape(B, H), ((0, Bp - B), (0, Hp - H))).astype(jnp.float32)

    # VMEM budget: derive from the real footprint, cap at 56 MiB (headroom on v7x's 64 MiB).
    def nbytes(shape, dtype):
        return math.prod(shape) * jnp.dtype(dtype).itemsize

    wbuf = 1 if single_buffer_weights else 2
    footprint = (
        2 * nbytes((time_block, batch_block, Ip), jnp.bfloat16)        # x (double-buffered)
        + 2 * nbytes((time_block, batch_block, Op), jnp.bfloat16)      # out (double-buffered)
        + 6 * nbytes((batch_block, Hp), jnp.float32)                   # h0/c0 (x2) + hn/cn
        + wbuf * (nbytes((Ip, 4 * Hp), jnp.bfloat16)
                  + nbytes((Hp, 4 * Hp), jnp.bfloat16)
                  + nbytes((1, 4 * Hp), jnp.float32)
                  + nbytes((Hp, Op), jnp.bfloat16)
                  + nbytes((1, Op), jnp.float32))
        + nbytes((time_block, batch_block, 4 * Hp), jnp.float32)       # gx scratch
        + nbytes((time_block, batch_block, Hp), jnp.bfloat16)          # hseq scratch
    )
    vmem_limit = int(min(56 * 2 ** 20, max(32 * 2 ** 20, 2 * footprint)))

    def build_and_run(single_buffer):
        def const_spec(shp):
            n = len(shp)
            idx = lambda b_, t_, n=n: (0,) * n
            if single_buffer:
                return pl.BlockSpec(shp, idx, pipeline_mode=pl.Buffered(buffer_count=1))
            return pl.BlockSpec(shp, idx)

        in_specs = [
            pl.BlockSpec((time_block, batch_block, Ip), lambda b_, t_: (t_, b_, 0)),  # x
            pl.BlockSpec((batch_block, Hp), lambda b_, t_: (b_, 0)),                  # h0
            pl.BlockSpec((batch_block, Hp), lambda b_, t_: (b_, 0)),                  # c0
            const_spec((Ip, 4 * Hp)),                                                 # w_ih
            const_spec((Hp, 4 * Hp)),                                                 # w_hh
            const_spec((1, 4 * Hp)),                                                  # bias
            const_spec((Hp, Op)),                                                     # w_out
            const_spec((1, Op)),                                                      # b_out
        ]
        out_specs = [
            pl.BlockSpec((time_block, batch_block, Op), lambda b_, t_: (t_, b_, 0)),  # out
            pl.BlockSpec((batch_block, Hp), lambda b_, t_: (b_, 0)),                  # h_n
            pl.BlockSpec((batch_block, Hp), lambda b_, t_: (b_, 0)),                  # c_n
        ]
        call = pl.pallas_call(
            _lstm_kernel,
            out_shape=(jax.ShapeDtypeStruct((T, Bp, Op), jnp.bfloat16),
                       jax.ShapeDtypeStruct((Bp, Hp), jnp.float32),
                       jax.ShapeDtypeStruct((Bp, Hp), jnp.float32)),
            grid_spec=pltpu.PrefetchScalarGridSpec(
                num_scalar_prefetch=0,
                grid=(nb, ntc),
                in_specs=in_specs,
                out_specs=out_specs,
                scratch_shapes=[
                    pltpu.VMEM((time_block, batch_block, 4 * Hp), jnp.float32),  # gx
                    pltpu.VMEM((time_block, batch_block, Hp), jnp.bfloat16),     # hseq
                ]),
            compiler_params=pltpu.CompilerParams(
                dimension_semantics=("parallel", "arbitrary"),
                vmem_limit_bytes=vmem_limit),
        )
        return call(x_p, h0_p, c0_p, wih_p, whh_p, b_p, wout_p, bout_p)

    if single_buffer_weights:
        try:
            out_p, hn_p, cn_p = build_and_run(True)
        except Exception:
            # pl.Buffered(1) not supported by this jax/Mosaic build -> default buffering.
            out_p, hn_p, cn_p = build_and_run(False)
    else:
        out_p, hn_p, cn_p = build_and_run(False)

    out = jnp.transpose(out_p[:, :B, :O], (1, 0, 2)).astype(jnp.float32)   # (B, T, O)
    h_n = hn_p[:B, :H].reshape(1, B, H)
    c_n = cn_p[:B, :H].reshape(1, B, H)
    return out, (h_n, c_n)


def reference_forward(x, hidden_state, params):
    """Pure-JAX f32 reference mirroring torch.nn.LSTM(batch_first=True) + Linear."""
    h0, c0 = hidden_state
    B, T, I = x.shape
    H = h0.shape[-1]
    wih, whh = params["w_ih"], params["w_hh"]
    b = params["b_ih"] + params["b_hh"]
    wout, bout = params["w_out"], params["b_out"]

    h, c = h0[0], c0[0]
    hs = []
    for t in range(T):
        g = x[:, t] @ wih.T + h @ whh.T + b
        i = jax.nn.sigmoid(g[:, 0 * H:1 * H])
        f = jax.nn.sigmoid(g[:, 1 * H:2 * H])
        gg = jnp.tanh(g[:, 2 * H:3 * H])
        o = jax.nn.sigmoid(g[:, 3 * H:4 * H])
        c = f * c + i * gg
        h = o * jnp.tanh(c)
        hs.append(h)
    seq = jnp.stack(hs, axis=1)                                     # (B, T, H)
    out = seq @ wout.T + bout
    return out, (h[None], c[None])


if __name__ == "__main__":
    B, T = 2, 8
    input_size, hidden_size, output_size = 16, 32, 8

    key = jax.random.PRNGKey(0)
    ks = jax.random.split(key, 9)
    bound = 1.0 / (hidden_size ** 0.5)

    params = {
        "w_ih": jax.random.uniform(ks[0], (4 * hidden_size, input_size),
                                   minval=-bound, maxval=bound, dtype=jnp.float32),
        "w_hh": jax.random.uniform(ks[1], (4 * hidden_size, hidden_size),
                                   minval=-bound, maxval=bound, dtype=jnp.float32),
        "b_ih": jax.random.uniform(ks[2], (4 * hidden_size,),
                                   minval=-bound, maxval=bound, dtype=jnp.float32),
        "b_hh": jax.random.uniform(ks[3], (4 * hidden_size,),
                                   minval=-bound, maxval=bound, dtype=jnp.float32),
        "w_out": jax.random.uniform(ks[4], (output_size, hidden_size),
                                    minval=-bound, maxval=bound, dtype=jnp.float32),
        "b_out": jax.random.uniform(ks[5], (output_size,),
                                    minval=-bound, maxval=bound, dtype=jnp.float32),
    }

    x = jax.random.normal(ks[6], (B, T, input_size), dtype=jnp.float32)
    # init_zero_hidden would give zeros; use small random h0/c0 to exercise the state path.
    h0 = 0.1 * jax.random.normal(ks[7], (1, B, hidden_size), dtype=jnp.float32)
    c0 = 0.1 * jax.random.normal(ks[8], (1, B, hidden_size), dtype=jnp.float32)

    # time_block=4 -> 2 time chunks, exercising the h/c carry across the chunked grid axis.
    out, (h_n, c_n) = lstm_forward(x, (h0, c0), params, time_block=4)
    out = jax.block_until_ready(out)
    h_n = jax.block_until_ready(h_n)
    c_n = jax.block_until_ready(c_n)

    out_ref, (hn_ref, cn_ref) = reference_forward(x, (h0, c0), params)
    assert out.shape == (B, T, output_size)
    assert h_n.shape == (1, B, hidden_size) and c_n.shape == (1, B, hidden_size)
    # bf16 MXU inputs + bf16 hseq/out (f32 accumulation & f32 gate math) -> few e-3 abs error.
    assert jnp.allclose(out, out_ref, atol=3e-2, rtol=3e-2)
    assert jnp.allclose(h_n, hn_ref, atol=3e-2, rtol=3e-2)
    assert jnp.allclose(c_n, cn_ref, atol=3e-2, rtol=3e-2)

    print("KERNEL_OK")
</pallas_src>

<mosaic_0001>
module attributes {stable_mosaic.version = 11 : i64} {
  func.func @_lstm_kernel(%arg0: i32, %arg1: i32, %arg2: memref<4x8x128xbf16, #tpu.memory_space<vmem>>, %arg3: memref<8x128xf32, #tpu.memory_space<vmem>>, %arg4: memref<8x128xf32, #tpu.memory_space<vmem>>, %arg5: memref<128x512xbf16, #tpu.memory_space<vmem>>, %arg6: memref<128x512xbf16, #tpu.memory_space<vmem>>, %arg7: memref<1x512xf32, #tpu.memory_space<vmem>>, %arg8: memref<128x128xbf16, #tpu.memory_space<vmem>>, %arg9: memref<1x128xf32, #tpu.memory_space<vmem>>, %arg10: memref<4x8x128xbf16, #tpu.memory_space<vmem>>, %arg11: memref<8x128xf32, #tpu.memory_space<vmem>>, %arg12: memref<8x128xf32, #tpu.memory_space<vmem>>, %arg13: memref<4x8x512xf32, #tpu.memory_space<vmem>>, %arg14: memref<4x8x128xbf16, #tpu.memory_space<vmem>>) attributes {dimension_semantics = [#tpu.dimension_semantics<parallel>, #tpu.dimension_semantics<arbitrary>], iteration_bounds = array<i64: 1, 2>, scalar_prefetch = 0 : i64, scratch_operands = 2 : i64, tpu.core_type = #tpu.core_type<tc>, window_params = [{transform_indices = @transform_0, window_bounds = array<i64: 4, 8, 128>}, {transform_indices = @transform_1, window_bounds = array<i64: 8, 128>}, {transform_indices = @transform_2, window_bounds = array<i64: 8, 128>}, {pipeline_mode = #tpu.pipeline_mode<synchronous>, transform_indices = @transform_3, window_bounds = array<i64: 128, 512>}, {pipeline_mode = #tpu.pipeline_mode<synchronous>, transform_indices = @transform_4, window_bounds = array<i64: 128, 512>}, {pipeline_mode = #tpu.pipeline_mode<synchronous>, transform_indices = @transform_5, window_bounds = array<i64: 1, 512>}, {pipeline_mode = #tpu.pipeline_mode<synchronous>, transform_indices = @transform_6, window_bounds = array<i64: 128, 128>}, {pipeline_mode = #tpu.pipeline_mode<synchronous>, transform_indices = @transform_7, window_bounds = array<i64: 1, 128>}, {transform_indices = @transform_8, window_bounds = array<i64: 4, 8, 128>}, {transform_indices = @transform_9, window_bounds = array<i64: 8, 128>}, {transform_indices = @transform_10, window_bounds = array<i64: 8, 128>}]} {
    %c0_i32 = arith.constant 0 : i32
    %0 = arith.cmpi eq, %arg1, %c0_i32 : i32
    %1 = arith.extui %0 : i1 to i32
    %c0_i32_0 = arith.constant 0 : i32
    %2 = arith.cmpi ne, %1, %c0_i32_0 : i32
    scf.if %2 {
      %c0_62 = arith.constant 0 : index
      %c0_63 = arith.constant 0 : index
      %136 = vector.load %arg3[%c0_62, %c0_63] : memref<8x128xf32, #tpu.memory_space<vmem>>, vector<8x128xf32>
      %c0_64 = arith.constant 0 : index
      %c0_65 = arith.constant 0 : index
      %137 = vector.load %arg11[%c0_64, %c0_65] : memref<8x128xf32, #tpu.memory_space<vmem>>, vector<8x128xf32>
      tpu.vector_store %arg11[%c0_64, %c0_65], %136 {strides = array<i32>} : memref<8x128xf32, #tpu.memory_space<vmem>>, vector<8x128xf32>,
      %c0_66 = arith.constant 0 : index
      %c0_67 = arith.constant 0 : index
      %138 = vector.load %arg4[%c0_66, %c0_67] : memref<8x128xf32, #tpu.memory_space<vmem>>, vector<8x128xf32>
      %c0_68 = arith.constant 0 : index
      %c0_69 = arith.constant 0 : index
      %139 = vector.load %arg12[%c0_68, %c0_69] : memref<8x128xf32, #tpu.memory_space<vmem>>, vector<8x128xf32>
      tpu.vector_store %arg12[%c0_68, %c0_69], %138 {strides = array<i32>} : memref<8x128xf32, #tpu.memory_space<vmem>>, vector<8x128xf32>,
    } else {
    }
    %c0 = arith.constant 0 : index
    %c0_1 = arith.constant 0 : index
    %c0_2 = arith.constant 0 : index
    %3 = vector.load %arg2[%c0, %c0_1, %c0_2] : memref<4x8x128xbf16, #tpu.memory_space<vmem>>, vector<4x8x128xbf16>
    %4 = vector.shape_cast %3 : vector<4x8x128xbf16> to vector<32x128xbf16>
    %c0_3 = arith.constant 0 : index
    %c0_4 = arith.constant 0 : index
    %5 = vector.load %arg5[%c0_3, %c0_4] : memref<128x512xbf16, #tpu.memory_space<vmem>>, vector<128x512xbf16>
    %cst = arith.constant dense<0.000000e+00> : vector<32x512xf32>
    %6 = tpu.matmul %4, %5, %cst {dimension_numbers = #tpu.dot_dimension_numbers<[1], [0], [0], [1], [0, 0, 1, 1], [], []>} : vector<32x128xbf16>, vector<128x512xbf16>, vector<32x512xf32> -> vector<32x512xf32>
    %c0_5 = arith.constant 0 : index
    %c0_6 = arith.constant 0 : index
    %7 = vector.load %arg7[%c0_5, %c0_6] : memref<1x512xf32, #tpu.memory_space<vmem>>, vector<1x512xf32>
    %8 = vector.broadcast %7 : vector<1x512xf32> to vector<32x512xf32>
    %9 = arith.addf %6, %8 : vector<32x512xf32>
    %10 = vector.shape_cast %9 : vector<32x512xf32> to vector<4x8x512xf32>
    %c0_7 = arith.constant 0 : index
    %c0_8 = arith.constant 0 : index
    %c0_9 = arith.constant 0 : index
    %11 = vector.load %arg13[%c0_7, %c0_8, %c0_9] : memref<4x8x512xf32, #tpu.memory_space<vmem>>, vector<4x8x512xf32>
    tpu.vector_store %arg13[%c0_7, %c0_8, %c0_9], %10 {strides = array<i32>} : memref<4x8x512xf32, #tpu.memory_space<vmem>>, vector<4x8x512xf32>,
    %c0_10 = arith.constant 0 : index
    %c0_11 = arith.constant 0 : index
    %12 = vector.load %arg11[%c0_10, %c0_11] : memref<8x128xf32, #tpu.memory_space<vmem>>, vector<8x128xf32>
    %13 = arith.truncf %12 : vector<8x128xf32> to vector<8x128xbf16>
    %c0_12 = arith.constant 0 : index
    %c0_13 = arith.constant 0 : index
    %14 = vector.load %arg12[%c0_12, %c0_13] : memref<8x128xf32, #tpu.memory_space<vmem>>, vector<8x128xf32>
    %c0_i32_14 = arith.constant 0 : i32
    %c0_15 = arith.constant 0 : index
    %c0_16 = arith.constant 0 : index
    %15 = vector.load %arg6[%c0_15, %c0_16] : memref<128x512xbf16, #tpu.memory_space<vmem>>, vector<128x512xbf16>
    %cst_17 = arith.constant dense<0.000000e+00> : vector<8x512xf32>
    %16 = tpu.matmul %13, %15, %cst_17 {dimension_numbers = #tpu.dot_dimension_numbers<[1], [0], [0], [1], [0, 0, 1, 1], [], []>} : vector<8x128xbf16>, vector<128x512xbf16>, vector<8x512xf32> -> vector<8x512xf32>
    %17 = arith.index_cast %c0_i32_14 : i32 to index
    %c0_18 = arith.constant 0 : index
    %c0_19 = arith.constant 0 : index
    %18 = vector.load %arg13[%17, %c0_18, %c0_19] : memref<4x8x512xf32, #tpu.memory_space<vmem>>, vector<1x8x512xf32>
    %19 = vector.shape_cast %18 : vector<1x8x512xf32> to vector<8x512xf32>
    %20 = arith.addf %19, %16 : vector<8x512xf32>
    %21 = vector.extract_strided_slice %20 {offsets = [0, 0], sizes = [8, 384], strides = [1, 1]} : vector<8x512xf32> to vector<8x384xf32>
    %22 = arith.negf %21 : vector<8x384xf32>
    %23 = math.exp %22 : vector<8x384xf32>
    %cst_20 = arith.constant 1.000000e+00 : f32
    %24 = vector.broadcast %cst_20 : f32 to vector<8x384xf32>
    %25 = arith.addf %24, %23 : vector<8x384xf32>
    %26 = arith.divf %24, %25 : vector<8x384xf32>
    %27 = vector.extract_strided_slice %26 {offsets = [0, 0], sizes = [8, 128], strides = [1, 1]} : vector<8x384xf32> to vector<8x128xf32>
    %28 = vector.extract_strided_slice %26 {offsets = [0, 128], sizes = [8, 128], strides = [1, 1]} : vector<8x384xf32> to vector<8x128xf32>
    %29 = vector.extract_strided_slice %26 {offsets = [0, 256], sizes = [8, 128], strides = [1, 1]} : vector<8x384xf32> to vector<8x128xf32>
    %30 = vector.extract_strided_slice %20 {offsets = [0, 384], sizes = [8, 128], strides = [1, 1]} : vector<8x512xf32> to vector<8x128xf32>
    %31 = math.tanh %30 : vector<8x128xf32>
    %32 = arith.mulf %28, %14 : vector<8x128xf32>
    %33 = arith.mulf %27, %31 : vector<8x128xf32>
    %34 = arith.addf %32, %33 : vector<8x128xf32>
    %35 = math.tanh %34 : vector<8x128xf32>
    %36 = arith.mulf %29, %35 : vector<8x128xf32>
    %37 = arith.truncf %36 : vector<8x128xf32> to vector<8x128xbf16>
    %38 = arith.index_cast %c0_i32_14 : i32 to index
    %c0_21 = arith.constant 0 : index
    %c0_22 = arith.constant 0 : index
    %39 = vector.load %arg14[%38, %c0_21, %c0_22] : memref<4x8x128xbf16, #tpu.memory_space<vmem>>, vector<1x8x128xbf16>
    %40 = vector.shape_cast %39 : vector<1x8x128xbf16> to vector<8x128xbf16>
    %41 = vector.shape_cast %37 : vector<8x128xbf16> to vector<1x8x128xbf16>
    tpu.vector_store %arg14[%38, %c0_21, %c0_22], %41 {strides = array<i32>} : memref<4x8x128xbf16, #tpu.memory_space<vmem>>, vector<1x8x128xbf16>,
    %c1_i32 = arith.constant 1 : i32
    %c0_23 = arith.constant 0 : index
    %c0_24 = arith.constant 0 : index
    %42 = vector.load %arg6[%c0_23, %c0_24] : memref<128x512xbf16, #tpu.memory_space<vmem>>, vector<128x512xbf16>
    %cst_25 = arith.constant dense<0.000000e+00> : vector<8x512xf32>
    %43 = tpu.matmul %37, %42, %cst_25 {dimension_numbers = #tpu.dot_dimension_numbers<[1], [0], [0], [1], [0, 0, 1, 1], [], []>} : vector<8x128xbf16>, vector<128x512xbf16>, vector<8x512xf32> -> vector<8x512xf32>
    %44 = arith.index_cast %c1_i32 : i32 to index
    %c0_26 = arith.constant 0 : index
    %c0_27 = arith.constant 0 : index
    %45 = vector.load %arg13[%44, %c0_26, %c0_27] : memref<4x8x512xf32, #tpu.memory_space<vmem>>, vector<1x8x512xf32>
    %46 = vector.shape_cast %45 : vector<1x8x512xf32> to vector<8x512xf32>
    %47 = arith.addf %46, %43 : vector<8x512xf32>
    %48 = vector.extract_strided_slice %47 {offsets = [0, 0], sizes = [8, 384], strides = [1, 1]} : vector<8x512xf32> to vector<8x384xf32>
    %49 = arith.negf %48 : vector<8x384xf32>
    %50 = math.exp %49 : vector<8x384xf32>
    %cst_28 = arith.constant 1.000000e+00 : f32
    %51 = vector.broadcast %cst_28 : f32 to vector<8x384xf32>
    %52 = arith.addf %51, %50 : vector<8x384xf32>
    %53 = arith.divf %51, %52 : vector<8x384xf32>
    %54 = vector.extract_strided_slice %53 {offsets = [0, 0], sizes = [8, 128], strides = [1, 1]} : vector<8x384xf32> to vector<8x128xf32>
    %55 = vector.extract_strided_slice %53 {offsets = [0, 128], sizes = [8, 128], strides = [1, 1]} : vector<8x384xf32> to vector<8x128xf32>
    %56 = vector.extract_strided_slice %53 {offsets = [0, 256], sizes = [8, 128], strides = [1, 1]} : vector<8x384xf32> to vector<8x128xf32>
    %57 = vector.extract_strided_slice %47 {offsets = [0, 384], sizes = [8, 128], strides = [1, 1]} : vector<8x512xf32> to vector<8x128xf32>
    %58 = math.tanh %57 : vector<8x128xf32>
    %59 = arith.mulf %55, %34 : vector<8x128xf32>
    %60 = arith.mulf %54, %58 : vector<8x128xf32>
    %61 = arith.addf %59, %60 : vector<8x128xf32>
    %62 = math.tanh %61 : vector<8x128xf32>
    %63 = arith.mulf %56, %62 : vector<8x128xf32>
    %64 = arith.truncf %63 : vector<8x128xf32> to vector<8x128xbf16>
    %65 = arith.index_cast %c1_i32 : i32 to index
    %c0_29 = arith.constant 0 : index
    %c0_30 = arith.constant 0 : index
    %66 = vector.load %arg14[%65, %c0_29, %c0_30] : memref<4x8x128xbf16, #tpu.memory_space<vmem>>, vector<1x8x128xbf16>
    %67 = vector.shape_cast %66 : vector<1x8x128xbf16> to vector<8x128xbf16>
    %68 = vector.shape_cast %64 : vector<8x128xbf16> to vector<1x8x128xbf16>
    tpu.vector_store %arg14[%65, %c0_29, %c0_30], %68 {strides = array<i32>} : memref<4x8x128xbf16, #tpu.memory_space<vmem>>, vector<1x8x128xbf16>,
    %c2_i32 = arith.constant 2 : i32
    %c0_31 = arith.constant 0 : index
    %c0_32 = arith.constant 0 : index
    %69 = vector.load %arg6[%c0_31, %c0_32] : memref<128x512xbf16, #tpu.memory_space<vmem>>, vector<128x512xbf16>
    %cst_33 = arith.constant dense<0.000000e+00> : vector<8x512xf32>
    %70 = tpu.matmul %64, %69, %cst_33 {dimension_numbers = #tpu.dot_dimension_numbers<[1], [0], [0], [1], [0, 0, 1, 1], [], []>} : vector<8x128xbf16>, vector<128x512xbf16>, vector<8x512xf32> -> vector<8x512xf32>
    %71 = arith.index_cast %c2_i32 : i32 to index
    %c0_34 = arith.constant 0 : index
    %c0_35 = arith.constant 0 : index
    %72 = vector.load %arg13[%71, %c0_34, %c0_35] : memref<4x8x512xf32, #tpu.memory_space<vmem>>, vector<1x8x512xf32>
    %73 = vector.shape_cast %72 : vector<1x8x512xf32> to vector<8x512xf32>
    %74 = arith.addf %73, %70 : vector<8x512xf32>
    %75 = vector.extract_strided_slice %74 {offsets = [0, 0], sizes = [8, 384], strides = [1, 1]} : vector<8x512xf32> to vector<8x384xf32>
    %76 = arith.negf %75 : vector<8x384xf32>
    %77 = math.exp %76 : vector<8x384xf32>
    %cst_36 = arith.constant 1.000000e+00 : f32
    %78 = vector.broadcast %cst_36 : f32 to vector<8x384xf32>
    %79 = arith.addf %78, %77 : vector<8x384xf32>
    %80 = arith.divf %78, %79 : vector<8x384xf32>
    %81 = vector.extract_strided_slice %80 {offsets = [0, 0], sizes = [8, 128], strides = [1, 1]} : vector<8x384xf32> to vector<8x128xf32>
    %82 = vector.extract_strided_slice %80 {offsets = [0, 128], sizes = [8, 128], strides = [1, 1]} : vector<8x384xf32> to vector<8x128xf32>
    %83 = vector.extract_strided_slice %80 {offsets = [0, 256], sizes = [8, 128], strides = [1, 1]} : vector<8x384xf32> to vector<8x128xf32>
    %84 = vector.extract_strided_slice %74 {offsets = [0, 384], sizes = [8, 128], strides = [1, 1]} : vector<8x512xf32> to vector<8x128xf32>
    %85 = math.tanh %84 : vector<8x128xf32>
    %86 = arith.mulf %82, %61 : vector<8x128xf32>
    %87 = arith.mulf %81, %85 : vector<8x128xf32>
    %88 = arith.addf %86, %87 : vector<8x128xf32>
    %89 = math.tanh %88 : vector<8x128xf32>
    %90 = arith.mulf %83, %89 : vector<8x128xf32>
    %91 = arith.truncf %90 : vector<8x128xf32> to vector<8x128xbf16>
    %92 = arith.index_cast %c2_i32 : i32 to index
    %c0_37 = arith.constant 0 : index
    %c0_38 = arith.constant 0 : index
    %93 = vector.load %arg14[%92, %c0_37, %c0_38] : memref<4x8x128xbf16, #tpu.memory_space<vmem>>, vector<1x8x128xbf16>
    %94 = vector.shape_cast %93 : vector<1x8x128xbf16> to vector<8x128xbf16>
    %95 = vector.shape_cast %91 : vector<8x128xbf16> to vector<1x8x128xbf16>
    tpu.vector_store %arg14[%92, %c0_37, %c0_38], %95 {strides = array<i32>} : memref<4x8x128xbf16, #tpu.memory_space<vmem>>, vector<1x8x128xbf16>,
    %c3_i32 = arith.constant 3 : i32
    %c0_39 = arith.constant 0 : index
    %c0_40 = arith.constant 0 : index
    %96 = vector.load %arg6[%c0_39, %c0_40] : memref<128x512xbf16, #tpu.memory_space<vmem>>, vector<128x512xbf16>
    %cst_41 = arith.constant dense<0.000000e+00> : vector<8x512xf32>
    %97 = tpu.matmul %91, %96, %cst_41 {dimension_numbers = #tpu.dot_dimension_numbers<[1], [0], [0], [1], [0, 0, 1, 1], [], []>} : vector<8x128xbf16>, vector<128x512xbf16>, vector<8x512xf32> -> vector<8x512xf32>
    %98 = arith.index_cast %c3_i32 : i32 to index
    %c0_42 = arith.constant 0 : index
    %c0_43 = arith.constant 0 : index
    %99 = vector.load %arg13[%98, %c0_42, %c0_43] : memref<4x8x512xf32, #tpu.memory_space<vmem>>, vector<1x8x512xf32>
    %100 = vector.shape_cast %99 : vector<1x8x512xf32> to vector<8x512xf32>
    %101 = arith.addf %100, %97 : vector<8x512xf32>
    %102 = vector.extract_strided_slice %101 {offsets = [0, 0], sizes = [8, 384], strides = [1, 1]} : vector<8x512xf32> to vector<8x384xf32>
    %103 = arith.negf %102 : vector<8x384xf32>
    %104 = math.exp %103 : vector<8x384xf32>
    %cst_44 = arith.constant 1.000000e+00 : f32
    %105 = vector.broadcast %cst_44 : f32 to vector<8x384xf32>
    %106 = arith.addf %105, %104 : vector<8x384xf32>
    %107 = arith.divf %105, %106 : vector<8x384xf32>
    %108 = vector.extract_strided_slice %107 {offsets = [0, 0], sizes = [8, 128], strides = [1, 1]} : vector<8x384xf32> to vector<8x128xf32>
    %109 = vector.extract_strided_slice %107 {offsets = [0, 128], sizes = [8, 128], strides = [1, 1]} : vector<8x384xf32> to vector<8x128xf32>
    %110 = vector.extract_strided_slice %107 {offsets = [0, 256], sizes = [8, 128], strides = [1, 1]} : vector<8x384xf32> to vector<8x128xf32>
    %111 = vector.extract_strided_slice %101 {offsets = [0, 384], sizes = [8, 128], strides = [1, 1]} : vector<8x512xf32> to vector<8x128xf32>
    %112 = math.tanh %111 : vector<8x128xf32>
    %113 = arith.mulf %109, %88 : vector<8x128xf32>
    %114 = arith.mulf %108, %112 : vector<8x128xf32>
    %115 = arith.addf %113, %114 : vector<8x128xf32>
    %116 = math.tanh %115 : vector<8x128xf32>
    %117 = arith.mulf %110, %116 : vector<8x128xf32>
    %118 = arith.truncf %117 : vector<8x128xf32> to vector<8x128xbf16>
    %119 = arith.index_cast %c3_i32 : i32 to index
    %c0_45 = arith.constant 0 : index
    %c0_46 = arith.constant 0 : index
    %120 = vector.load %arg14[%119, %c0_45, %c0_46] : memref<4x8x128xbf16, #tpu.memory_space<vmem>>, vector<1x8x128xbf16>
    %121 = vector.shape_cast %120 : vector<1x8x128xbf16> to vector<8x128xbf16>
    %122 = vector.shape_cast %118 : vector<8x128xbf16> to vector<1x8x128xbf16>
    tpu.vector_store %arg14[%119, %c0_45, %c0_46], %122 {strides = array<i32>} : memref<4x8x128xbf16, #tpu.memory_space<vmem>>, vector<1x8x128xbf16>,
    %c4_i32 = arith.constant 4 : i32
    %123 = arith.extf %118 : vector<8x128xbf16> to vector<8x128xf32>
    %c0_47 = arith.constant 0 : index
    %c0_48 = arith.constant 0 : index
    %124 = vector.load %arg11[%c0_47, %c0_48] : memref<8x128xf32, #tpu.memory_space<vmem>>, vector<8x128xf32>
    tpu.vector_store %arg11[%c0_47, %c0_48], %123 {strides = array<i32>} : memref<8x128xf32, #tpu.memory_space<vmem>>, vector<8x128xf32>,
    %c0_49 = arith.constant 0 : index
    %c0_50 = arith.constant 0 : index
    %125 = vector.load %arg12[%c0_49, %c0_50] : memref<8x128xf32, #tpu.memory_space<vmem>>, vector<8x128xf32>
    tpu.vector_store %arg12[%c0_49, %c0_50], %115 {strides = array<i32>} : memref<8x128xf32, #tpu.memory_space<vmem>>, vector<8x128xf32>,
    %c0_51 = arith.constant 0 : index
    %c0_52 = arith.constant 0 : index
    %c0_53 = arith.constant 0 : index
    %126 = vector.load %arg14[%c0_51, %c0_52, %c0_53] : memref<4x8x128xbf16, #tpu.memory_space<vmem>>, vector<4x8x128xbf16>
    %127 = vector.shape_cast %126 : vector<4x8x128xbf16> to vector<32x128xbf16>
    %c0_54 = arith.constant 0 : index
    %c0_55 = arith.constant 0 : index
    %128 = vector.load %arg8[%c0_54, %c0_55] : memref<128x128xbf16, #tpu.memory_space<vmem>>, vector<128x128xbf16>
    %cst_56 = arith.constant dense<0.000000e+00> : vector<32x128xf32>
    %129 = tpu.matmul %127, %128, %cst_56 {dimension_numbers = #tpu.dot_dimension_numbers<[1], [0], [0], [1], [0, 0, 1, 1], [], []>} : vector<32x128xbf16>, vector<128x128xbf16>, vector<32x128xf32> -> vector<32x128xf32>
    %c0_57 = arith.constant 0 : index
    %c0_58 = arith.constant 0 : index
    %130 = vector.load %arg9[%c0_57, %c0_58] : memref<1x128xf32, #tpu.memory_space<vmem>>, vector<1x128xf32>
    %131 = vector.broadcast %130 : vector<1x128xf32> to vector<32x128xf32>
    %132 = arith.addf %129, %131 : vector<32x128xf32>
    %133 = arith.truncf %132 : vector<32x128xf32> to vector<32x128xbf16>
    %134 = vector.shape_cast %133 : vector<32x128xbf16> to vector<4x8x128xbf16>
    %c0_59 = arith.constant 0 : index
    %c0_60 = arith.constant 0 : index
    %c0_61 = arith.constant 0 : index
    %135 = vector.load %arg10[%c0_59, %c0_60, %c0_61] : memref<4x8x128xbf16, #tpu.memory_space<vmem>>, vector<4x8x128xbf16>
    tpu.vector_store %arg10[%c0_59, %c0_60, %c0_61], %134 {strides = array<i32>} : memref<4x8x128xbf16, #tpu.memory_space<vmem>>, vector<4x8x128xbf16>,
    return
  }
  func.func @transform_0(%arg0: i32, %arg1: i32) -> (i32, i32, i32) {
    %c0_i32 = arith.constant 0 : i32
    %c0_i32_0 = arith.constant 0 : i32
    return %arg1, %arg0, %c0_i32 : i32, i32, i32
  }
  func.func @transform_1(%arg0: i32, %arg1: i32) -> (i32, i32) {
    %c0_i32 = arith.constant 0 : i32
    %c0_i32_0 = arith.constant 0 : i32
    return %arg0, %c0_i32 : i32, i32
  }
  func.func @transform_2(%arg0: i32, %arg1: i32) -> (i32, i32) {
    %c0_i32 = arith.constant 0 : i32
    %c0_i32_0 = arith.constant 0 : i32
    return %arg0, %c0_i32 : i32, i32
  }
  func.func @transform_3(%arg0: i32, %arg1: i32) -> (i32, i32) {
    %c0_i32 = arith.constant 0 : i32
    %c0_i32_0 = arith.constant 0 : i32
    %c0_i32_1 = arith.constant 0 : i32
    return %c0_i32, %c0_i32_0 : i32, i32
  }
  func.func @transform_4(%arg0: i32, %arg1: i32) -> (i32, i32) {
    %c0_i32 = arith.constant 0 : i32
    %c0_i32_0 = arith.constant 0 : i32
    %c0_i32_1 = arith.constant 0 : i32
    return %c0_i32, %c0_i32_0 : i32, i32
  }
  func.func @transform_5(%arg0: i32, %arg1: i32) -> (i32, i32) {
    %c0_i32 = arith.constant 0 : i32
    %c0_i32_0 = arith.constant 0 : i32
    %c0_i32_1 = arith.constant 0 : i32
    return %c0_i32, %c0_i32_0 : i32, i32
  }
  func.func @transform_6(%arg0: i32, %arg1: i32) -> (i32, i32) {
    %c0_i32 = arith.constant 0 : i32
    %c0_i32_0 = arith.constant 0 : i32
    %c0_i32_1 = arith.constant 0 : i32
    return %c0_i32, %c0_i32_0 : i32, i32
  }
  func.func @transform_7(%arg0: i32, %arg1: i32) -> (i32, i32) {
    %c0_i32 = arith.constant 0 : i32
    %c0_i32_0 = arith.constant 0 : i32
    %c0_i32_1 = arith.constant 0 : i32
    return %c0_i32, %c0_i32_0 : i32, i32
  }
  func.func @transform_8(%arg0: i32, %arg1: i32) -> (i32, i32, i32) {
    %c0_i32 = arith.constant 0 : i32
    %c0_i32_0 = arith.constant 0 : i32
    return %arg1, %arg0, %c0_i32 : i32, i32, i32
  }
  func.func @transform_9(%arg0: i32, %arg1: i32) -> (i32, i32) {
    %c0_i32 = arith.constant 0 : i32
    %c0_i32_0 = arith.constant 0 : i32
    return %arg0, %c0_i32 : i32, i32
  }
  func.func @transform_10(%arg0: i32, %arg1: i32) -> (i32, i32) {
    %c0_i32 = arith.constant 0 : i32
    %c0_i32_0 = arith.constant 0 : i32
    return %arg0, %c0_i32 : i32, i32
  }
}

module attributes {stable_mosaic.version = 11 : i64} {
  func.func @_lstm_kernel(%arg0: i32, %arg1: i32, %arg2: memref<4x8x128xbf16, #tpu.memory_space<vmem>>, %arg3: memref<8x128xf32, #tpu.memory_space<vmem>>, %arg4: memref<8x128xf32, #tpu.memory_space<vmem>>, %arg5: memref<128x512xbf16, #tpu.memory_space<vmem>>, %arg6: memref<128x512xbf16, #tpu.memory_space<vmem>>, %arg7: memref<1x512xf32, #tpu.memory_space<vmem>>, %arg8: memref<128x128xbf16, #tpu.memory_space<vmem>>, %arg9: memref<1x128xf32, #tpu.memory_space<vmem>>, %arg10: memref<4x8x128xbf16, #tpu.memory_space<vmem>>, %arg11: memref<8x128xf32, #tpu.memory_space<vmem>>, %arg12: memref<8x128xf32, #tpu.memory_space<vmem>>, %arg13: memref<4x8x512xf32, #tpu.memory_space<vmem>>, %arg14: memref<4x8x128xbf16, #tpu.memory_space<vmem>>) attributes {dimension_semantics = [#tpu.dimension_semantics<parallel>, #tpu.dimension_semantics<arbitrary>], iteration_bounds = array<i64: 1, 2>, scalar_prefetch = 0 : i64, scratch_operands = 2 : i64, tpu.core_type = #tpu.core_type<tc>, window_params = [{transform_indices = @transform_0, window_bounds = array<i64: 4, 8, 128>}, {transform_indices = @transform_1, window_bounds = array<i64: 8, 128>}, {transform_indices = @transform_2, window_bounds = array<i64: 8, 128>}, {pipeline_mode = #tpu.pipeline_mode<synchronous>, transform_indices = @transform_3, window_bounds = array<i64: 128, 512>}, {pipeline_mode = #tpu.pipeline_mode<synchronous>, transform_indices = @transform_4, window_bounds = array<i64: 128, 512>}, {pipeline_mode = #tpu.pipeline_mode<synchronous>, transform_indices = @transform_5, window_bounds = array<i64: 1, 512>}, {pipeline_mode = #tpu.pipeline_mode<synchronous>, transform_indices = @transform_6, window_bounds = array<i64: 128, 128>}, {pipeline_mode = #tpu.pipeline_mode<synchronous>, transform_indices = @transform_7, window_bounds = array<i64: 1, 128>}, {transform_indices = @transform_8, window_bounds = array<i64: 4, 8, 128>}, {transform_indices = @transform_9, window_bounds = array<i64: 8, 128>}, {transform_indices = @transform_10, window_bounds = array<i64: 8, 128>}]} {
    %c0_i32 = arith.constant 0 : i32
    %0 = arith.cmpi eq, %arg1, %c0_i32 : i32
    %1 = arith.extui %0 : i1 to i32
    %c0_i32_0 = arith.constant 0 : i32
    %2 = arith.cmpi ne, %1, %c0_i32_0 : i32
    scf.if %2 {
      %c0_62 = arith.constant 0 : index
      %c0_63 = arith.constant 0 : index
      %136 = vector.load %arg3[%c0_62, %c0_63] : memref<8x128xf32, #tpu.memory_space<vmem>>, vector<8x128xf32>
      %c0_64 = arith.constant 0 : index
      %c0_65 = arith.constant 0 : index
      %137 = vector.load %arg11[%c0_64, %c0_65] : memref<8x128xf32, #tpu.memory_space<vmem>>, vector<8x128xf32>
      tpu.vector_store %arg11[%c0_64, %c0_65], %136 {strides = array<i32>} : memref<8x128xf32, #tpu.memory_space<vmem>>, vector<8x128xf32>,
      %c0_66 = arith.constant 0 : index
      %c0_67 = arith.constant 0 : index
      %138 = vector.load %arg4[%c0_66, %c0_67] : memref<8x128xf32, #tpu.memory_space<vmem>>, vector<8x128xf32>
      %c0_68 = arith.constant 0 : index
      %c0_69 = arith.constant 0 : index
      %139 = vector.load %arg12[%c0_68, %c0_69] : memref<8x128xf32, #tpu.memory_space<vmem>>, vector<8x128xf32>
      tpu.vector_store %arg12[%c0_68, %c0_69], %138 {strides = array<i32>} : memref<8x128xf32, #tpu.memory_space<vmem>>, vector<8x128xf32>,
    } else {
    }
    %c0 = arith.constant 0 : index
    %c0_1 = arith.constant 0 : index
    %c0_2 = arith.constant 0 : index
    %3 = vector.load %arg2[%c0, %c0_1, %c0_2] : memref<4x8x128xbf16, #tpu.memory_space<vmem>>, vector<4x8x128xbf16>
    %4 = vector.shape_cast %3 : vector<4x8x128xbf16> to vector<32x128xbf16>
    %c0_3 = arith.constant 0 : index
    %c0_4 = arith.constant 0 : index
    %5 = vector.load %arg5[%c0_3, %c0_4] : memref<128x512xbf16, #tpu.memory_space<vmem>>, vector<128x512xbf16>
    %cst = arith.constant dense<0.000000e+00> : vector<32x512xf32>
    %6 = tpu.matmul %4, %5, %cst {dimension_numbers = #tpu.dot_dimension_numbers<[1], [0], [0], [1], [0, 0, 1, 1], [], []>} : vector<32x128xbf16>, vector<128x512xbf16>, vector<32x512xf32> -> vector<32x512xf32>
    %c0_5 = arith.constant 0 : index
    %c0_6 = arith.constant 0 : index
    %7 = vector.load %arg7[%c0_5, %c0_6] : memref<1x512xf32, #tpu.memory_space<vmem>>, vector<1x512xf32>
    %8 = vector.broadcast %7 : vector<1x512xf32> to vector<32x512xf32>
    %9 = arith.addf %6, %8 : vector<32x512xf32>
    %10 = vector.shape_cast %9 : vector<32x512xf32> to vector<4x8x512xf32>
    %c0_7 = arith.constant 0 : index
    %c0_8 = arith.constant 0 : index
    %c0_9 = arith.constant 0 : index
    %11 = vector.load %arg13[%c0_7, %c0_8, %c0_9] : memref<4x8x512xf32, #tpu.memory_space<vmem>>, vector<4x8x512xf32>
    tpu.vector_store %arg13[%c0_7, %c0_8, %c0_9], %10 {strides = array<i32>} : memref<4x8x512xf32, #tpu.memory_space<vmem>>, vector<4x8x512xf32>,
    %c0_10 = arith.constant 0 : index
    %c0_11 = arith.constant 0 : index
    %12 = vector.load %arg11[%c0_10, %c0_11] : memref<8x128xf32, #tpu.memory_space<vmem>>, vector<8x128xf32>
    %13 = arith.truncf %12 : vector<8x128xf32> to vector<8x128xbf16>
    %c0_12 = arith.constant 0 : index
    %c0_13 = arith.constant 0 : index
    %14 = vector.load %arg12[%c0_12, %c0_13] : memref<8x128xf32, #tpu.memory_space<vmem>>, vector<8x128xf32>
    %c0_i32_14 = arith.constant 0 : i32
    %c0_15 = arith.constant 0 : index
    %c0_16 = arith.constant 0 : index
    %15 = vector.load %arg6[%c0_15, %c0_16] : memref<128x512xbf16, #tpu.memory_space<vmem>>, vector<128x512xbf16>
    %cst_17 = arith.constant dense<0.000000e+00> : vector<8x512xf32>
    %16 = tpu.matmul %13, %15, %cst_17 {dimension_numbers = #tpu.dot_dimension_numbers<[1], [0], [0], [1], [0, 0, 1, 1], [], []>} : vector<8x128xbf16>, vector<128x512xbf16>, vector<8x512xf32> -> vector<8x512xf32>
    %17 = arith.index_cast %c0_i32_14 : i32 to index
    %c0_18 = arith.constant 0 : index
    %c0_19 = arith.constant 0 : index
    %18 = vector.load %arg13[%17, %c0_18, %c0_19] : memref<4x8x512xf32, #tpu.memory_space<vmem>>, vector<1x8x512xf32>
    %19 = vector.shape_cast %18 : vector<1x8x512xf32> to vector<8x512xf32>
    %20 = arith.addf %19, %16 : vector<8x512xf32>
    %21 = vector.extract_strided_slice %20 {offsets = [0, 0], sizes = [8, 384], strides = [1, 1]} : vector<8x512xf32> to vector<8x384xf32>
    %22 = arith.negf %21 : vector<8x384xf32>
    %23 = math.exp %22 : vector<8x384xf32>
    %cst_20 = arith.constant 1.000000e+00 : f32
    %24 = vector.broadcast %cst_20 : f32 to vector<8x384xf32>
    %25 = arith.addf %24, %23 : vector<8x384xf32>
    %26 = arith.divf %24, %25 : vector<8x384xf32>
    %27 = vector.extract_strided_slice %26 {offsets = [0, 0], sizes = [8, 128], strides = [1, 1]} : vector<8x384xf32> to vector<8x128xf32>
    %28 = vector.extract_strided_slice %26 {offsets = [0, 128], sizes = [8, 128], strides = [1, 1]} : vector<8x384xf32> to vector<8x128xf32>
    %29 = vector.extract_strided_slice %26 {offsets = [0, 256], sizes = [8, 128], strides = [1, 1]} : vector<8x384xf32> to vector<8x128xf32>
    %30 = vector.extract_strided_slice %20 {offsets = [0, 384], sizes = [8, 128], strides = [1, 1]} : vector<8x512xf32> to vector<8x128xf32>
    %31 = math.tanh %30 : vector<8x128xf32>
    %32 = arith.mulf %28, %14 : vector<8x128xf32>
    %33 = arith.mulf %27, %31 : vector<8x128xf32>
    %34 = arith.addf %32, %33 : vector<8x128xf32>
    %35 = math.tanh %34 : vector<8x128xf32>
    %36 = arith.mulf %29, %35 : vector<8x128xf32>
    %37 = arith.truncf %36 : vector<8x128xf32> to vector<8x128xbf16>
    %38 = arith.index_cast %c0_i32_14 : i32 to index
    %c0_21 = arith.constant 0 : index
    %c0_22 = arith.constant 0 : index
    %39 = vector.load %arg14[%38, %c0_21, %c0_22] : memref<4x8x128xbf16, #tpu.memory_space<vmem>>, vector<1x8x128xbf16>
    %40 = vector.shape_cast %39 : vector<1x8x128xbf16> to vector<8x128xbf16>
    %41 = vector.shape_cast %37 : vector<8x128xbf16> to vector<1x8x128xbf16>
    tpu.vector_store %arg14[%38, %c0_21, %c0_22], %41 {strides = array<i32>} : memref<4x8x128xbf16, #tpu.memory_space<vmem>>, vector<1x8x128xbf16>,
    %c1_i32 = arith.constant 1 : i32
    %c0_23 = arith.constant 0 : index
    %c0_24 = arith.constant 0 : index
    %42 = vector.load %arg6[%c0_23, %c0_24] : memref<128x512xbf16, #tpu.memory_space<vmem>>, vector<128x512xbf16>
    %cst_25 = arith.constant dense<0.000000e+00> : vector<8x512xf32>
    %43 = tpu.matmul %37, %42, %cst_25 {dimension_numbers = #tpu.dot_dimension_numbers<[1], [0], [0], [1], [0, 0, 1, 1], [], []>} : vector<8x128xbf16>, vector<128x512xbf16>, vector<8x512xf32> -> vector<8x512xf32>
    %44 = arith.index_cast %c1_i32 : i32 to index
    %c0_26 = arith.constant 0 : index
    %c0_27 = arith.constant 0 : index
    %45 = vector.load %arg13[%44, %c0_26, %c0_27] : memref<4x8x512xf32, #tpu.memory_space<vmem>>, vector<1x8x512xf32>
    %46 = vector.shape_cast %45 : vector<1x8x512xf32> to vector<8x512xf32>
    %47 = arith.addf %46, %43 : vector<8x512xf32>
    %48 = vector.extract_strided_slice %47 {offsets = [0, 0], sizes = [8, 384], strides = [1, 1]} : vector<8x512xf32> to vector<8x384xf32>
    %49 = arith.negf %48 : vector<8x384xf32>
    %50 = math.exp %49 : vector<8x384xf32>
    %cst_28 = arith.constant 1.000000e+00 : f32
    %51 = vector.broadcast %cst_28 : f32 to vector<8x384xf32>
    %52 = arith.addf %51, %50 : vector<8x384xf32>
    %53 = arith.divf %51, %52 : vector<8x384xf32>
    %54 = vector.extract_strided_slice %53 {offsets = [0, 0], sizes = [8, 128], strides = [1, 1]} : vector<8x384xf32> to vector<8x128xf32>
    %55 = vector.extract_strided_slice %53 {offsets = [0, 128], sizes = [8, 128], strides = [1, 1]} : vector<8x384xf32> to vector<8x128xf32>
    %56 = vector.extract_strided_slice %53 {offsets = [0, 256], sizes = [8, 128], strides = [1, 1]} : vector<8x384xf32> to vector<8x128xf32>
    %57 = vector.extract_strided_slice %47 {offsets = [0, 384], sizes = [8, 128], strides = [1, 1]} : vector<8x512xf32> to vector<8x128xf32>
    %58 = math.tanh %57 : vector<8x128xf32>
    %59 = arith.mulf %55, %34 : vector<8x128xf32>
    %60 = arith.mulf %54, %58 : vector<8x128xf32>
    %61 = arith.addf %59, %60 : vector<8x128xf32>
    %62 = math.tanh %61 : vector<8x128xf32>
    %63 = arith.mulf %56, %62 : vector<8x128xf32>
    %64 = arith.truncf %63 : vector<8x128xf32> to vector<8x128xbf16>
    %65 = arith.index_cast %c1_i32 : i32 to index
    %c0_29 = arith.constant 0 : index
    %c0_30 = arith.constant 0 : index
    %66 = vector.load %arg14[%65, %c0_29, %c0_30] : memref<4x8x128xbf16, #tpu.memory_space<vmem>>, vector<1x8x128xbf16>
    %67 = vector.shape_cast %66 : vector<1x8x128xbf16> to vector<8x128xbf16>
    %68 = vector.shape_cast %64 : vector<8x128xbf16> to vector<1x8x128xbf16>
    tpu.vector_store %arg14[%65, %c0_29, %c0_30], %68 {strides = array<i32>} : memref<4x8x128xbf16, #tpu.memory_space<vmem>>, vector<1x8x128xbf16>,
    %c2_i32 = arith.constant 2 : i32
    %c0_31 = arith.constant 0 : index
    %c0_32 = arith.constant 0 : index
    %69 = vector.load %arg6[%c0_31, %c0_32] : memref<128x512xbf16, #tpu.memory_space<vmem>>, vector<128x512xbf16>
    %cst_33 = arith.constant dense<0.000000e+00> : vector<8x512xf32>
    %70 = tpu.matmul %64, %69, %cst_33 {dimension_numbers = #tpu.dot_dimension_numbers<[1], [0], [0], [1], [0, 0, 1, 1], [], []>} : vector<8x128xbf16>, vector<128x512xbf16>, vector<8x512xf32> -> vector<8x512xf32>
    %71 = arith.index_cast %c2_i32 : i32 to index
    %c0_34 = arith.constant 0 : index
    %c0_35 = arith.constant 0 : index
    %72 = vector.load %arg13[%71, %c0_34, %c0_35] : memref<4x8x512xf32, #tpu.memory_space<vmem>>, vector<1x8x512xf32>
    %73 = vector.shape_cast %72 : vector<1x8x512xf32> to vector<8x512xf32>
    %74 = arith.addf %73, %70 : vector<8x512xf32>
    %75 = vector.extract_strided_slice %74 {offsets = [0, 0], sizes = [8, 384], strides = [1, 1]} : vector<8x512xf32> to vector<8x384xf32>
    %76 = arith.negf %75 : vector<8x384xf32>
    %77 = math.exp %76 : vector<8x384xf32>
    %cst_36 = arith.constant 1.000000e+00 : f32
    %78 = vector.broadcast %cst_36 : f32 to vector<8x384xf32>
    %79 = arith.addf %78, %77 : vector<8x384xf32>
    %80 = arith.divf %78, %79 : vector<8x384xf32>
    %81 = vector.extract_strided_slice %80 {offsets = [0, 0], sizes = [8, 128], strides = [1, 1]} : vector<8x384xf32> to vector<8x128xf32>
    %82 = vector.extract_strided_slice %80 {offsets = [0, 128], sizes = [8, 128], strides = [1, 1]} : vector<8x384xf32> to vector<8x128xf32>
    %83 = vector.extract_strided_slice %80 {offsets = [0, 256], sizes = [8, 128], strides = [1, 1]} : vector<8x384xf32> to vector<8x128xf32>
    %84 = vector.extract_strided_slice %74 {offsets = [0, 384], sizes = [8, 128], strides = [1, 1]} : vector<8x512xf32> to vector<8x128xf32>
    %85 = math.tanh %84 : vector<8x128xf32>
    %86 = arith.mulf %82, %61 : vector<8x128xf32>
    %87 = arith.mulf %81, %85 : vector<8x128xf32>
    %88 = arith.addf %86, %87 : vector<8x128xf32>
    %89 = math.tanh %88 : vector<8x128xf32>
    %90 = arith.mulf %83, %89 : vector<8x128xf32>
    %91 = arith.truncf %90 : vector<8x128xf32> to vector<8x128xbf16>
    %92 = arith.index_cast %c2_i32 : i32 to index
    %c0_37 = arith.constant 0 : index
    %c0_38 = arith.constant 0 : index
    %93 = vector.load %arg14[%92, %c0_37, %c0_38] : memref<4x8x128xbf16, #tpu.memory_space<vmem>>, vector<1x8x128xbf16>
    %94 = vector.shape_cast %93 : vector<1x8x128xbf16> to vector<8x128xbf16>
    %95 = vector.shape_cast %91 : vector<8x128xbf16> to vector<1x8x128xbf16>
    tpu.vector_store %arg14[%92, %c0_37, %c0_38], %95 {strides = array<i32>} : memref<4x8x128xbf16, #tpu.memory_space<vmem>>, vector<1x8x128xbf16>,
    %c3_i32 = arith.constant 3 : i32
    %c0_39 = arith.constant 0 : index
    %c0_40 = arith.constant 0 : index
    %96 = vector.load %arg6[%c0_39, %c0_40] : memref<128x512xbf16, #tpu.memory_space<vmem>>, vector<128x512xbf16>
    %cst_41 = arith.constant dense<0.000000e+00> : vector<8x512xf32>
    %97 = tpu.matmul %91, %96, %cst_41 {dimension_numbers = #tpu.dot_dimension_numbers<[1], [0], [0], [1], [0, 0, 1, 1], [], []>} : vector<8x128xbf16>, vector<128x512xbf16>, vector<8x512xf32> -> vector<8x512xf32>
    %98 = arith.index_cast %c3_i32 : i32 to index
    %c0_42 = arith.constant 0 : index
    %c0_43 = arith.constant 0 : index
    %99 = vector.load %arg13[%98, %c0_42, %c0_43] : memref<4x8x512xf32, #tpu.memory_space<vmem>>, vector<1x8x512xf32>
    %100 = vector.shape_cast %99 : vector<1x8x512xf32> to vector<8x512xf32>
    %101 = arith.addf %100, %97 : vector<8x512xf32>
    %102 = vector.extract_strided_slice %101 {offsets = [0, 0], sizes = [8, 384], strides = [1, 1]} : vector<8x512xf32> to vector<8x384xf32>
    %103 = arith.negf %102 : vector<8x384xf32>
    %104 = math.exp %103 : vector<8x384xf32>
    %cst_44 = arith.constant 1.000000e+00 : f32
    %105 = vector.broadcast %cst_44 : f32 to vector<8x384xf32>
    %106 = arith.addf %105, %104 : vector<8x384xf32>
    %107 = arith.divf %105, %106 : vector<8x384xf32>
    %108 = vector.extract_strided_slice %107 {offsets = [0, 0], sizes = [8, 128], strides = [1, 1]} : vector<8x384xf32> to vector<8x128xf32>
    %109 = vector.extract_strided_slice %107 {offsets = [0, 128], sizes = [8, 128], strides = [1, 1]} : vector<8x384xf32> to vector<8x128xf32>
    %110 = vector.extract_strided_slice %107 {offsets = [0, 256], sizes = [8, 128], strides = [1, 1]} : vector<8x384xf32> to vector<8x128xf32>
    %111 = vector.extract_strided_slice %101 {offsets = [0, 384], sizes = [8, 128], strides = [1, 1]} : vector<8x512xf32> to vector<8x128xf32>
    %112 = math.tanh %111 : vector<8x128xf32>
    %113 = arith.mulf %109, %88 : vector<8x128xf32>
    %114 = arith.mulf %108, %112 : vector<8x128xf32>
    %115 = arith.addf %113, %114 : vector<8x128xf32>
    %116 = math.tanh %115 : vector<8x128xf32>
    %117 = arith.mulf %110, %116 : vector<8x128xf32>
    %118 = arith.truncf %117 : vector<8x128xf32> to vector<8x128xbf16>
    %119 = arith.index_cast %c3_i32 : i32 to index
    %c0_45 = arith.constant 0 : index
    %c0_46 = arith.constant 0 : index
    %120 = vector.load %arg14[%119, %c0_45, %c0_46] : memref<4x8x128xbf16, #tpu.memory_space<vmem>>, vector<1x8x128xbf16>
    %121 = vector.shape_cast %120 : vector<1x8x128xbf16> to vector<8x128xbf16>
    %122 = vector.shape_cast %118 : vector<8x128xbf16> to vector<1x8x128xbf16>
    tpu.vector_store %arg14[%119, %c0_45, %c0_46], %122 {strides = array<i32>} : memref<4x8x128xbf16, #tpu.memory_space<vmem>>, vector<1x8x128xbf16>,
    %c4_i32 = arith.constant 4 : i32
    %123 = arith.extf %118 : vector<8x128xbf16> to vector<8x128xf32>
    %c0_47 = arith.constant 0 : index
    %c0_48 = arith.constant 0 : index
    %124 = vector.load %arg11[%c0_47, %c0_48] : memref<8x128xf32, #tpu.memory_space<vmem>>, vector<8x128xf32>
    tpu.vector_store %arg11[%c0_47, %c0_48], %123 {strides = array<i32>} : memref<8x128xf32, #tpu.memory_space<vmem>>, vector<8x128xf32>,
    %c0_49 = arith.constant 0 : index
    %c0_50 = arith.constant 0 : index
    %125 = vector.load %arg12[%c0_49, %c0_50] : memref<8x128xf32, #tpu.memory_space<vmem>>, vector<8x128xf32>
    tpu.vector_store %arg12[%c0_49, %c0_50], %115 {strides = array<i32>} : memref<8x128xf32, #tpu.memory_space<vmem>>, vector<8x128xf32>,
    %c0_51 = arith.constant 0 : index
    %c0_52 = arith.constant 0 : index
    %c0_53 = arith.constant 0 : index
    %126 = vector.load %arg14[%c0_51, %c0_52, %c0_53] : memref<4x8x128xbf16, #tpu.memory_space<vmem>>, vector<4x8x128xbf16>
    %127 = vector.shape_cast %126 : vector<4x8x128xbf16> to vector<32x128xbf16>
    %c0_54 = arith.constant 0 : index
    %c0_55 = arith.constant 0 : index
    %128 = vector.load %arg8[%c0_54, %c0_55] : memref<128x128xbf16, #tpu.memory_space<vmem>>, vector<128x128xbf16>
    %cst_56 = arith.constant dense<0.000000e+00> : vector<32x128xf32>
    %129 = tpu.matmul %127, %128, %cst_56 {dimension_numbers = #tpu.dot_dimension_numbers<[1], [0], [0], [1], [0, 0, 1, 1], [], []>} : vector<32x128xbf16>, vector<128x128xbf16>, vector<32x128xf32> -> vector<32x128xf32>
    %c0_57 = arith.constant 0 : index
    %c0_58 = arith.constant 0 : index
    %130 = vector.load %arg9[%c0_57, %c0_58] : memref<1x128xf32, #tpu.memory_space<vmem>>, vector<1x128xf32>
    %131 = vector.broadcast %130 : vector<1x128xf32> to vector<32x128xf32>
    %132 = arith.addf %129, %131 : vector<32x128xf32>
    %133 = arith.truncf %132 : vector<32x128xf32> to vector<32x128xbf16>
    %134 = vector.shape_cast %133 : vector<32x128xbf16> to vector<4x8x128xbf16>
    %c0_59 = arith.constant 0 : index
    %c0_60 = arith.constant 0 : index
    %c0_61 = arith.constant 0 : index
    %135 = vector.load %arg10[%c0_59, %c0_60, %c0_61] : memref<4x8x128xbf16, #tpu.memory_space<vmem>>, vector<4x8x128xbf16>
    tpu.vector_store %arg10[%c0_59, %c0_60, %c0_61], %134 {strides = array<i32>} : memref<4x8x128xbf16, #tpu.memory_space<vmem>>, vector<4x8x128xbf16>,
    return
  }
  func.func @transform_0(%arg0: i32, %arg1: i32) -> (i32, i32, i32) {
    %c0_i32 = arith.constant 0 : i32
    %c0_i32_0 = arith.constant 0 : i32
    return %arg1, %arg0, %c0_i32 : i32, i32, i32
  }
  func.func @transform_1(%arg0: i32, %arg1: i32) -> (i32, i32) {
    %c0_i32 = arith.constant 0 : i32
    %c0_i32_0 = arith.constant 0 : i32
    return %arg0, %c0_i32 : i32, i32
  }
  func.func @transform_2(%arg0: i32, %arg1: i32) -> (i32, i32) {
    %c0_i32 = arith.constant 0 : i32
    %c0_i32_0 = arith.constant 0 : i32
    return %arg0, %c0_i32 : i32, i32
  }
  func.func @transform_3(%arg0: i32, %arg1: i32) -> (i32, i32) {
    %c0_i32 = arith.constant 0 : i32
    %c0_i32_0 = arith.constant 0 : i32
    %c0_i32_1 = arith.constant 0 : i32
    return %c0_i32, %c0_i32_0 : i32, i32
  }
  func.func @transform_4(%arg0: i32, %arg1: i32) -> (i32, i32) {
    %c0_i32 = arith.constant 0 : i32
    %c0_i32_0 = arith.constant 0 : i32
    %c0_i32_1 = arith.constant 0 : i32
    return %c0_i32, %c0_i32_0 : i32, i32
  }
  func.func @transform_5(%arg0: i32, %arg1: i32) -> (i32, i32) {
    %c0_i32 = arith.constant 0 : i32
    %c0_i32_0 = arith.constant 0 : i32
    %c0_i32_1 = arith.constant 0 : i32
    return %c0_i32, %c0_i32_0 : i32, i32
  }
  func.func @transform_6(%arg0: i32, %arg1: i32) -> (i32, i32) {
    %c0_i32 = arith.constant 0 : i32
    %c0_i32_0 = arith.constant 0 : i32
    %c0_i32_1 = arith.constant 0 : i32
    return %c0_i32, %c0_i32_0 : i32, i32
  }
  func.func @transform_7(%arg0: i32, %arg1: i32) -> (i32, i32) {
    %c0_i32 = arith.constant 0 : i32
    %c0_i32_0 = arith.constant 0 : i32
    %c0_i32_1 = arith.constant 0 : i32
    return %c0_i32, %c0_i32_0 : i32, i32
  }
  func.func @transform_8(%arg0: i32, %arg1: i32) -> (i32, i32, i32) {
    %c0_i32 = arith.constant 0 : i32
    %c0_i32_0 = arith.constant 0 : i32
    return %arg1, %arg0, %c0_i32 : i32, i32, i32
  }
  func.func @transform_9(%arg0: i32, %arg1: i32) -> (i32, i32) {
    %c0_i32 = arith.constant 0 : i32
    %c0_i32_0 = arith.constant 0 : i32
    return %arg0, %c0_i32 : i32, i32
  }
  func.func @transform_10(%arg0: i32, %arg1: i32) -> (i32, i32) {
    %c0_i32 = arith.constant 0 : i32
    %c0_i32_0 = arith.constant 0 : i32
    return %arg0, %c0_i32 : i32, i32
  }
}

</mosaic_0001>

<bundles_post_ra>
// kernel: tpu_custom_call.1
= control target key start
LH: loop header
LB: loop body
LE: loop exit
PB: predicated region body
PF: predicated region fallthrough
CT: control target
= control target key end

     0   :  { %s4056_s0 = inlined_call_operand.hbm [shape: bf16[8,8,128], index: 0, kind: input, shape index: {}]   ;;  %s4057_s1 = inlined_call_operand.hbm [shape: f32[8,128], index: 1, kind: input, shape index: {}]   ;;  %s4058_s2 = inlined_call_operand.hbm [shape: f32[8,128], index: 2, kind: input, shape index: {}]   ;;  %s4059_s3 = inlined_call_operand.hbm [shape: bf16[128,512], index: 3, kind: input, shape index: {}]   ;;  %s4060_s4 = inlined_call_operand.hbm [shape: bf16[128,512], index: 4, kind: input, shape index: {}]   ;;  %s4061_s5 = inlined_call_operand.vmem [shape: f32[1,512], index: 5, kind: input, shape index: {}]   ;;  %s4062_s6 = inlined_call_operand.hbm [shape: bf16[128,128], index: 6, kind: input, shape index: {}]   ;;  %s4063_s7 = inlined_call_operand.vmem [shape: f32[1,128], index: 7, kind: input, shape index: {}]   ;;  %s4064_s8 = inlined_call_operand.hbm [shape: bf16[8,8,128], index: 8, kind: output, shape index: {0}]   ;;  %s4065_s9 = inlined_call_operand.hbm [shape: f32[8,128], index: 9, kind: output, shape index: {1}]   ;;  %s4066_s10 = inlined_call_operand.hbm [shape: f32[8,128], index: 10, kind: output, shape index: {2}]  }
   0x1   :  { %4081 = sst [smem:[#allocation32_spill]] %s4057_s1 }
   0x2   :  { %4082 = sst [smem:[#allocation33_spill]] %s4058_s2 }
   0x3   :  { %4083 = sst [smem:[#allocation34_spill]] %s4059_s3 }
   0x4   :  { %4084 = sst [smem:[#allocation35_spill]] %s4063_s7 }
   0x5   :  { %4085 = sst [smem:[#allocation36_spill]] %s4064_s8 }
   0x6   :  { %16 = vsyncpa [#allocation5], 0 }
   0x7   :  { %18 = vsyncpa [#allocation5 + $0x1], 0 }
   0x8   :  { %19 = vsyncpa [#allocation8], 0 }
   0x9   :  { %20 = vsyncpa [#allocation11], 0 }
   0xa   :  { %21 = vsyncpa [#allocation14], 0 }
   0xb   :  { %22 = vsyncpa [#allocation6], 0 }
   0xc   :  { %24 = vsyncpa [#allocation6 + $0x1], 0 }
   0xd   :  { %25 = vsyncpa [#allocation17], 0  ;;  %s3415_s13 = smov 0   ;;  %s3417_s14 = smov 0  }
   0xe   :  { %s3419_s15 = smov 0   ;;  %s3421_s16 = smov 0  }
   0xf   :  { %s3423_s17 = smov 0   ;;  %s3425_s18 = smov 0  }
  0x10 LB: > { %s4067_s19 = sadd.s32 4294967295, %s3342_s18   ;;  %p2452_p0 = scmp.ge.s32.totalorder %s3342_s18, 1  ;;  %s3342_s18 = sphi %s3425_s18, %s31_s18   ;;  %s3338_s17 = sphi %s3423_s17, %s4132_s17   ;;  %s3334_s16 = sphi %s3421_s16, %s4131_s16   ;;  %s3330_s15 = sphi %s3419_s15, %s4130_s15   ;;  %s3326_s14 = sphi %s3417_s14, %s4129_s14   ;;  %s3322_s13 = sphi %s3415_s13, %s4128_s13  }
  0x11   : > { %p3449_p1 = scmp.eq.s32.totalorder %s4067_s19, 0  ;;  %p313_p2 = scmp.lt.s32.totalorder %s3342_s18, 3 }
  0x12   : > { %s3344_s22 = smov [#allocation7]   ;;  %s3345_s24 = smov [#allocation10]  }
  0x13   : > { %s4086_s20 = scalar_select %p3449_p1, 1, 0 }
  0x14   : > { %p3454_p3 = pnand %p2452_p0, %p313_p2  ;;  %s328_s23 = sshll.u32 %s3344_s22, 4  ;;  %s329_s23 = int_to_ptr.vmem [resolvable:$true] %s328_s23 }
  0x15   : > { %s351_s25 = sshll.u32 %s3345_s24, 4  ;;  %s3346_s27 = smov [#allocation9]   ;;  %s3467_s25 = int_to_ptr.vmem [resolvable:$true] %s351_s25 }
  0x16   : > { %s4087_s21 = scalar_select %p3454_p3, 1, 0 }
  0x17   : > { %p2748_p5 = pneg %p3454_p3  ;;  %s3469_s28 = sshll.u32 %s3346_s27, 4  ;;  %s342_s28 = int_to_ptr.vmem [resolvable:$true] %s3469_s28 }
  0x18   : > { %s4089_s1 = sld [smem:[#allocation32_spill]] }
  0x19   : > { %p3463_p6 = pnand %p2748_p5, %p3449_p1 }
  0x1b   : > { %p3479_p8 = pneg %p3463_p6 }
  0x1e   : > { %s3022_s11 = scalar_lea.hbm %s4089_s1, 128 }
  0x1f   : > { %p3023_p7 = scmp.ne.s32.totalorder %s4089_s1, %s3022_s11  ;;  %p3029_p11 = scmp.lt.u32.totalorder %s3022_s11, %s4089_s1 }
  0x21   : > { %p3025_p9 = pnand %p3479_p8, %p3023_p7 }
  0x23   : > { %p3026_p10 = pneg %p3025_p9 }
  0x25   : > { %p3031_p12 = pnand %p3029_p11, %p3026_p10 }
  0x27   : > { %3034 = shalt.err (!%p3031_p12)
}
  0x28   : > { %s3035_s29 = scalar_lea.vmem %s329_s23, 128  ;;  %p3043_p5 = scmp.lt.s32.totalorder %s329_s23, %s329_s23 }
  0x29   : > { %p3036_p13 = scmp.ne.s32.totalorder %s329_s23, %s3035_s29  ;;  %p3044_p4 = scmp.lt.s32.totalorder %s3035_s29, %s3035_s29 }
  0x2b   : > { %p3038_p0 = pnand %p3036_p13, %p3479_p8  ;;  %p3045_p3 = por %p3044_p4, %p3043_p5 }
  0x2d   : > { %p3039_p2 = pneg %p3038_p0 }
  0x2f   : > { %p3046_p1 = pnand %p3045_p3, %p3039_p2 }
  0x31   : > { %3049 = shalt.err (!%p3046_p1)
}
  0x32   : > { %2751 = dma.hbm_to_vmem [thread:$0]  (!%p3463_p6), %s4089_s1, 128, %s329_s23, [#allocation8]  }
  0x33   : > { %s4091_s3 = sld [smem:[#allocation34_spill]] }
  0x39   : > { %s3050_s22 = scalar_lea.hbm %s4091_s3, 4096 }
  0x3a   : > { %p3051_p7 = scmp.ne.s32.totalorder %s4091_s3, %s3050_s22  ;;  %p3057_p1 = scmp.lt.u32.totalorder %s3050_s22, %s4091_s3 }
  0x3c   : > { %p3053_p9 = pnand %p3051_p7, %p3479_p8 }
  0x3e   : > { %p3054_p4 = pneg %p3053_p9 }
  0x40   : > { %p3059_p3 = pnand %p3057_p1, %p3054_p4 }
  0x42   : > { %3062 = shalt.err (!%p3059_p3)
}
  0x43   : > { %s3063_s23 = scalar_lea.vmem %s3467_s25, 4096  ;;  %p3071_p13 = scmp.lt.s32.totalorder %s3467_s25, %s3467_s25 }
  0x44   : > { %p3064_p10 = scmp.ne.s32.totalorder %s3467_s25, %s3063_s23  ;;  %p3072_p0 = scmp.lt.s32.totalorder %s3063_s23, %s3063_s23 }
  0x46   : > { %p3066_p11 = pnand %p3064_p10, %p3479_p8  ;;  %p3073_p2 = por %p3072_p0, %p3071_p13 }
  0x48   : > { %p3067_p12 = pneg %p3066_p11 }
  0x4a   : > { %p3074_p5 = pnand %p3073_p2, %p3067_p12 }
  0x4c   : > { %3077 = shalt.err (!%p3074_p5)
}
  0x4d   : > { %s4072_s8 = smov 256   ;;  %s4073_s7 = smov 16  }
  0x4e   : > { %2757 = dma.hbm_to_vmem [thread:$0]  (!%p3463_p6), %s4091_s3, 4096, %s3467_s25, [#allocation11], %s4072_s8, %s4072_s8, %s4073_s7  }
  0x4f   : > { %s4092_s2 = sld [smem:[#allocation33_spill]] }
  0x55   : > { %s3078_s22 = scalar_lea.hbm %s4092_s2, 128 }
  0x56   : > { %p3079_p7 = scmp.ne.s32.totalorder %s4092_s2, %s3078_s22  ;;  %p3085_p1 = scmp.lt.u32.totalorder %s3078_s22, %s4092_s2 }
  0x58   : > { %p3081_p9 = pnand %p3079_p7, %p3479_p8 }
  0x5a   : > { %p3082_p4 = pneg %p3081_p9 }
  0x5c   : > { %p3087_p3 = pnand %p3085_p1, %p3082_p4 }
  0x5e   : > { %3090 = shalt.err (!%p3087_p3)
}
  0x5f   : > { %s3091_s30 = scalar_lea.vmem %s342_s28, 128  ;;  %p3099_p13 = scmp.lt.s32.totalorder %s342_s28, %s342_s28 }
  0x60   : > { %p3092_p10 = scmp.ne.s32.totalorder %s342_s28, %s3091_s30  ;;  %p3100_p0 = scmp.lt.s32.totalorder %s3091_s30, %s3091_s30 }
  0x62   : > { %p3094_p11 = pnand %p3092_p10, %p3479_p8  ;;  %p3101_p2 = por %p3100_p0, %p3099_p13 }
  0x64   : > { %p3095_p12 = pneg %p3094_p11 }
  0x66   : > { %p3102_p5 = pnand %p3101_p2, %p3095_p12 }
  0x68   : > { %3105 = shalt.err (!%p3102_p5)
}
  0x69   : > { %2754 = dma.hbm_to_vmem [thread:$0]  (!%p3463_p6), %s4092_s2, 128, %s342_s28, [#allocation8]  }
  0x6a   : > { %s3349_s1 = smov [#allocation12]   ;;  %s3350_s11 = smov [#allocation13]  }
  0x6b   : > { %s364_s19 = sshll.u32 %s3349_s1, 4  ;;  %s380_s22 = sshll.u32 %s3350_s11, 4  ;;  %s365_s19 = int_to_ptr.vmem [resolvable:$true] %s364_s19  ;;  %s381_s22 = int_to_ptr.vmem [resolvable:$true] %s380_s22 }
  0x6c   : > { %s3106_s23 = scalar_lea.hbm %s4060_s4, 4096 }
  0x6d   : > { %p3107_p7 = scmp.ne.s32.totalorder %s4060_s4, %s3106_s23  ;;  %p3113_p1 = scmp.lt.u32.totalorder %s3106_s23, %s4060_s4 }
  0x6f   : > { %p3109_p9 = pnand %p3107_p7, %p3479_p8 }
  0x71   : > { %p3110_p4 = pneg %p3109_p9 }
  0x73   : > { %p3115_p3 = pnand %p3113_p1, %p3110_p4 }
  0x75   : > { %3118 = shalt.err (!%p3115_p3)
}
  0x76   : > { %s3119_s28 = scalar_lea.vmem %s365_s19, 4096  ;;  %p3127_p13 = scmp.lt.s32.totalorder %s365_s19, %s365_s19 }
  0x77   : > { %p3120_p10 = scmp.ne.s32.totalorder %s365_s19, %s3119_s28  ;;  %p3128_p0 = scmp.lt.s32.totalorder %s3119_s28, %s3119_s28 }
  0x79   : > { %p3122_p11 = pnand %p3120_p10, %p3479_p8  ;;  %p3129_p2 = por %p3128_p0, %p3127_p13 }
  0x7b   : > { %p3123_p12 = pneg %p3122_p11 }
  0x7d   : > { %p3130_p5 = pnand %p3129_p2, %p3123_p12 }
  0x7f   : > { %3133 = shalt.err (!%p3130_p5)
}
  0x80   : > { %s4093_s8 = smov 16   ;;  %s4094_s12 = smov 256  }
  0x81   : > { %2760 = dma.hbm_to_vmem [thread:$0]  (!%p3463_p6), %s4060_s4, 4096, %s365_s19, [#allocation11], %s4094_s12, %s4094_s12, %s4093_s8  }
  0x82   : > { %s3134_s29 = scalar_lea.hbm %s4062_s6, 1024 }
  0x83   : > { %p3135_p7 = scmp.ne.s32.totalorder %s4062_s6, %s3134_s29  ;;  %p3141_p1 = scmp.lt.u32.totalorder %s3134_s29, %s4062_s6 }
  0x85   : > { %p3137_p9 = pnand %p3135_p7, %p3479_p8 }
  0x87   : > { %p3138_p4 = pneg %p3137_p9 }
  0x89   : > { %p3143_p3 = pnand %p3141_p1, %p3138_p4 }
  0x8b   : > { %3146 = shalt.err (!%p3143_p3)
}
  0x8c   : > { %s3147_s7 = scalar_lea.vmem %s381_s22, 1024  ;;  %p3155_p13 = scmp.lt.s32.totalorder %s381_s22, %s381_s22 }
  0x8d   : > { %p3148_p10 = scmp.ne.s32.totalorder %s381_s22, %s3147_s7  ;;  %p3156_p0 = scmp.lt.s32.totalorder %s3147_s7, %s3147_s7 }
  0x8f   : > { %p3150_p11 = pnand %p3148_p10, %p3479_p8  ;;  %p3157_p2 = por %p3156_p0, %p3155_p13 }
  0x91   : > { %p3151_p12 = pneg %p3150_p11 }
  0x93   : > { %p3158_p5 = pnand %p3157_p2, %p3151_p12 }
  0x95   : > { %3161 = shalt.err (!%p3158_p5)
}
  0x96   : > { %s4074_s19 = smov 64   ;;  %s4075_s24 = smov 4  }
  0x97   : > { %2763 = dma.hbm_to_vmem [thread:$0]  (!%p3463_p6), %s4062_s6, 1024, %s381_s22, [#allocation14], %s4074_s19, %s4074_s19, %s4075_s24  }
  0x98   : > { %s2451_s1 = sadd.s32 4294967294, %s3342_s18   ;;  %s40_s11 = sadd.s32 1, %s3338_s17 }
  0x99   : > { %s52_s27 = sadd.s32 1, %s3330_s15  ;;  %p41_p8 = scmp.ge.s32.totalorder %s40_s11, 2 }
  0x9a   : > { %p59_p7 = scmp.ne.s32.totalorder %s3330_s15, %s3326_s14  ;;  %p60_p9 = scmp.eq.s32.totalorder %s3342_s18, 0 }
  0x9b   : > { %p65_p4 = scmp.ne.s32.totalorder %s3326_s14, %s3322_s13  ;;  %s4134_s11 = smov (%p41_p8, %s40_s11), 0 }
  0x9c   : > { %p3592_p1 = por %p60_p9, %p59_p7  ;;  %p4096_p3 = scmp.ne.s32.totalorder %s4086_s20, 0 }
  0x9d   : > { %s47_s29 = ssub.s32 %s3338_s17, %s4134_s11  ;;  %s4098_s23 = sadd.s32 4294967295, %s3342_s18  }
  0x9e   : > { %p3598_p6 = por %p4096_p3, %p65_p4  ;;  %p3606_p10 = scmp.eq.s32.totalorder %s4098_s23, 1 }
  0x9f   : > { %p50_p11 = scmp.eq.s32.totalorder %s47_s29, 0  ;;  %p254_p12 = scmp.eq.s32.totalorder %s2451_s1, 1 }
  0xa0   : > { %s4099_s30 = scalar_select %p3606_p10, 1, 0 }
  0xa1   : > { %p3612_p13 = por %p3606_p10, %p59_p7  ;;  %p2777_p0 = scmp.lt.s32.totalorder %s3342_s18, 2 }
  0xa2   : > { %s3618_s28 = scalar_select %p50_p11, %s3330_s15, %s52_s27  }
  0xa3   : > { %s4100_s25 = scalar_select %p3612_p13, 1, 0 }
  0xa4   : > { %p3620_p2 = por %p254_p12, %p65_p4  ;;  %s397_s8 = sand.u32 1, %s3330_s15  }
  0xa5   : > { %s2459_s12 = sshll.u32 %s397_s8, 4  ;;  %s2669_s23 = sshll.u32 %s3338_s17, 8 }
  0xa6   : > { %s4101_s7 = scalar_select %p3620_p2, 1, 0 }
  0xa7   : > { %s3629_s29 = scalar_lea.hbm %s4056_s0, %s2669_s23  ;;  %s401_s1 = scalar_lea.vmem [#allocation4], %s2459_s12 }
  0xa8   : > { %s409_s2 = sshll.u32 %s401_s1, 4  ;;  %p3635_p5 = pnand %p2777_p0, %p3592_p1  ;;  %s3631_s2 = int_to_ptr.vmem [resolvable:$true] %s409_s2 }
  0xa9   : > { %s3639_s3 = scalar_lea.sflag [#allocation5], %s397_s8  ;;  %s3162_s19 = scalar_lea.hbm %s3629_s29, 256 }
  0xaa   : > { %p3163_p8 = scmp.ne.s32.totalorder %s3629_s29, %s3162_s19  ;;  %p3164_p7 = pneg %p3635_p5 }
  0xab   : > { %s3167_s26 = scalar_lea.hbm %s4056_s0, 512  ;;  %p3168_p1 = scmp.lt.u32.totalorder %s3629_s29, %s4056_s0 }
  0xac   : > { %p3165_p9 = pnand %p3164_p7, %p3163_p8  ;;  %p3169_p3 = scmp.lt.u32.totalorder %s3167_s26, %s3162_s19 }
  0xad   : > { %p3171_p12 = scmp.lt.u32.totalorder %s3162_s19, %s3629_s29 }
  0xae   : > { %p3166_p4 = pneg %p3165_p9  ;;  %p3170_p11 = por %p3169_p3, %p3168_p1 }
  0xb0   : > { %p3172_p0 = por %p3171_p12, %p3170_p11 }
  0xb2   : > { %p3173_p2 = pnand %p3172_p0, %p3166_p4 }
  0xb4   : > { %3176 = shalt.err (!%p3173_p2)
}
  0xb5   : > { %s3177_s8 = scalar_lea.vmem %s3631_s2, 256  ;;  %s3353_s24 = smov [#allocation4]  }
  0xb6   : > { %p3178_p8 = scmp.ne.s32.totalorder %s3631_s2, %s3177_s8  ;;  %s3182_s12 = sshll.u32 %s3353_s24, 4  ;;  %s3183_s12 = int_to_ptr.vmem [resolvable:$false] %s3182_s12 }
  0xb7   : > { %s3184_s23 = scalar_lea.vmem %s3183_s12, 512  ;;  %p3185_p10 = scmp.lt.s32.totalorder %s3631_s2, %s3183_s12 }
  0xb8   : > { %p3180_p9 = pnand %p3178_p8, %p3164_p7  ;;  %p3186_p1 = scmp.lt.s32.totalorder %s3184_s23, %s3177_s8 }
  0xba   : > { %p3181_p13 = pneg %p3180_p9  ;;  %p3187_p3 = por %p3186_p1, %p3185_p10 }
  0xbc   : > { %p3188_p11 = pnand %p3187_p3, %p3181_p13 }
  0xbe   : > { %3191 = shalt.err (!%p3188_p11)
}
  0xbf   : > { %s4103_s19 = smov 4   ;;  %s4104_s26 = smov 64  }
  0xc0   : > { %2767 = dma.hbm_to_vmem [thread:$0]  (!%p3635_p5), %s3629_s29, 256, %s3631_s2, %s3639_s3, %s4104_s26, %s4104_s26, %s4103_s19  }
  0xc1   : > { %p4105_p2 = scmp.ne.s32.totalorder %s4087_s21, 0 }
  0xc3   : > { %421 = sbr.rel (%p4105_p2) target bundleno = 1572 (0x624), region = 52 }
  0xca   : > { %s3673_s1 = sand.u32 1, %s3326_s14  }
  0xcb   : > { %s2463_s8 = sshll.u32 %s3673_s1, 4  ;;  %s424_s24 = scalar_lea.sflag [#allocation5], %s3673_s1 }
  0xcc   : > { %s3677_s12 = scalar_lea.vmem [#allocation4], %s2463_s8 }
  0xcd   : > { %3297 = dma.done.wait (%p3598_p6), %s424_s24, 256  }
  0xce   : > { %3299 = vsyncadd (%p3598_p6), %s424_s24, 4294967040  ;;  %p4106_p10 = scmp.ne.s32.totalorder %s4086_s20, 0 }
  0xd0   : > { %3301 = dma.done.wait (%p4106_p10), [#allocation8], 256  }
  0xd1   : > { %3303 = vsyncadd (%p4106_p10), [#allocation8], 4294967040 }
  0xd2   : > { %3305 = dma.done.wait (%p4106_p10), [#allocation11], 8192  }
  0xd3   : > { %3307 = vsyncadd (%p4106_p10), [#allocation11], 4294959104 }
  0xd4   : > { %3309 = dma.done.wait (%p4106_p10), [#allocation14], 1024  }
  0xd5   : > { %3311 = vsyncadd (%p4106_p10), [#allocation14], 4294966272  ;;  %s3695_s2 = scalar_lea.vmem [#allocation15], %s2463_s8  ;;  %p2470_p6 = scmp.ne.s32.totalorder %s3334_s16, 0 }
  0xd6   : > { %v491_v0 = vld [vmem:[#allocation7] sm:$0xff] (!%p2470_p6)  ;;  %v493_v1 = vld [vmem:[#allocation9] sm:$0xff] (!%p2470_p6) }
  0xd7   : > { %490 = sbr.rel (%p2470_p6) target bundleno = 222 (0xde), region = 80  ;;  %492 = vst [vmem:[#allocation16] sm:$0xff] (!%p2470_p6), %v491_v0  ;;  %494 = vst [vmem:[#allocation18] sm:$0xff] (!%p2470_p6), %v493_v1 }
  0xde PF: > { %v2850_v2 = vld [vmem:[#allocation10 + $0x4] ss:$16 sps:$4 sm:$0xff]   ;;  %v2852_v3 = vld [vmem:[#allocation10 + $0xc] ss:$16 sps:$4 sm:$0xff]   ;;  %v4079_v4 = vmov 0   ;;  %s3355_s21 = smov [#allocation16]  }
  0xdf   : > { %757 = vmatprep.mubr.bf16.mxu0 %v4079_v4  ;;  %810 = vmatprep.mubr.bf16.mxu1 %v4079_v4  ;;  %v2854_v5 = vld [vmem:[#allocation10] ss:$16 sps:$4 sm:$0xff]   ;;  %v2855_v6 = vld [vmem:[#allocation10 + $0x8] ss:$16 sps:$4 sm:$0xff]   ;;  %v2856_v7 = vld [vmem:[#allocation10 + $0x24] ss:$16 sps:$4 sm:$0xff]  }
  0xe0   : > { %725 = vmatprep.subr.bf16.mxu0 %v2850_v2  ;;  %778 = vmatprep.subr.bf16.mxu1 %v2852_v3  ;;  %v2858_v8 = vld [vmem:[#allocation10 + $0x2c] ss:$16 sps:$4 sm:$0xff]   ;;  %v2860_v9 = vld [vmem:[#allocation10 + $0x20] ss:$16 sps:$4 sm:$0xff]   ;;  %v2861_v10 = vld [vmem:[#allocation10 + $0x28] ss:$16 sps:$4 sm:$0xff]  }
  0xe1   : > { %726 = vmatpush1.bf16.msra.mxu0 %v2854_v5  ;;  %779 = vmatpush1.bf16.msra.mxu1 %v2855_v6  ;;  %v2862_v11 = vld [vmem:[#allocation10 + $0x44] ss:$16 sps:$4 sm:$0xff]   ;;  %v2864_v12 = vld [vmem:[#allocation10 + $0x4c] ss:$16 sps:$4 sm:$0xff]   ;;  %v2866_v13 = vld [vmem:[#allocation10 + $0x40] ss:$16 sps:$4 sm:$0xff]  }
  0xe2   : > { %727 = vmatprep.subr.bf16.mxu0 %v2856_v7  ;;  %780 = vmatprep.subr.bf16.mxu1 %v2858_v8  ;;  %v2867_v14 = vld [vmem:[#allocation10 + $0x48] ss:$16 sps:$4 sm:$0xff]   ;;  %v2868_v15 = vld [vmem:[#allocation10 + $0x64] ss:$16 sps:$4 sm:$0xff]   ;;  %v2870_v16 = vld [vmem:[#allocation10 + $0x6c] ss:$16 sps:$4 sm:$0xff]   ;;  %v533_v8 = vlaneseq }
  0xe3   : > { %v2872_v17 = vld [vmem:[#allocation10 + $0x60] ss:$16 sps:$4 sm:$0xff]   ;;  %v2873_v18 = vld [vmem:[#allocation10 + $0x68] ss:$16 sps:$4 sm:$0xff]   ;;  %v2874_v19 = vld [vmem:[#allocation10 + $0x84] ss:$16 sps:$4 sm:$0xff]  }
  0xe4   : > { %v2876_v20 = vld [vmem:[#allocation10 + $0x8c] ss:$16 sps:$4 sm:$0xff]   ;;  %v2878_v21 = vld [vmem:[#allocation10 + $0x80] ss:$16 sps:$4 sm:$0xff]   ;;  %v2879_v22 = vld [vmem:[#allocation10 + $0x88] ss:$16 sps:$4 sm:$0xff]  }
  0xe5   : > { %728 = vmatpush1.bf16.msra.mxu0 %v2860_v9  ;;  %781 = vmatpush1.bf16.msra.mxu1 %v2861_v10  ;;  %v2880_v23 = vld [vmem:[#allocation10 + $0xa4] ss:$16 sps:$4 sm:$0xff]   ;;  %v2882_v24 = vld [vmem:[#allocation10 + $0xac] ss:$16 sps:$4 sm:$0xff]   ;;  %v2884_v25 = vld [vmem:[#allocation10 + $0xa0] ss:$16 sps:$4 sm:$0xff]  }
  0xe6   : > { %729 = vmatprep.subr.bf16.mxu0 %v2862_v11  ;;  %782 = vmatprep.subr.bf16.mxu1 %v2864_v12  ;;  %v2885_v26 = vld [vmem:[#allocation10 + $0xa8] ss:$16 sps:$4 sm:$0xff]   ;;  %v2886_v27 = vld [vmem:[#allocation10 + $0xc4] ss:$16 sps:$4 sm:$0xff]   ;;  %v2888_v28 = vld [vmem:[#allocation10 + $0xcc] ss:$16 sps:$4 sm:$0xff]  }
  0xe7   : > { %v2890_v29 = vld [vmem:[#allocation10 + $0xc0] ss:$16 sps:$4 sm:$0xff]   ;;  %v2891_v30 = vld [vmem:[#allocation10 + $0xc8] ss:$16 sps:$4 sm:$0xff]   ;;  %v2892_v31 = vld [vmem:[#allocation10 + $0xe4] ss:$16 sps:$4 sm:$0xff]  }
  0xe8   : > { %v2894_v32 = vld [vmem:[#allocation10 + $0xec] ss:$16 sps:$4 sm:$0xff]   ;;  %v2896_v33 = vld [vmem:[#allocation10 + $0xe0] ss:$16 sps:$4 sm:$0xff]   ;;  %v2897_v34 = vld [vmem:[#allocation10 + $0xe8] ss:$16 sps:$4 sm:$0xff]  }
  0xe9   : > { %730 = vmatpush1.bf16.msra.mxu0 %v2866_v13  ;;  %783 = vmatpush1.bf16.msra.mxu1 %v2867_v14  ;;  %v3700_v35 = vld [vmem:[#allocation12 + $0x4] ss:$16 sps:$4 sm:$0xff]   ;;  %v3702_v36 = vld [vmem:[#allocation12 + $0xc] ss:$16 sps:$4 sm:$0xff]   ;;  %v3705_v38 = vld [vmem:[#allocation12] ss:$16 sps:$4 sm:$0xff]  }
  0xea   : > { %731 = vmatprep.subr.bf16.mxu0 %v2868_v15  ;;  %784 = vmatprep.subr.bf16.mxu1 %v2870_v16  ;;  %v2898_v37 = vld [vmem:[%s3677_s12] sm:$0xff]   ;;  %v3707_v39 = vld [vmem:[#allocation12 + $0x8] ss:$16 sps:$4 sm:$0xff]   ;;  %v3713_v41 = vld [vmem:[#allocation12 + $0x2c] ss:$16 sps:$4 sm:$0xff]   ;;  %v534_v9 = vshrl.u32 %v533_v8, 7 }
  0xeb   : > { %v3709_v40 = vld [vmem:[#allocation12 + $0x24] ss:$16 sps:$4 sm:$0xff]   ;;  %v3715_v42 = vld [vmem:[#allocation12 + $0x20] ss:$16 sps:$4 sm:$0xff]   ;;  %v3719_v43 = vld [vmem:[#allocation12 + $0x28] ss:$16 sps:$4 sm:$0xff]  }
  0xec   : > { %v3721_v44 = vld [vmem:[#allocation12 + $0x44] ss:$16 sps:$4 sm:$0xff]   ;;  %v3725_v45 = vld [vmem:[#allocation12 + $0x4c] ss:$16 sps:$4 sm:$0xff]   ;;  %v3732_v47 = vld [vmem:[#allocation12 + $0x40] ss:$16 sps:$4 sm:$0xff]  }
  0xed   : > { %732 = vmatpush1.bf16.msra.mxu0 %v2872_v17  ;;  %785 = vmatpush1.bf16.msra.mxu1 %v2873_v18  ;;  %v2935_v46 = vld [vmem:[%s3677_s12 + $0x8] sm:$0xff]   ;;  %v3738_v49 = vld [vmem:[#allocation12 + $0x64] ss:$16 sps:$4 sm:$0xff]   ;;  %v3744_v51 = vld [vmem:[#allocation12 + $0x60] ss:$16 sps:$4 sm:$0xff]   ;;  %v535_v10 = vsub.s32 0, %v534_v9 }
  0xee   : > { %733 = vmatprep.subr.bf16.mxu0 %v2874_v19  ;;  %786 = vmatprep.subr.bf16.mxu1 %v2876_v20  ;;  %v3734_v48 = vld [vmem:[#allocation12 + $0x48] ss:$16 sps:$4 sm:$0xff]   ;;  %v3740_v50 = vld [vmem:[#allocation12 + $0x6c] ss:$16 sps:$4 sm:$0xff]   ;;  %v3748_v53 = vld [vmem:[#allocation12 + $0x84] ss:$16 sps:$4 sm:$0xff]  }
  0xef   : > { %v3746_v52 = vld [vmem:[#allocation12 + $0x68] ss:$16 sps:$4 sm:$0xff]   ;;  %v3752_v54 = vld [vmem:[#allocation12 + $0x8c] ss:$16 sps:$4 sm:$0xff]   ;;  %v3754_v55 = vld [vmem:[#allocation12 + $0x80] ss:$16 sps:$4 sm:$0xff]  }
  0xf0   : > { %v3756_v56 = vld [vmem:[#allocation12 + $0x88] ss:$16 sps:$4 sm:$0xff]   ;;  %v3760_v57 = vld [vmem:[#allocation12 + $0xa4] ss:$16 sps:$4 sm:$0xff]   ;;  %v3762_v58 = vld [vmem:[#allocation12 + $0xac] ss:$16 sps:$4 sm:$0xff]  }
  0xf1   : > { %734 = vmatpush1.bf16.msra.mxu0 %v2878_v21  ;;  %787 = vmatpush1.bf16.msra.mxu1 %v2879_v22  ;;  %v3770_v59 = vld [vmem:[#allocation12 + $0xa0] ss:$16 sps:$4 sm:$0xff]   ;;  %v3772_v60 = vld [vmem:[#allocation12 + $0xa8] ss:$16 sps:$4 sm:$0xff]   ;;  %v3776_v61 = vld [vmem:[#allocation12 + $0xc4] ss:$16 sps:$4 sm:$0xff]  }
  0xf2   : > { %735 = vmatprep.subr.bf16.mxu0 %v2880_v23  ;;  %788 = vmatprep.subr.bf16.mxu1 %v2882_v24  ;;  %v3778_v62 = vld [vmem:[#allocation12 + $0xcc] ss:$16 sps:$4 sm:$0xff]   ;;  %v3782_v63 = vld [vmem:[#allocation12 + $0xc0] ss:$16 sps:$4 sm:$0xff]   ;;  %v3784_v0 = vld [vmem:[#allocation12 + $0xc8] ss:$16 sps:$4 sm:$0xff]  }
  0xf3   : > { %v3788_v1 = vld [vmem:[#allocation12 + $0xe4] ss:$16 sps:$4 sm:$0xff]   ;;  %v3790_v2 = vld [vmem:[#allocation12 + $0xec] ss:$16 sps:$4 sm:$0xff]   ;;  %v3794_v3 = vld [vmem:[#allocation12 + $0xe0] ss:$16 sps:$4 sm:$0xff]  }
  0xf4   : > { %v3796_v5 = vld [vmem:[#allocation12 + $0xe8] ss:$16 sps:$4 sm:$0xff]   ;;  %v847_v6 = vld [vmem:[#allocation16] sm:$0xff]  ;;  %v543_v11 = vsub.s32 2, %v534_v9  ;;  %v547_v13 = vsub.s32 3, %v534_v9  ;;  %v539_v14 = vsub.s32 1, %v534_v9 }
  0xf5   : > { %736 = vmatpush1.bf16.msra.mxu0 %v2884_v25  ;;  %789 = vmatpush1.bf16.msra.mxu1 %v2885_v26  ;;  %v848_v7 = vpack.c.bf16 %v847_v6, %v847_v6  ;;  %v531_v12 = vld [vmem:[%s4061_s5] sm:$0xf]  ;;  %s2278_s22 = sshll.u32 %s3355_s21, 4  ;;  %p4122_p5 = scmp.ne.s32.totalorder %s4099_s30, 0  ;;  %s2279_s22 = int_to_ptr.vmem [resolvable:$true] %s2278_s22 }
  0xf6   : > { %737 = vmatprep.subr.bf16.mxu0 %v2886_v27  ;;  %790 = vmatprep.subr.bf16.mxu1 %v2888_v28  ;;  %v536_v15 = vrot.slane %v531_v12, %v535_v10  ;;  %v544_v16 = vrot.slane %v531_v12, %v543_v11  ;;  %v548_v19 = vrot.slane %v531_v12, %v547_v13  ;;  %s3192_s29 = scalar_lea.vmem %s2279_s22, 128  ;;  %p3199_p12 = scmp.lt.s32.totalorder %s2279_s22, %s2279_s22 }
  0xf7   : > { %v540_v22 = vrot.slane %v531_v12, %v539_v14  ;;  %p3193_p13 = scmp.ne.s32.totalorder %s2279_s22, %s3192_s29  ;;  %p3200_p0 = scmp.lt.s32.totalorder %s3192_s29, %s3192_s29 }
  0xf9   : > { %738 = vmatpush1.bf16.msra.mxu0 %v2890_v29  ;;  %791 = vmatpush1.bf16.msra.mxu1 %v2891_v30  ;;  %p3194_p7 = pnand %p3193_p13, %p4122_p5  ;;  %p3201_p8 = por %p3200_p0, %p3199_p12 }
  0xfa   : > { %739 = vmatprep.subr.bf16.mxu0 %v2892_v31  ;;  %792 = vmatprep.subr.bf16.mxu1 %v2894_v32 }
  0xfb   : > { %p3195_p4 = pneg %p3194_p7 }
  0xfd   : > { %740 = vmatpush1.bf16.msra.mxu0 %v2896_v33  ;;  %793 = vmatpush1.bf16.msra.mxu1 %v2897_v34  ;;  %p3202_p9 = pnand %p3201_p8, %p3195_p4 }
  0xfe   : > { %1042 = vmatprep.subr.bf16.mxu0 %v3700_v35  ;;  %1083 = vmatprep.subr.bf16.mxu1 %v3702_v36 }
 0x100   : > { %758 = vmatmul.mubr.bf16.vlgmr.msra.gmra.mrb[0].mxu0 %v2898_v37  ;;  %811 = vmatmul.mubr.bf16.vlgmr.msra.gmra.mrb[0].mxu1 %v2898_v37 }
 0x101   : > { %1043 = vmatpush1.bf16.msra.mxu0 %v3705_v38  ;;  %1084 = vmatpush1.bf16.msra.mxu1 %v3707_v39 }
 0x102   : > { %1044 = vmatprep.subr.bf16.mxu0 %v3709_v40  ;;  %1085 = vmatprep.subr.bf16.mxu1 %v3713_v41 }
 0x103   : > { %767 = vmatprep.mubr.bf16.mxu0 %v4079_v4  ;;  %820 = vmatprep.mubr.bf16.mxu1 %v4079_v4 }
 0x105   : > { %1045 = vmatpush1.bf16.msra.mxu0 %v3715_v42  ;;  %1086 = vmatpush1.bf16.msra.mxu1 %v3719_v43 }
 0x106   : > { %1046 = vmatprep.subr.bf16.mxu0 %v3721_v44  ;;  %1087 = vmatprep.subr.bf16.mxu1 %v3725_v45 }
 0x108   : > { %768 = vmatmul.mubr.bf16.gmra.mrb[4].mxu0 %v2935_v46  ;;  %821 = vmatmul.mubr.bf16.gmra.mrb[4].mxu1 %v2935_v46 }
 0x109   : > { %1047 = vmatpush1.bf16.msra.mxu0 %v3732_v47  ;;  %1088 = vmatpush1.bf16.msra.mxu1 %v3734_v48 }
 0x10a   : > { %1048 = vmatprep.subr.bf16.mxu0 %v3738_v49  ;;  %1089 = vmatprep.subr.bf16.mxu1 %v3740_v50 }
 0x10b   : > { %1074 = vmatprep.mubr.bf16.mxu0 %v4079_v4  ;;  %1115 = vmatprep.mubr.bf16.mxu1 %v4079_v4 }
 0x10d   : > { %1049 = vmatpush1.bf16.msra.mxu0 %v3744_v51  ;;  %1090 = vmatpush1.bf16.msra.mxu1 %v3746_v52 }
 0x10e   : > { %1050 = vmatprep.subr.bf16.mxu0 %v3748_v53  ;;  %1091 = vmatprep.subr.bf16.mxu1 %v3752_v54 }
 0x111   : > { %1051 = vmatpush1.bf16.msra.mxu0 %v3754_v55  ;;  %1092 = vmatpush1.bf16.msra.mxu1 %v3756_v56 }
 0x112   : > { %1052 = vmatprep.subr.bf16.mxu0 %v3760_v57  ;;  %1093 = vmatprep.subr.bf16.mxu1 %v3762_v58 }
 0x115   : > { %1053 = vmatpush1.bf16.msra.mxu0 %v3770_v59  ;;  %1094 = vmatpush1.bf16.msra.mxu1 %v3772_v60 }
 0x116   : > { %1054 = vmatprep.subr.bf16.mxu0 %v3776_v61  ;;  %1095 = vmatprep.subr.bf16.mxu1 %v3778_v62 }
 0x119   : > { %1055 = vmatpush1.bf16.msra.mxu0 %v3782_v63  ;;  %1096 = vmatpush1.bf16.msra.mxu1 %v3784_v0 }
 0x11a   : > { %1056 = vmatprep.subr.bf16.mxu0 %v3788_v1  ;;  %1097 = vmatprep.subr.bf16.mxu1 %v3790_v2 }
 0x11d   : > { %1057 = vmatpush1.bf16.msra.mxu0 %v3794_v3  ;;  %1098 = vmatpush1.bf16.msra.mxu1 %v3796_v5 }
 0x11e   : > { %1350 = vmatprep.subr.bf16.mxu0 %v3700_v35  ;;  %1391 = vmatprep.subr.bf16.mxu1 %v3702_v36 }
 0x120   : > { %1075 = vmatmul.mubr.bf16.vlgmr.msra.gmra.mrb[8].mxu0 %v848_v7  ;;  %1116 = vmatmul.mubr.bf16.vlgmr.msra.gmra.mrb[8].mxu1 %v848_v7 }
 0x121   : > { %1351 = vmatpush1.bf16.msra.mxu0 %v3705_v38  ;;  %1392 = vmatpush1.bf16.msra.mxu1 %v3707_v39 }
 0x122   : > { %1352 = vmatprep.subr.bf16.mxu0 %v3709_v40  ;;  %1393 = vmatprep.subr.bf16.mxu1 %v3713_v41 }
 0x123   : > { %1382 = vmatprep.mubr.bf16.mxu0 %v4079_v4  ;;  %1423 = vmatprep.mubr.bf16.mxu1 %v4079_v4 }
 0x125   : > { %1353 = vmatpush1.bf16.msra.mxu0 %v3715_v42  ;;  %1394 = vmatpush1.bf16.msra.mxu1 %v3719_v43 }
 0x126   : > { %1354 = vmatprep.subr.bf16.mxu0 %v3721_v44  ;;  %1395 = vmatprep.subr.bf16.mxu1 %v3725_v45 }
 0x129   : > { %1355 = vmatpush1.bf16.msra.mxu0 %v3732_v47  ;;  %1396 = vmatpush1.bf16.msra.mxu1 %v3734_v48 }
 0x12a   : > { %1356 = vmatprep.subr.bf16.mxu0 %v3738_v49  ;;  %1397 = vmatprep.subr.bf16.mxu1 %v3740_v50 }
 0x12d   : > { %1357 = vmatpush1.bf16.msra.mxu0 %v3744_v51  ;;  %1398 = vmatpush1.bf16.msra.mxu1 %v3746_v52 }
 0x12e   : > { %1358 = vmatprep.subr.bf16.mxu0 %v3748_v53  ;;  %1399 = vmatprep.subr.bf16.mxu1 %v3752_v54 }
 0x131   : > { %1359 = vmatpush1.bf16.msra.mxu0 %v3754_v55  ;;  %1400 = vmatpush1.bf16.msra.mxu1 %v3756_v56 }
 0x132   : > { %1360 = vmatprep.subr.bf16.mxu0 %v3760_v57  ;;  %1401 = vmatprep.subr.bf16.mxu1 %v3762_v58 }
 0x135   : > { %1361 = vmatpush1.bf16.msra.mxu0 %v3770_v59  ;;  %1402 = vmatpush1.bf16.msra.mxu1 %v3772_v60 }
 0x136   : > { %1362 = vmatprep.subr.bf16.mxu0 %v3776_v61  ;;  %1403 = vmatprep.subr.bf16.mxu1 %v3778_v62 }
 0x139   : > { %1363 = vmatpush1.bf16.msra.mxu0 %v3782_v63  ;;  %1404 = vmatpush1.bf16.msra.mxu1 %v3784_v0 }
 0x13a   : > { %1364 = vmatprep.subr.bf16.mxu0 %v3788_v1  ;;  %1405 = vmatprep.subr.bf16.mxu1 %v3790_v2 }
 0x13d   : > { %1365 = vmatpush1.bf16.msra.mxu0 %v3794_v3  ;;  %1406 = vmatpush1.bf16.msra.mxu1 %v3796_v5 }
 0x13e   : > { %1660 = vmatprep.subr.bf16.mxu0 %v3700_v35  ;;  %1701 = vmatprep.subr.bf16.mxu1 %v3702_v36 }
 0x1d3   : > { %v759_v17 = vpop.f32.mrb[0].mxu0  ;;  %v812_v18 = vpop.f32.mrb[0].mxu1 }
 0x1d4   : > { %v761_v20 = vpop.f32.mrb[1].mxu0  ;;  %v814_v21 = vpop.f32.mrb[1].mxu1 }
 0x1d5   : > { %v763_v23 = vpop.f32.mrb[2].mxu0  ;;  %v816_v24 = vpop.f32.mrb[2].mxu1 }
 0x1d6   : > { %v3841_v25 = vadd.f32 %v763_v23, %v536_v15  ;;  %v765_v26 = vpop.f32.mrb[3].mxu0  ;;  %v3843_v27 = vadd.f32 %v816_v24, %v544_v16  ;;  %v818_v28 = vpop.f32.mrb[3].mxu1  ;;  %v760_v24 = vadd.f32 %v759_v17, %v536_v15 }
 0x1d7   : > { %v3845_v29 = vadd.f32 %v765_v26, %v540_v22  ;;  %v3847_v30 = vadd.f32 %v818_v28, %v548_v19  ;;  %v813_v26 = vadd.f32 %v812_v18, %v544_v16  ;;  %v762_v28 = vadd.f32 %v761_v20, %v540_v22 }
 0x1db   : > { %v769_v31 = vpop.f32.mrb[4].mxu0  ;;  %v822_v32 = vpop.f32.mrb[4].mxu1 }
 0x1dc   : > { %v3849_v33 = vadd.f32 %v769_v31, %v536_v15  ;;  %v771_v34 = vpop.f32.mrb[5].mxu0  ;;  %v3851_v37 = vadd.f32 %v822_v32, %v544_v16  ;;  %v824_v46 = vpop.f32.mrb[5].mxu1  ;;  %v815_v31 = vadd.f32 %v814_v21, %v548_v19 }
 0x1dd   : > { %v3853_v6 = vadd.f32 %v771_v34, %v540_v22  ;;  %v773_v7 = vpop.f32.mrb[6].mxu0  ;;  %v3855_v8 = vadd.f32 %v824_v46, %v548_v19  ;;  %v826_v9 = vpop.f32.mrb[6].mxu1 }
 0x1de   : > { %4107 = vst [vmem:[#allocation25_spill] sm:$0xff] %v3849_v33  ;;  %4108 = vst [vmem:[#allocation26_spill] sm:$0xff] %v3851_v37  ;;  %v3857_v10 = vadd.f32 %v773_v7, %v536_v15  ;;  %v775_v11 = vpop.f32.mrb[7].mxu0  ;;  %v3859_v12 = vadd.f32 %v826_v9, %v544_v16  ;;  %v828_v13 = vpop.f32.mrb[7].mxu1 }
 0x1df   : > { %4109 = vst [vmem:[#allocation27_spill] sm:$0xff] %v3853_v6  ;;  %4110 = vst [vmem:[#allocation28_spill] sm:$0xff] %v3855_v8  ;;  %v3861_v14 = vadd.f32 %v775_v11, %v540_v22  ;;  %v3863_v23 = vadd.f32 %v828_v13, %v548_v19 }
 0x1e0   : > { %4111 = vst [vmem:[#allocation29_spill] sm:$0xff] %v3857_v10  ;;  %4112 = vst [vmem:[#allocation30_spill] sm:$0xff] %v3859_v12 }
 0x1e1   : > { %4113 = vst [vmem:[#allocation31_spill] sm:$0xff] %v3861_v14 }
 0x1f3   : > { %v1076_v32 = vpop.f32.mrb[8].mxu0  ;;  %v1117_v34 = vpop.f32.mrb[8].mxu1 }
 0x1f4   : > { %v1128_v4 = vadd.f32 %v1076_v32, %v760_v24  ;;  %v1130_v46 = vadd.f32 %v1117_v34, %v813_v26  ;;  %v1078_v8 = vpop.f32.mrb[9].mxu0  ;;  %v1119_v6 = vpop.f32.mrb[9].mxu1  ;;  %v4114_v26 = vmov 0  }
 0x1f5   : > { %v1129_v7 = vadd.f32 %v1078_v8, %v762_v28  ;;  %v1131_v10 = vadd.f32 %v1119_v6, %v815_v31  ;;  %v1080_v37 = vpop.f32.mrb[10].mxu0  ;;  %v1121_v9 = vpop.f32.mrb[10].mxu1 }
 0x1f6   : > { %v2537_v12 = vmul.f32 -1.442695, %v1128_v4  ;;  %v1081_v33 = vpop.f32.mrb[11].mxu0  ;;  %v1122_v11 = vpop.f32.mrb[11].mxu1  ;;  %v2539_v15 = vmul.f32 -1.442695, %v1130_v46 }
 0x1f7   : > { %v2538_v14 = vmul.f32 -1.442695, %v1129_v7  ;;  %v849_v37 = vld [vmem:[#allocation18] sm:$0xff] }
 0x1f8   : > { %2958 = vpow2.f32 %v2537_v12 }
 0x1f9   : > { %2960 = vpow2.f32 %v2538_v14 }
 0x1fa   : > { %2962 = vtanh.f32 %v1131_v10 }
 0x1fb   : > { %2964 = vpow2.f32 %v2539_v15 }
 0x202   : > { %v2959_v16 = vpop.eup %2958 }
 0x203   : > { %v1141_v17 = vadd.f32 1.0, %v2959_v16  ;;  %v2961_v18 = vpop.eup %2960 }
 0x204   : > { %v1142_v19 = vadd.f32 1.0, %v2961_v18  ;;  %v2963_v20 = vpop.eup %2962 }
 0x205   : > { %2966 = vrcp.f32 %v1141_v17  ;;  %v2965_v21 = vpop.eup %2964 }
 0x206   : > { %2968 = vrcp.f32 %v1142_v19  ;;  %v1143_v33 = vadd.f32 1.0, %v2965_v21 }
 0x208   : > { %2970 = vrcp.f32 %v1143_v33 }
 0x20f   : > { %v2967_v22 = vpop.eup %2966 }
 0x210   : > { %v1152_v6 = vmul.f32 %v2967_v22, %v2963_v20  ;;  %v2969_v4 = vpop.eup %2968 }
 0x211   : > { %v1151_v8 = vmul.f32 %v2969_v4, %v849_v37 }
 0x212   : > { %v2971_v12 = vpop.eup %2970 }
 0x213   : > { %v3865_v13 = vadd.f32 %v1152_v6, %v1151_v8 }
 0x215   : > { %2972 = vtanh.f32 %v3865_v13 }
 0x21f   : > { %v2973_v10 = vpop.eup %2972 }
 0x220   : > { %v1155_v14 = vmul.f32 %v2973_v10, %v2971_v12 }
 0x222   : > { %v1156_v24 = vpack.c.bf16 %v1155_v14, %v1155_v14 }
 0x224   : > { %1157 = vst [vmem:[#allocation3] sm:$0xf] %v1156_v24  ;;  %1383 = vmatmul.mubr.bf16.vlgmr.msra.gmra.mrb[12].mxu0 %v1156_v24  ;;  %1424 = vmatmul.mubr.bf16.vlgmr.msra.gmra.mrb[12].mxu1 %v1156_v24 }
 0x225   : > { %1661 = vmatpush1.bf16.msra.mxu0 %v3705_v38  ;;  %1702 = vmatpush1.bf16.msra.mxu1 %v3707_v39 }
 0x226   : > { %1662 = vmatprep.subr.bf16.mxu0 %v3709_v40  ;;  %1703 = vmatprep.subr.bf16.mxu1 %v3713_v41 }
 0x227   : > { %1692 = vmatprep.mubr.bf16.mxu0 %v4114_v26  ;;  %1733 = vmatprep.mubr.bf16.mxu1 %v4114_v26 }
 0x229   : > { %1663 = vmatpush1.bf16.msra.mxu0 %v3715_v42  ;;  %1704 = vmatpush1.bf16.msra.mxu1 %v3719_v43 }
 0x22a   : > { %1664 = vmatprep.subr.bf16.mxu0 %v3721_v44  ;;  %1705 = vmatprep.subr.bf16.mxu1 %v3725_v45 }
 0x22d   : > { %1665 = vmatpush1.bf16.msra.mxu0 %v3732_v47  ;;  %1706 = vmatpush1.bf16.msra.mxu1 %v3734_v48 }
 0x22e   : > { %1666 = vmatprep.subr.bf16.mxu0 %v3738_v49  ;;  %1707 = vmatprep.subr.bf16.mxu1 %v3740_v50 }
 0x231   : > { %1667 = vmatpush1.bf16.msra.mxu0 %v3744_v51  ;;  %1708 = vmatpush1.bf16.msra.mxu1 %v3746_v52 }
 0x232   : > { %1668 = vmatprep.subr.bf16.mxu0 %v3748_v53  ;;  %1709 = vmatprep.subr.bf16.mxu1 %v3752_v54 }
 0x235   : > { %1669 = vmatpush1.bf16.msra.mxu0 %v3754_v55  ;;  %1710 = vmatpush1.bf16.msra.mxu1 %v3756_v56 }
 0x236   : > { %1670 = vmatprep.subr.bf16.mxu0 %v3760_v57  ;;  %1711 = vmatprep.subr.bf16.mxu1 %v3762_v58 }
 0x239   : > { %1671 = vmatpush1.bf16.msra.mxu0 %v3770_v59  ;;  %1712 = vmatpush1.bf16.msra.mxu1 %v3772_v60 }
 0x23a   : > { %1672 = vmatprep.subr.bf16.mxu0 %v3776_v61  ;;  %1713 = vmatprep.subr.bf16.mxu1 %v3778_v62 }
 0x23d   : > { %1673 = vmatpush1.bf16.msra.mxu0 %v3782_v63  ;;  %1714 = vmatpush1.bf16.msra.mxu1 %v3784_v0 }
 0x23e   : > { %1674 = vmatprep.subr.bf16.mxu0 %v3788_v1  ;;  %1715 = vmatprep.subr.bf16.mxu1 %v3790_v2 }
 0x241   : > { %1675 = vmatpush1.bf16.msra.mxu0 %v3794_v3  ;;  %1716 = vmatpush1.bf16.msra.mxu1 %v3796_v5 }
 0x242   : > { %1970 = vmatprep.subr.bf16.mxu0 %v3700_v35  ;;  %2011 = vmatprep.subr.bf16.mxu1 %v3702_v36 }
 0x2f7   : > { %v1384_v28 = vpop.f32.mrb[12].mxu0  ;;  %v1425_v31 = vpop.f32.mrb[12].mxu1 }
 0x2f8   : > { %v1437_v32 = vadd.f32 %v1384_v28, %v3841_v25  ;;  %v1439_v34 = vadd.f32 %v1425_v31, %v3843_v27  ;;  %v1386_v46 = vpop.f32.mrb[13].mxu0  ;;  %v1427_v7 = vpop.f32.mrb[13].mxu1 }
 0x2f9   : > { %v1438_v9 = vadd.f32 %v1386_v46, %v3845_v29  ;;  %v1440_v11 = vadd.f32 %v1427_v7, %v3847_v30  ;;  %v1388_v15 = vpop.f32.mrb[14].mxu0  ;;  %v1429_v16 = vpop.f32.mrb[14].mxu1  ;;  %v2949_v46 = vld [vmem:[#allocation13] sm:$0xff]   ;;  %v2950_v7 = vld [vmem:[#allocation13 + $0x8] sm:$0xff]  }
 0x2fa   : > { %v2572_v17 = vmul.f32 -1.442695, %v1437_v32  ;;  %v1389_v18 = vpop.f32.mrb[15].mxu0  ;;  %v1430_v19 = vpop.f32.mrb[15].mxu1  ;;  %v2574_v36 = vmul.f32 -1.442695, %v1439_v34 }
 0x2fb   : > { %v2573_v35 = vmul.f32 -1.442695, %v1438_v9  ;;  %v2951_v9 = vld [vmem:[#allocation13 + $0x10] sm:$0xff]   ;;  %v2953_v15 = vld [vmem:[#allocation13 + $0x20] sm:$0xff]   ;;  %v2954_v16 = vld [vmem:[#allocation13 + $0x28] sm:$0xff]  }
 0x2fc   : > { %2974 = vpow2.f32 %v2572_v17  ;;  %v2955_v17 = vld [vmem:[#allocation13 + $0x30] sm:$0xff]   ;;  %v2956_v18 = vld [vmem:[#allocation13 + $0x38] sm:$0xff]  }
 0x2fd   : > { %2976 = vpow2.f32 %v2573_v35 }
 0x2fe   : > { %2978 = vtanh.f32 %v1440_v11  ;;  %v2952_v11 = vld [vmem:[#allocation13 + $0x18] sm:$0xff]  }
 0x2ff   : > { %2980 = vpow2.f32 %v2574_v36  ;;  %v4119_v36 = vld [vmem:[#allocation29_spill] sm:$0xff] }
 0x306   : > { %v2975_v20 = vpop.eup %2974 }
 0x307   : > { %v1450_v21 = vadd.f32 1.0, %v2975_v20  ;;  %v2977_v25 = vpop.eup %2976 }
 0x308   : > { %v1451_v27 = vadd.f32 1.0, %v2977_v25  ;;  %v2979_v29 = vpop.eup %2978 }
 0x309   : > { %2982 = vrcp.f32 %v1450_v21  ;;  %v2981_v22 = vpop.eup %2980  ;;  %v4120_v21 = vld [vmem:[#allocation30_spill] sm:$0xff] }
 0x30a   : > { %2984 = vrcp.f32 %v1451_v27  ;;  %v1452_v4 = vadd.f32 1.0, %v2981_v22  ;;  %v4121_v22 = vld [vmem:[#allocation31_spill] sm:$0xff] }
 0x30c   : > { %2986 = vrcp.f32 %v1452_v4 }
 0x313   : > { %v2983_v30 = vpop.eup %2982 }
 0x314   : > { %v1461_v37 = vmul.f32 %v2983_v30, %v2979_v29  ;;  %v2985_v6 = vpop.eup %2984 }
 0x315   : > { %v1460_v33 = vmul.f32 %v2985_v6, %v3865_v13 }
 0x316   : > { %v2987_v12 = vpop.eup %2986 }
 0x317   : > { %v3907_v8 = vadd.f32 %v1461_v37, %v1460_v33 }
 0x319   : > { %2988 = vtanh.f32 %v3907_v8 }
 0x323   : > { %v2989_v10 = vpop.eup %2988 }
 0x324   : > { %v1464_v14 = vmul.f32 %v2989_v10, %v2987_v12 }
 0x326   : > { %v1465_v24 = vpack.c.bf16 %v1464_v14, %v1464_v14 }
 0x328   : > { %1467 = vst [vmem:[#allocation3 + $0x4] sm:$0xf] %v1465_v24  ;;  %1693 = vmatmul.mubr.bf16.vlgmr.msra.gmra.mrb[16].mxu0 %v1465_v24  ;;  %1734 = vmatmul.mubr.bf16.vlgmr.msra.gmra.mrb[16].mxu1 %v1465_v24 }
 0x329   : > { %1971 = vmatpush1.bf16.msra.mxu0 %v3705_v38  ;;  %2012 = vmatpush1.bf16.msra.mxu1 %v3707_v39 }
 0x32a   : > { %1972 = vmatprep.subr.bf16.mxu0 %v3709_v40  ;;  %2013 = vmatprep.subr.bf16.mxu1 %v3713_v41  ;;  %v4115_v40 = vld [vmem:[#allocation25_spill] sm:$0xff] }
 0x32b   : > { %2002 = vmatprep.mubr.bf16.mxu0 %v4114_v26  ;;  %2043 = vmatprep.mubr.bf16.mxu1 %v4114_v26 }
 0x32d   : > { %1973 = vmatpush1.bf16.msra.mxu0 %v3715_v42  ;;  %2014 = vmatpush1.bf16.msra.mxu1 %v3719_v43  ;;  %v4116_v42 = vld [vmem:[#allocation26_spill] sm:$0xff] }
 0x32e   : > { %1974 = vmatprep.subr.bf16.mxu0 %v3721_v44  ;;  %2015 = vmatprep.subr.bf16.mxu1 %v3725_v45 }
 0x32f   : > { %v2948_v34 = vld [vmem:[#allocation3] sm:$0xff]  }
 0x331   : > { %1975 = vmatpush1.bf16.msra.mxu0 %v3732_v47  ;;  %2016 = vmatpush1.bf16.msra.mxu1 %v3734_v48  ;;  %v4117_v47 = vld [vmem:[#allocation27_spill] sm:$0xff] }
 0x332   : > { %1976 = vmatprep.subr.bf16.mxu0 %v3738_v49  ;;  %2017 = vmatprep.subr.bf16.mxu1 %v3740_v50  ;;  %v4118_v49 = vld [vmem:[#allocation28_spill] sm:$0xff] }
 0x335   : > { %1977 = vmatpush1.bf16.msra.mxu0 %v3744_v51  ;;  %2018 = vmatpush1.bf16.msra.mxu1 %v3746_v52 }
 0x336   : > { %1978 = vmatprep.subr.bf16.mxu0 %v3748_v53  ;;  %2019 = vmatprep.subr.bf16.mxu1 %v3752_v54 }
 0x339   : > { %1979 = vmatpush1.bf16.msra.mxu0 %v3754_v55  ;;  %2020 = vmatpush1.bf16.msra.mxu1 %v3756_v56 }
 0x33a   : > { %1980 = vmatprep.subr.bf16.mxu0 %v3760_v57  ;;  %2021 = vmatprep.subr.bf16.mxu1 %v3762_v58 }
 0x33d   : > { %1981 = vmatpush1.bf16.msra.mxu0 %v3770_v59  ;;  %2022 = vmatpush1.bf16.msra.mxu1 %v3772_v60 }
 0x33e   : > { %1982 = vmatprep.subr.bf16.mxu0 %v3776_v61  ;;  %2023 = vmatprep.subr.bf16.mxu1 %v3778_v62 }
 0x341   : > { %1983 = vmatpush1.bf16.msra.mxu0 %v3782_v63  ;;  %2024 = vmatpush1.bf16.msra.mxu1 %v3784_v0 }
 0x342   : > { %1984 = vmatprep.subr.bf16.mxu0 %v3788_v1  ;;  %2025 = vmatprep.subr.bf16.mxu1 %v3790_v2 }
 0x345   : > { %1985 = vmatpush1.bf16.msra.mxu0 %v3794_v3  ;;  %2026 = vmatpush1.bf16.msra.mxu1 %v3796_v5 }
 0x346   : > { %2696 = vmatprep.subr.bf16.mxu0 %v2949_v46 }
 0x3fb   : > { %v1694_v38 = vpop.f32.mrb[16].mxu0  ;;  %v1735_v39 = vpop.f32.mrb[16].mxu1 }
 0x3fc   : > { %v1747_v41 = vadd.f32 %v1694_v38, %v4115_v40  ;;  %v1749_v43 = vadd.f32 %v1735_v39, %v4116_v42  ;;  %v1696_v44 = vpop.f32.mrb[17].mxu0  ;;  %v1737_v45 = vpop.f32.mrb[17].mxu1 }
 0x3fd   : > { %v1748_v48 = vadd.f32 %v1696_v44, %v4117_v47  ;;  %v1750_v50 = vadd.f32 %v1737_v45, %v4118_v49  ;;  %v1698_v51 = vpop.f32.mrb[18].mxu0  ;;  %v1739_v52 = vpop.f32.mrb[18].mxu1 }
 0x3fe   : > { %v2607_v53 = vmul.f32 -1.442695, %v1747_v41  ;;  %v1699_v54 = vpop.f32.mrb[19].mxu0  ;;  %v1740_v55 = vpop.f32.mrb[19].mxu1  ;;  %v2609_v57 = vmul.f32 -1.442695, %v1749_v43 }
 0x3ff   : > { %v2608_v56 = vmul.f32 -1.442695, %v1748_v48 }
 0x400   : > { %2990 = vpow2.f32 %v2607_v53 }
 0x401   : > { %2992 = vpow2.f32 %v2608_v56 }
 0x402   : > { %2994 = vtanh.f32 %v1750_v50 }
 0x403   : > { %2996 = vpow2.f32 %v2609_v57 }
 0x40a   : > { %v2991_v58 = vpop.eup %2990 }
 0x40b   : > { %v1760_v59 = vadd.f32 1.0, %v2991_v58  ;;  %v2993_v60 = vpop.eup %2992 }
 0x40c   : > { %v1761_v61 = vadd.f32 1.0, %v2993_v60  ;;  %v2995_v62 = vpop.eup %2994 }
 0x40d   : > { %2998 = vrcp.f32 %v1760_v59  ;;  %v2997_v63 = vpop.eup %2996 }
 0x40e   : > { %3000 = vrcp.f32 %v1761_v61  ;;  %v1762_v3 = vadd.f32 1.0, %v2997_v63 }
 0x410   : > { %3002 = vrcp.f32 %v1762_v3 }
 0x417   : > { %v2999_v0 = vpop.eup %2998 }
 0x418   : > { %v1771_v1 = vmul.f32 %v2999_v0, %v2995_v62  ;;  %v3001_v2 = vpop.eup %3000 }
 0x419   : > { %v1770_v5 = vmul.f32 %v3001_v2, %v3907_v8 }
 0x41a   : > { %v3003_v26 = vpop.eup %3002 }
 0x41b   : > { %v3947_v13 = vadd.f32 %v1771_v1, %v1770_v5 }
 0x41d   : > { %3004 = vtanh.f32 %v3947_v13 }
 0x427   : > { %v3005_v28 = vpop.eup %3004 }
 0x428   : > { %v1774_v31 = vmul.f32 %v3005_v28, %v3003_v26 }
 0x42a   : > { %v1775_v32 = vpack.c.bf16 %v1774_v31, %v1774_v31 }
 0x42c   : > { %1777 = vst [vmem:[#allocation3 + $0x8] sm:$0xf] %v1775_v32  ;;  %2003 = vmatmul.mubr.bf16.vlgmr.msra.gmra.mrb[20].mxu0 %v1775_v32  ;;  %2044 = vmatmul.mubr.bf16.vlgmr.msra.gmra.mrb[20].mxu1 %v1775_v32 }
 0x42d   : > { %2712 = vmatprep.mubr.bf16.mxu0 %v2948_v34  ;;  %2697 = vmatpush3.bf16.msra.mxu0 %v2949_v46 }
 0x42e   : > { %2698 = vmatprep.subr.bf16.mxu0 %v2950_v7 }
 0x431   : > { %2699 = vmatpush3.bf16.msra.mxu0 %v2950_v7 }
 0x432   : > { %2700 = vmatprep.subr.bf16.mxu0 %v2951_v9 }
 0x435   : > { %2701 = vmatpush3.bf16.msra.mxu0 %v2951_v9 }
 0x436   : > { %2702 = vmatprep.subr.bf16.mxu0 %v2952_v11 }
 0x439   : > { %2703 = vmatpush3.bf16.msra.mxu0 %v2952_v11 }
 0x43a   : > { %2704 = vmatprep.subr.bf16.mxu0 %v2953_v15 }
 0x43d   : > { %2705 = vmatpush3.bf16.msra.mxu0 %v2953_v15 }
 0x43e   : > { %2706 = vmatprep.subr.bf16.mxu0 %v2954_v16 }
 0x441   : > { %2707 = vmatpush3.bf16.msra.mxu0 %v2954_v16 }
 0x442   : > { %2708 = vmatprep.subr.bf16.mxu0 %v2955_v17 }
 0x445   : > { %2709 = vmatpush3.bf16.msra.mxu0 %v2955_v17 }
 0x446   : > { %2710 = vmatprep.subr.bf16.mxu0 %v2956_v18 }
 0x449   : > { %2711 = vmatpush3.bf16.msra.mxu0 %v2956_v18 }
 0x4ff   : > { %v2004_v19 = vpop.f32.mrb[20].mxu0  ;;  %v2045_v35 = vpop.f32.mrb[20].mxu1 }
 0x500   : > { %v2057_v20 = vadd.f32 %v2004_v19, %v4119_v36  ;;  %v2059_v25 = vadd.f32 %v2045_v35, %v4120_v21  ;;  %v2006_v27 = vpop.f32.mrb[21].mxu0  ;;  %v2047_v29 = vpop.f32.mrb[21].mxu1 }
 0x501   : > { %v2058_v30 = vadd.f32 %v2006_v27, %v4121_v22  ;;  %v2060_v37 = vadd.f32 %v2047_v29, %v3863_v23  ;;  %v2008_v6 = vpop.f32.mrb[22].mxu0  ;;  %v2049_v4 = vpop.f32.mrb[22].mxu1 }
 0x502   : > { %v2642_v33 = vmul.f32 -1.442695, %v2057_v20  ;;  %v2009_v8 = vpop.f32.mrb[23].mxu0  ;;  %v2050_v12 = vpop.f32.mrb[23].mxu1  ;;  %v2644_v14 = vmul.f32 -1.442695, %v2059_v25 }
 0x503   : > { %v2643_v10 = vmul.f32 -1.442695, %v2058_v30 }
 0x504   : > { %3006 = vpow2.f32 %v2642_v33 }
 0x505   : > { %3008 = vpow2.f32 %v2643_v10 }
 0x506   : > { %3010 = vtanh.f32 %v2060_v37 }
 0x507   : > { %3012 = vpow2.f32 %v2644_v14 }
 0x50e   : > { %v3007_v24 = vpop.eup %3006 }
 0x50f   : > { %v2070_v38 = vadd.f32 1.0, %v3007_v24  ;;  %v3009_v39 = vpop.eup %3008 }
 0x510   : > { %v2071_v40 = vadd.f32 1.0, %v3009_v39  ;;  %v3011_v41 = vpop.eup %3010 }
 0x511   : > { %3014 = vrcp.f32 %v2070_v38  ;;  %v3013_v42 = vpop.eup %3012 }
 0x512   : > { %3016 = vrcp.f32 %v2071_v40  ;;  %v2072_v45 = vadd.f32 1.0, %v3013_v42 }
 0x514   : > { %3018 = vrcp.f32 %v2072_v45 }
 0x51b   : > { %v3015_v23 = vpop.eup %3014 }
 0x51c   : > { %v2081_v43 = vmul.f32 %v3015_v23, %v3011_v41  ;;  %v3017_v44 = vpop.eup %3016 }
 0x51d   : > { %v2080_v47 = vmul.f32 %v3017_v44, %v3947_v13 }
 0x51e   : > { %v3019_v49 = vpop.eup %3018 }
 0x51f   : > { %v2082_v48 = vadd.f32 %v2081_v43, %v2080_v47 }
 0x521   : > { %3020 = vtanh.f32 %v2082_v48  ;;  %2090 = vst [vmem:[#allocation18] sm:$0xff] %v2082_v48 }
 0x52b   : > { %v3021_v50 = vpop.eup %3020 }
 0x52c   : > { %v2084_v51 = vmul.f32 %v3021_v50, %v3019_v49 }
 0x52e   : > { %v2085_v52 = vpack.c.bf16 %v2084_v51, %v2084_v51 }
 0x530   : > { %2087 = vst [vmem:[#allocation3 + $0xc] sm:$0xf] %v2085_v52  ;;  %v2088_v53 = vunpack.c.l.bf16 %v2085_v52 }
 0x532   : > { %2089 = vst [vmem:[#allocation16] sm:$0xff] %v2088_v53 }
 0x537   : > { %v2957_v54 = vld [vmem:[#allocation3 + $0x8] sm:$0xff]  }
 0x538   : > { %2713 = vmatmul.mubr.bf16.vlgmr.msra.gmra.mrb[24].mxu0 %v2957_v54 }
 0x539   : > { %3205 = shalt.err (!%p3202_p9)
}
 0x53a   : > { %s3206_s19 = scalar_lea.hbm %s4065_s9, 128 }
 0x53b   : > { %p3207_p1 = scmp.ne.s32.totalorder %s4065_s9, %s3206_s19  ;;  %p3212_p2 = scmp.lt.u32.totalorder %s3206_s19, %s4065_s9 }
 0x53d   : > { %p3208_p3 = pnand %p3207_p1, %p4122_p5 }
 0x53f   : > { %p3209_p11 = pneg %p3208_p3 }
 0x541   : > { %p3214_p10 = pnand %p3212_p2, %p3209_p11 }
 0x543   : > { %3217 = shalt.err (!%p3214_p10)
}
 0x544   : > { %2740 = dma.vmem_to_hbm [thread:$0]  (%p4122_p5), %s2279_s22, 128, %s4065_s9, [#allocation17]  }
 0x545   : > { %s3356_s21 = smov [#allocation18]  }
 0x546   : > { %s2291_s29 = sshll.u32 %s3356_s21, 4  ;;  %s2292_s29 = int_to_ptr.vmem [resolvable:$true] %s2291_s29 }
 0x547   : > { %s3218_s27 = scalar_lea.vmem %s2292_s29, 128  ;;  %p3225_p4 = scmp.lt.s32.totalorder %s2292_s29, %s2292_s29 }
 0x548   : > { %p3219_p6 = scmp.ne.s32.totalorder %s2292_s29, %s3218_s27  ;;  %p3226_p12 = scmp.lt.s32.totalorder %s3218_s27, %s3218_s27 }
 0x54a   : > { %p3220_p13 = pnand %p3219_p6, %p4122_p5  ;;  %p3227_p0 = por %p3226_p12, %p3225_p4 }
 0x54c   : > { %p3221_p7 = pneg %p3220_p13 }
 0x54e   : > { %p3228_p8 = pnand %p3227_p0, %p3221_p7 }
 0x550   : > { %3231 = shalt.err (!%p3228_p8)
}
 0x551   : > { %s3232_s26 = scalar_lea.hbm %s4066_s10, 128 }
 0x552   : > { %p3233_p9 = scmp.ne.s32.totalorder %s4066_s10, %s3232_s26  ;;  %p3238_p11 = scmp.lt.u32.totalorder %s3232_s26, %s4066_s10 }
 0x554   : > { %p3234_p1 = pnand %p3233_p9, %p4122_p5 }
 0x556   : > { %p3235_p3 = pneg %p3234_p1 }
 0x558   : > { %p3240_p2 = pnand %p3238_p11, %p3235_p3 }
 0x55a   : > { %3243 = shalt.err (!%p3240_p2)
}
 0x55b   : > { %2742 = dma.vmem_to_hbm [thread:$0]  (%p4122_p5), %s2292_s29, 128, %s4066_s10, [#allocation17]  }
 0x55c   : > { %s4123_s23 = sld [smem:[#allocation35_spill]]  ;;  %s2674_s19 = sshll.u32 %s3334_s16, 8 }
 0x55d   : > { %s2262_s26 = sshll.u32 %s3695_s2, 4  ;;  %s4124_s22 = sld [smem:[#allocation36_spill]]  ;;  %s4001_s26 = int_to_ptr.vmem [resolvable:$true] %s2262_s26 }
 0x55e   : > { %s2248_s16 = scalar_lea.sflag [#allocation6], %s3673_s1  ;;  %s3244_s12 = scalar_lea.vmem %s4001_s26, 256 }
 0x55f   : > { %p3245_p10 = scmp.ne.s32.totalorder %s4001_s26, %s3244_s12  ;;  %p4125_p6 = scmp.ne.s32.totalorder %s4100_s25, 0 }
 0x560   : > { %s3357_s3 = smov [#allocation15]  }
 0x561   : > { %p3246_p13 = pnand %p3245_p10, %p4125_p6  ;;  %s3248_s20 = sshll.u32 %s3357_s3, 4  ;;  %s3249_s20 = int_to_ptr.vmem [resolvable:$false] %s3248_s20 }
 0x562   : > { %v2645_v56 = vld [vmem:[%s4123_s23] ss:$0 sm:$0xff]  ;;  %s3250_s21 = scalar_lea.vmem %s3249_s20, 512  ;;  %p3251_p4 = scmp.lt.s32.totalorder %s4001_s26, %s3249_s20 }
 0x563   : > { %s3999_s24 = scalar_lea.hbm %s4124_s22, %s2674_s19  ;;  %p3247_p7 = pneg %p3246_p13 }
 0x564   : > { %p3252_p12 = scmp.lt.s32.totalorder %s3250_s21, %s3244_s12 }
 0x566   : > { %p3253_p0 = por %p3252_p12, %p3251_p4 }
 0x568   : > { %p3254_p8 = pnand %p3253_p0, %p3247_p7 }
 0x60b   : > { %v2714_v55 = vpop.f32.mrb[24].mxu0 }
 0x60c   : > { %v2212_v57 = vpop.f32.mrb[25].mxu0  ;;  %v2221_v59 = vadd.f32 %v2714_v55, %v2645_v56 }
 0x60d   : > { %v2715_v58 = vpop.f32.mrb[26].mxu0  ;;  %v2213_v62 = vadd.f32 %v2645_v56, %v2212_v57 }
 0x60e   : > { %v2224_v60 = vadd.f32 %v2715_v58, %v2645_v56  ;;  %v2215_v61 = vpop.f32.mrb[27].mxu0 }
 0x60f   : > { %v2216_v63 = vadd.f32 %v2645_v56, %v2215_v61 }
 0x610   : > { %v2683_v0 = vpack.c.bf16 %v2224_v60, %v2221_v59 }
 0x611   : > { %v2678_v1 = vpack.c.bf16 %v2216_v63, %v2213_v62 }
 0x612   : > { %2685 = vst [vmem:[%s3695_s2 + $0x8] sm:$0xff] %v2683_v0  }
 0x613   : > { %2679 = vst [vmem:[%s3695_s2] sm:$0xff] %v2678_v1  }
 0x614   : > { %3257 = shalt.err (!%p3254_p8)
}
 0x615   : > { %s3258_s2 = scalar_lea.hbm %s3999_s24, 256  ;;  %s3262_s19 = scalar_lea.hbm %s4124_s22, 512 }
 0x616   : > { %p3259_p9 = scmp.ne.s32.totalorder %s3999_s24, %s3258_s2  ;;  %p3263_p11 = scmp.lt.u32.totalorder %s3999_s24, %s4124_s22 }
 0x617   : > { %p3264_p2 = scmp.lt.u32.totalorder %s3262_s19, %s3258_s2  ;;  %p3266_p13 = scmp.lt.u32.totalorder %s3258_s2, %s3999_s24 }
 0x618   : > { %p3260_p1 = pnand %p3259_p9, %p4125_p6 }
 0x619   : > { %p3265_p10 = por %p3264_p2, %p3263_p11 }
 0x61a   : > { %p3261_p3 = pneg %p3260_p1 }
 0x61b   : > { %p3267_p7 = por %p3266_p13, %p3265_p10 }
 0x61d   : > { %p3268_p4 = pnand %p3267_p7, %p3261_p3 }
 0x61f   : > { %3271 = shalt.err (!%p3268_p4)
}
 0x620   : > { %s3358_s12 = smov 64   ;;  %s3359_s3 = smov 4  }
 0x621   : > { %2738 = dma.vmem_to_hbm [thread:$0]  (%p4125_p6), %s4001_s26, 256, %s3999_s24, %s2248_s16, %s3358_s12, %s3358_s12, %s3359_s3  }
 0x622   : > { %3313 = dma.done.wait (%p4122_p5), [#allocation17], 256  }
 0x623   : > { %3315 = vsyncadd (%p4122_p5), [#allocation17], 4294967040 }
 0x624 PF: > { %s2311_s20 = sand.u32 1, %s3322_s13   ;;  %p4126_p12 = scmp.ne.s32.totalorder %s4101_s7, 0 }
 0x625   : > { %p4127_p0 = scmp.ge.s32.totalorder %s3342_s18, 2  ;;  %s2312_s21 = scalar_lea.sflag [#allocation6], %s2311_s20 }
 0x627   : > { %p2769_p8 = pnand %p4127_p0, %p4126_p12 }
 0x629   : > { %3317 = dma.done.wait (!%p2769_p8), %s2312_s21, 256  }
 0x62a   : > { %3319 = vsyncadd (!%p2769_p8), %s2312_s21, 4294967040  ;;  %s31_s18 = sadd.s32 1, %s3342_s18   ;;  %s4128_s13 = smov %s3326_s14 }
 0x62b   : > { %p28_p9 = scmp.ge.s32.totalorder %s31_s18, 4   ;;  %s4129_s14 = smov %s3330_s15 }
 0x62c   : > { %s4130_s15 = smov %s3618_s28  ;;  %s4131_s16 = smov %s3338_s17 }
 0x62d   : > { %s4132_s17 = smov %s4134_s11  ;;  %30 = sbr.rel (!%p28_p9) target bundleno = 16 (0x10), region = 147 }
 0x634   :  { %2317 = vsyncpa [#allocation5], 1 }
 0x635   :  { %2319 = vsyncpa [#allocation5 + $0x1], 1 }
 0x636   :  { %2320 = vsyncpa [#allocation8], 1 }
 0x637   :  { %2321 = vsyncpa [#allocation11], 1 }
 0x638   :  { %2322 = vsyncpa [#allocation14], 1 }
 0x639   :  { %2323 = vsyncpa [#allocation6], 1 }
 0x63a   :  { %2325 = vsyncpa [#allocation6 + $0x1], 1 }
 0x63b   :  { %2326 = vsyncpa [#allocation17], 1 }

// kernel: tpu_custom_call.1
= control target key start
LH: loop header
LB: loop body
LE: loop exit
PB: predicated region body
PF: predicated region fallthrough
CT: control target
= control target key end

     0   :  { %s4056_s0 = inlined_call_operand.hbm [shape: bf16[8,8,128], index: 0, kind: input, shape index: {}]   ;;  %s4057_s1 = inlined_call_operand.hbm [shape: f32[8,128], index: 1, kind: input, shape index: {}]   ;;  %s4058_s2 = inlined_call_operand.hbm [shape: f32[8,128], index: 2, kind: input, shape index: {}]   ;;  %s4059_s3 = inlined_call_operand.hbm [shape: bf16[128,512], index: 3, kind: input, shape index: {}]   ;;  %s4060_s4 = inlined_call_operand.hbm [shape: bf16[128,512], index: 4, kind: input, shape index: {}]   ;;  %s4061_s5 = inlined_call_operand.vmem [shape: f32[1,512], index: 5, kind: input, shape index: {}]   ;;  %s4062_s6 = inlined_call_operand.hbm [shape: bf16[128,128], index: 6, kind: input, shape index: {}]   ;;  %s4063_s7 = inlined_call_operand.vmem [shape: f32[1,128], index: 7, kind: input, shape index: {}]   ;;  %s4064_s8 = inlined_call_operand.hbm [shape: bf16[8,8,128], index: 8, kind: output, shape index: {0}]   ;;  %s4065_s9 = inlined_call_operand.hbm [shape: f32[8,128], index: 9, kind: output, shape index: {1}]   ;;  %s4066_s10 = inlined_call_operand.hbm [shape: f32[8,128], index: 10, kind: output, shape index: {2}]  }
   0x1   :  { %4081 = sst [smem:[#allocation32_spill]] %s4057_s1 }
   0x2   :  { %4082 = sst [smem:[#allocation33_spill]] %s4058_s2 }
   0x3   :  { %4083 = sst [smem:[#allocation34_spill]] %s4059_s3 }
   0x4   :  { %4084 = sst [smem:[#allocation35_spill]] %s4063_s7 }
   0x5   :  { %4085 = sst [smem:[#allocation36_spill]] %s4064_s8 }
   0x6   :  { %16 = vsyncpa [#allocation5], 0 }
   0x7   :  { %18 = vsyncpa [#allocation5 + $0x1], 0 }
   0x8   :  { %19 = vsyncpa [#allocation8], 0 }
   0x9   :  { %20 = vsyncpa [#allocation11], 0 }
   0xa   :  { %21 = vsyncpa [#allocation14], 0 }
   0xb   :  { %22 = vsyncpa [#allocation6], 0 }
   0xc   :  { %24 = vsyncpa [#allocation6 + $0x1], 0 }
   0xd   :  { %25 = vsyncpa [#allocation17], 0  ;;  %s3415_s13 = smov 0   ;;  %s3417_s14 = smov 0  }
   0xe   :  { %s3419_s15 = smov 0   ;;  %s3421_s16 = smov 0  }
   0xf   :  { %s3423_s17 = smov 0   ;;  %s3425_s18 = smov 0  }
  0x10 LB: > { %s4067_s19 = sadd.s32 4294967295, %s3342_s18   ;;  %p2452_p0 = scmp.ge.s32.totalorder %s3342_s18, 1  ;;  %s3342_s18 = sphi %s3425_s18, %s31_s18   ;;  %s3338_s17 = sphi %s3423_s17, %s4132_s17   ;;  %s3334_s16 = sphi %s3421_s16, %s4131_s16   ;;  %s3330_s15 = sphi %s3419_s15, %s4130_s15   ;;  %s3326_s14 = sphi %s3417_s14, %s4129_s14   ;;  %s3322_s13 = sphi %s3415_s13, %s4128_s13  }
  0x11   : > { %p3449_p1 = scmp.eq.s32.totalorder %s4067_s19, 0  ;;  %p313_p2 = scmp.lt.s32.totalorder %s3342_s18, 3 }
  0x12   : > { %s3344_s22 = smov [#allocation7]   ;;  %s3345_s24 = smov [#allocation10]  }
  0x13   : > { %s4086_s20 = scalar_select %p3449_p1, 1, 0 }
  0x14   : > { %p3454_p3 = pnand %p2452_p0, %p313_p2  ;;  %s328_s23 = sshll.u32 %s3344_s22, 4  ;;  %s329_s23 = int_to_ptr.vmem [resolvable:$true] %s328_s23 }
  0x15   : > { %s351_s25 = sshll.u32 %s3345_s24, 4  ;;  %s3346_s27 = smov [#allocation9]   ;;  %s3467_s25 = int_to_ptr.vmem [resolvable:$true] %s351_s25 }
  0x16   : > { %s4087_s21 = scalar_select %p3454_p3, 1, 0 }
  0x17   : > { %p2748_p5 = pneg %p3454_p3  ;;  %s3469_s28 = sshll.u32 %s3346_s27, 4  ;;  %s342_s28 = int_to_ptr.vmem [resolvable:$true] %s3469_s28 }
  0x18   : > { %s4089_s1 = sld [smem:[#allocation32_spill]] }
  0x19   : > { %p3463_p6 = pnand %p2748_p5, %p3449_p1 }
  0x1b   : > { %p3479_p8 = pneg %p3463_p6 }
  0x1e   : > { %s3022_s11 = scalar_lea.hbm %s4089_s1, 128 }
  0x1f   : > { %p3023_p7 = scmp.ne.s32.totalorder %s4089_s1, %s3022_s11  ;;  %p3029_p11 = scmp.lt.u32.totalorder %s3022_s11, %s4089_s1 }
  0x21   : > { %p3025_p9 = pnand %p3479_p8, %p3023_p7 }
  0x23   : > { %p3026_p10 = pneg %p3025_p9 }
  0x25   : > { %p3031_p12 = pnand %p3029_p11, %p3026_p10 }
  0x27   : > { %3034 = shalt.err (!%p3031_p12)
}
  0x28   : > { %s3035_s29 = scalar_lea.vmem %s329_s23, 128  ;;  %p3043_p5 = scmp.lt.s32.totalorder %s329_s23, %s329_s23 }
  0x29   : > { %p3036_p13 = scmp.ne.s32.totalorder %s329_s23, %s3035_s29  ;;  %p3044_p4 = scmp.lt.s32.totalorder %s3035_s29, %s3035_s29 }
  0x2b   : > { %p3038_p0 = pnand %p3036_p13, %p3479_p8  ;;  %p3045_p3 = por %p3044_p4, %p3043_p5 }
  0x2d   : > { %p3039_p2 = pneg %p3038_p0 }
  0x2f   : > { %p3046_p1 = pnand %p3045_p3, %p3039_p2 }
  0x31   : > { %3049 = shalt.err (!%p3046_p1)
}
  0x32   : > { %2751 = dma.hbm_to_vmem [thread:$0]  (!%p3463_p6), %s4089_s1, 128, %s329_s23, [#allocation8]  }
  0x33   : > { %s4091_s3 = sld [smem:[#allocation34_spill]] }
  0x39   : > { %s3050_s22 = scalar_lea.hbm %s4091_s3, 4096 }
  0x3a   : > { %p3051_p7 = scmp.ne.s32.totalorder %s4091_s3, %s3050_s22  ;;  %p3057_p1 = scmp.lt.u32.totalorder %s3050_s22, %s4091_s3 }
  0x3c   : > { %p3053_p9 = pnand %p3051_p7, %p3479_p8 }
  0x3e   : > { %p3054_p4 = pneg %p3053_p9 }
  0x40   : > { %p3059_p3 = pnand %p3057_p1, %p3054_p4 }
  0x42   : > { %3062 = shalt.err (!%p3059_p3)
}
  0x43   : > { %s3063_s23 = scalar_lea.vmem %s3467_s25, 4096  ;;  %p3071_p13 = scmp.lt.s32.totalorder %s3467_s25, %s3467_s25 }
  0x44   : > { %p3064_p10 = scmp.ne.s32.totalorder %s3467_s25, %s3063_s23  ;;  %p3072_p0 = scmp.lt.s32.totalorder %s3063_s23, %s3063_s23 }
  0x46   : > { %p3066_p11 = pnand %p3064_p10, %p3479_p8  ;;  %p3073_p2 = por %p3072_p0, %p3071_p13 }
  0x48   : > { %p3067_p12 = pneg %p3066_p11 }
  0x4a   : > { %p3074_p5 = pnand %p3073_p2, %p3067_p12 }
  0x4c   : > { %3077 = shalt.err (!%p3074_p5)
}
  0x4d   : > { %s4072_s8 = smov 256   ;;  %s4073_s7 = smov 16  }
  0x4e   : > { %2757 = dma.hbm_to_vmem [thread:$0]  (!%p3463_p6), %s4091_s3, 4096, %s3467_s25, [#allocation11], %s4072_s8, %s4072_s8, %s4073_s7  }
  0x4f   : > { %s4092_s2 = sld [smem:[#allocation33_spill]] }
  0x55   : > { %s3078_s22 = scalar_lea.hbm %s4092_s2, 128 }
  0x56   : > { %p3079_p7 = scmp.ne.s32.totalorder %s4092_s2, %s3078_s22  ;;  %p3085_p1 = scmp.lt.u32.totalorder %s3078_s22, %s4092_s2 }
  0x58   : > { %p3081_p9 = pnand %p3079_p7, %p3479_p8 }
  0x5a   : > { %p3082_p4 = pneg %p3081_p9 }
  0x5c   : > { %p3087_p3 = pnand %p3085_p1, %p3082_p4 }
  0x5e   : > { %3090 = shalt.err (!%p3087_p3)
}
  0x5f   : > { %s3091_s30 = scalar_lea.vmem %s342_s28, 128  ;;  %p3099_p13 = scmp.lt.s32.totalorder %s342_s28, %s342_s28 }
  0x60   : > { %p3092_p10 = scmp.ne.s32.totalorder %s342_s28, %s3091_s30  ;;  %p3100_p0 = scmp.lt.s32.totalorder %s3091_s30, %s3091_s30 }
  0x62   : > { %p3094_p11 = pnand %p3092_p10, %p3479_p8  ;;  %p3101_p2 = por %p3100_p0, %p3099_p13 }
  0x64   : > { %p3095_p12 = pneg %p3094_p11 }
  0x66   : > { %p3102_p5 = pnand %p3101_p2, %p3095_p12 }
  0x68   : > { %3105 = shalt.err (!%p3102_p5)
}
  0x69   : > { %2754 = dma.hbm_to_vmem [thread:$0]  (!%p3463_p6), %s4092_s2, 128, %s342_s28, [#allocation8]  }
  0x6a   : > { %s3349_s1 = smov [#allocation12]   ;;  %s3350_s11 = smov [#allocation13]  }
  0x6b   : > { %s364_s19 = sshll.u32 %s3349_s1, 4  ;;  %s380_s22 = sshll.u32 %s3350_s11, 4  ;;  %s365_s19 = int_to_ptr.vmem [resolvable:$true] %s364_s19  ;;  %s381_s22 = int_to_ptr.vmem [resolvable:$true] %s380_s22 }
  0x6c   : > { %s3106_s23 = scalar_lea.hbm %s4060_s4, 4096 }
  0x6d   : > { %p3107_p7 = scmp.ne.s32.totalorder %s4060_s4, %s3106_s23  ;;  %p3113_p1 = scmp.lt.u32.totalorder %s3106_s23, %s4060_s4 }
  0x6f   : > { %p3109_p9 = pnand %p3107_p7, %p3479_p8 }
  0x71   : > { %p3110_p4 = pneg %p3109_p9 }
  0x73   : > { %p3115_p3 = pnand %p3113_p1, %p3110_p4 }
  0x75   : > { %3118 = shalt.err (!%p3115_p3)
}
  0x76   : > { %s3119_s28 = scalar_lea.vmem %s365_s19, 4096  ;;  %p3127_p13 = scmp.lt.s32.totalorder %s365_s19, %s365_s19 }
  0x77   : > { %p3120_p10 = scmp.ne.s32.totalorder %s365_s19, %s3119_s28  ;;  %p3128_p0 = scmp.lt.s32.totalorder %s3119_s28, %s3119_s28 }
  0x79   : > { %p3122_p11 = pnand %p3120_p10, %p3479_p8  ;;  %p3129_p2 = por %p3128_p0, %p3127_p13 }
  0x7b   : > { %p3123_p12 = pneg %p3122_p11 }
  0x7d   : > { %p3130_p5 = pnand %p3129_p2, %p3123_p12 }
  0x7f   : > { %3133 = shalt.err (!%p3130_p5)
}
  0x80   : > { %s4093_s8 = smov 16   ;;  %s4094_s12 = smov 256  }
  0x81   : > { %2760 = dma.hbm_to_vmem [thread:$0]  (!%p3463_p6), %s4060_s4, 4096, %s365_s19, [#allocation11], %s4094_s12, %s4094_s12, %s4093_s8  }
  0x82   : > { %s3134_s29 = scalar_lea.hbm %s4062_s6, 1024 }
  0x83   : > { %p3135_p7 = scmp.ne.s32.totalorder %s4062_s6, %s3134_s29  ;;  %p3141_p1 = scmp.lt.u32.totalorder %s3134_s29, %s4062_s6 }
  0x85   : > { %p3137_p9 = pnand %p3135_p7, %p3479_p8 }
  0x87   : > { %p3138_p4 = pneg %p3137_p9 }
  0x89   : > { %p3143_p3 = pnand %p3141_p1, %p3138_p4 }
  0x8b   : > { %3146 = shalt.err (!%p3143_p3)
}
  0x8c   : > { %s3147_s7 = scalar_lea.vmem %s381_s22, 1024  ;;  %p3155_p13 = scmp.lt.s32.totalorder %s381_s22, %s381_s22 }
  0x8d   : > { %p3148_p10 = scmp.ne.s32.totalorder %s381_s22, %s3147_s7  ;;  %p3156_p0 = scmp.lt.s32.totalorder %s3147_s7, %s3147_s7 }
  0x8f   : > { %p3150_p11 = pnand %p3148_p10, %p3479_p8  ;;  %p3157_p2 = por %p3156_p0, %p3155_p13 }
  0x91   : > { %p3151_p12 = pneg %p3150_p11 }
  0x93   : > { %p3158_p5 = pnand %p3157_p2, %p3151_p12 }
  0x95   : > { %3161 = shalt.err (!%p3158_p5)
}
  0x96   : > { %s4074_s19 = smov 64   ;;  %s4075_s24 = smov 4  }
  0x97   : > { %2763 = dma.hbm_to_vmem [thread:$0]  (!%p3463_p6), %s4062_s6, 1024, %s381_s22, [#allocation14], %s4074_s19, %s4074_s19, %s4075_s24  }
  0x98   : > { %s2451_s1 = sadd.s32 4294967294, %s3342_s18   ;;  %s40_s11 = sadd.s32 1, %s3338_s17 }
  0x99   : > { %s52_s27 = sadd.s32 1, %s3330_s15  ;;  %p41_p8 = scmp.ge.s32.totalorder %s40_s11, 2 }
  0x9a   : > { %p59_p7 = scmp.ne.s32.totalorder %s3330_s15, %s3326_s14  ;;  %p60_p9 = scmp.eq.s32.totalorder %s3342_s18, 0 }
  0x9b   : > { %p65_p4 = scmp.ne.s32.totalorder %s3326_s14, %s3322_s13  ;;  %s4134_s11 = smov (%p41_p8, %s40_s11), 0 }
  0x9c   : > { %p3592_p1 = por %p60_p9, %p59_p7  ;;  %p4096_p3 = scmp.ne.s32.totalorder %s4086_s20, 0 }
  0x9d   : > { %s47_s29 = ssub.s32 %s3338_s17, %s4134_s11  ;;  %s4098_s23 = sadd.s32 4294967295, %s3342_s18  }
  0x9e   : > { %p3598_p6 = por %p4096_p3, %p65_p4  ;;  %p3606_p10 = scmp.eq.s32.totalorder %s4098_s23, 1 }
  0x9f   : > { %p50_p11 = scmp.eq.s32.totalorder %s47_s29, 0  ;;  %p254_p12 = scmp.eq.s32.totalorder %s2451_s1, 1 }
  0xa0   : > { %s4099_s30 = scalar_select %p3606_p10, 1, 0 }
  0xa1   : > { %p3612_p13 = por %p3606_p10, %p59_p7  ;;  %p2777_p0 = scmp.lt.s32.totalorder %s3342_s18, 2 }
  0xa2   : > { %s3618_s28 = scalar_select %p50_p11, %s3330_s15, %s52_s27  }
  0xa3   : > { %s4100_s25 = scalar_select %p3612_p13, 1, 0 }
  0xa4   : > { %p3620_p2 = por %p254_p12, %p65_p4  ;;  %s397_s8 = sand.u32 1, %s3330_s15  }
  0xa5   : > { %s2459_s12 = sshll.u32 %s397_s8, 4  ;;  %s2669_s23 = sshll.u32 %s3338_s17, 8 }
  0xa6   : > { %s4101_s7 = scalar_select %p3620_p2, 1, 0 }
  0xa7   : > { %s3629_s29 = scalar_lea.hbm %s4056_s0, %s2669_s23  ;;  %s401_s1 = scalar_lea.vmem [#allocation4], %s2459_s12 }
  0xa8   : > { %s409_s2 = sshll.u32 %s401_s1, 4  ;;  %p3635_p5 = pnand %p2777_p0, %p3592_p1  ;;  %s3631_s2 = int_to_ptr.vmem [resolvable:$true] %s409_s2 }
  0xa9   : > { %s3639_s3 = scalar_lea.sflag [#allocation5], %s397_s8  ;;  %s3162_s19 = scalar_lea.hbm %s3629_s29, 256 }
  0xaa   : > { %p3163_p8 = scmp.ne.s32.totalorder %s3629_s29, %s3162_s19  ;;  %p3164_p7 = pneg %p3635_p5 }
  0xab   : > { %s3167_s26 = scalar_lea.hbm %s4056_s0, 512  ;;  %p3168_p1 = scmp.lt.u32.totalorder %s3629_s29, %s4056_s0 }
  0xac   : > { %p3165_p9 = pnand %p3164_p7, %p3163_p8  ;;  %p3169_p3 = scmp.lt.u32.totalorder %s3167_s26, %s3162_s19 }
  0xad   : > { %p3171_p12 = scmp.lt.u32.totalorder %s3162_s19, %s3629_s29 }
  0xae   : > { %p3166_p4 = pneg %p3165_p9  ;;  %p3170_p11 = por %p3169_p3, %p3168_p1 }
  0xb0   : > { %p3172_p0 = por %p3171_p12, %p3170_p11 }
  0xb2   : > { %p3173_p2 = pnand %p3172_p0, %p3166_p4 }
  0xb4   : > { %3176 = shalt.err (!%p3173_p2)
}
  0xb5   : > { %s3177_s8 = scalar_lea.vmem %s3631_s2, 256  ;;  %s3353_s24 = smov [#allocation4]  }
  0xb6   : > { %p3178_p8 = scmp.ne.s32.totalorder %s3631_s2, %s3177_s8  ;;  %s3182_s12 = sshll.u32 %s3353_s24, 4  ;;  %s3183_s12 = int_to_ptr.vmem [resolvable:$false] %s3182_s12 }
  0xb7   : > { %s3184_s23 = scalar_lea.vmem %s3183_s12, 512  ;;  %p3185_p10 = scmp.lt.s32.totalorder %s3631_s2, %s3183_s12 }
  0xb8   : > { %p3180_p9 = pnand %p3178_p8, %p3164_p7  ;;  %p3186_p1 = scmp.lt.s32.totalorder %s3184_s23, %s3177_s8 }
  0xba   : > { %p3181_p13 = pneg %p3180_p9  ;;  %p3187_p3 = por %p3186_p1, %p3185_p10 }
  0xbc   : > { %p3188_p11 = pnand %p3187_p3, %p3181_p13 }
  0xbe   : > { %3191 = shalt.err (!%p3188_p11)
}
  0xbf   : > { %s4103_s19 = smov 4   ;;  %s4104_s26 = smov 64  }
  0xc0   : > { %2767 = dma.hbm_to_vmem [thread:$0]  (!%p3635_p5), %s3629_s29, 256, %s3631_s2, %s3639_s3, %s4104_s26, %s4104_s26, %s4103_s19  }
  0xc1   : > { %p4105_p2 = scmp.ne.s32.totalorder %s4087_s21, 0 }
  0xc3   : > { %421 = sbr.rel (%p4105_p2) target bundleno = 1572 (0x624), region = 52 }
  0xca   : > { %s3673_s1 = sand.u32 1, %s3326_s14  }
  0xcb   : > { %s2463_s8 = sshll.u32 %s3673_s1, 4  ;;  %s424_s24 = scalar_lea.sflag [#allocation5], %s3673_s1 }
  0xcc   : > { %s3677_s12 = scalar_lea.vmem [#allocation4], %s2463_s8 }
  0xcd   : > { %3297 = dma.done.wait (%p3598_p6), %s424_s24, 256  }
  0xce   : > { %3299 = vsyncadd (%p3598_p6), %s424_s24, 4294967040  ;;  %p4106_p10 = scmp.ne.s32.totalorder %s4086_s20, 0 }
  0xd0   : > { %3301 = dma.done.wait (%p4106_p10), [#allocation8], 256  }
  0xd1   : > { %3303 = vsyncadd (%p4106_p10), [#allocation8], 4294967040 }
  0xd2   : > { %3305 = dma.done.wait (%p4106_p10), [#allocation11], 8192  }
  0xd3   : > { %3307 = vsyncadd (%p4106_p10), [#allocation11], 4294959104 }
  0xd4   : > { %3309 = dma.done.wait (%p4106_p10), [#allocation14], 1024  }
  0xd5   : > { %3311 = vsyncadd (%p4106_p10), [#allocation14], 4294966272  ;;  %s3695_s2 = scalar_lea.vmem [#allocation15], %s2463_s8  ;;  %p2470_p6 = scmp.ne.s32.totalorder %s3334_s16, 0 }
  0xd6   : > { %v491_v0 = vld [vmem:[#allocation7] sm:$0xff] (!%p2470_p6)  ;;  %v493_v1 = vld [vmem:[#allocation9] sm:$0xff] (!%p2470_p6) }
  0xd7   : > { %490 = sbr.rel (%p2470_p6) target bundleno = 222 (0xde), region = 80  ;;  %492 = vst [vmem:[#allocation16] sm:$0xff] (!%p2470_p6), %v491_v0  ;;  %494 = vst [vmem:[#allocation18] sm:$0xff] (!%p2470_p6), %v493_v1 }
  0xde PF: > { %v2850_v2 = vld [vmem:[#allocation10 + $0x4] ss:$16 sps:$4 sm:$0xff]   ;;  %v2852_v3 = vld [vmem:[#allocation10 + $0xc] ss:$16 sps:$4 sm:$0xff]   ;;  %v4079_v4 = vmov 0   ;;  %s3355_s21 = smov [#allocation16]  }
  0xdf   : > { %757 = vmatprep.mubr.bf16.mxu0 %v4079_v4  ;;  %810 = vmatprep.mubr.bf16.mxu1 %v4079_v4  ;;  %v2854_v5 = vld [vmem:[#allocation10] ss:$16 sps:$4 sm:$0xff]   ;;  %v2855_v6 = vld [vmem:[#allocation10 + $0x8] ss:$16 sps:$4 sm:$0xff]   ;;  %v2856_v7 = vld [vmem:[#allocation10 + $0x24] ss:$16 sps:$4 sm:$0xff]  }
  0xe0   : > { %725 = vmatprep.subr.bf16.mxu0 %v2850_v2  ;;  %778 = vmatprep.subr.bf16.mxu1 %v2852_v3  ;;  %v2858_v8 = vld [vmem:[#allocation10 + $0x2c] ss:$16 sps:$4 sm:$0xff]   ;;  %v2860_v9 = vld [vmem:[#allocation10 + $0x20] ss:$16 sps:$4 sm:$0xff]   ;;  %v2861_v10 = vld [vmem:[#allocation10 + $0x28] ss:$16 sps:$4 sm:$0xff]  }
  0xe1   : > { %726 = vmatpush1.bf16.msra.mxu0 %v2854_v5  ;;  %779 = vmatpush1.bf16.msra.mxu1 %v2855_v6  ;;  %v2862_v11 = vld [vmem:[#allocation10 + $0x44] ss:$16 sps:$4 sm:$0xff]   ;;  %v2864_v12 = vld [vmem:[#allocation10 + $0x4c] ss:$16 sps:$4 sm:$0xff]   ;;  %v2866_v13 = vld [vmem:[#allocation10 + $0x40] ss:$16 sps:$4 sm:$0xff]  }
  0xe2   : > { %727 = vmatprep.subr.bf16.mxu0 %v2856_v7  ;;  %780 = vmatprep.subr.bf16.mxu1 %v2858_v8  ;;  %v2867_v14 = vld [vmem:[#allocation10 + $0x48] ss:$16 sps:$4 sm:$0xff]   ;;  %v2868_v15 = vld [vmem:[#allocation10 + $0x64] ss:$16 sps:$4 sm:$0xff]   ;;  %v2870_v16 = vld [vmem:[#allocation10 + $0x6c] ss:$16 sps:$4 sm:$0xff]   ;;  %v533_v8 = vlaneseq }
  0xe3   : > { %v2872_v17 = vld [vmem:[#allocation10 + $0x60] ss:$16 sps:$4 sm:$0xff]   ;;  %v2873_v18 = vld [vmem:[#allocation10 + $0x68] ss:$16 sps:$4 sm:$0xff]   ;;  %v2874_v19 = vld [vmem:[#allocation10 + $0x84] ss:$16 sps:$4 sm:$0xff]  }
  0xe4   : > { %v2876_v20 = vld [vmem:[#allocation10 + $0x8c] ss:$16 sps:$4 sm:$0xff]   ;;  %v2878_v21 = vld [vmem:[#allocation10 + $0x80] ss:$16 sps:$4 sm:$0xff]   ;;  %v2879_v22 = vld [vmem:[#allocation10 + $0x88] ss:$16 sps:$4 sm:$0xff]  }
  0xe5   : > { %728 = vmatpush1.bf16.msra.mxu0 %v2860_v9  ;;  %781 = vmatpush1.bf16.msra.mxu1 %v2861_v10  ;;  %v2880_v23 = vld [vmem:[#allocation10 + $0xa4] ss:$16 sps:$4 sm:$0xff]   ;;  %v2882_v24 = vld [vmem:[#allocation10 + $0xac] ss:$16 sps:$4 sm:$0xff]   ;;  %v2884_v25 = vld [vmem:[#allocation10 + $0xa0] ss:$16 sps:$4 sm:$0xff]  }
  0xe6   : > { %729 = vmatprep.subr.bf16.mxu0 %v2862_v11  ;;  %782 = vmatprep.subr.bf16.mxu1 %v2864_v12  ;;  %v2885_v26 = vld [vmem:[#allocation10 + $0xa8] ss:$16 sps:$4 sm:$0xff]   ;;  %v2886_v27 = vld [vmem:[#allocation10 + $0xc4] ss:$16 sps:$4 sm:$0xff]   ;;  %v2888_v28 = vld [vmem:[#allocation10 + $0xcc] ss:$16 sps:$4 sm:$0xff]  }
  0xe7   : > { %v2890_v29 = vld [vmem:[#allocation10 + $0xc0] ss:$16 sps:$4 sm:$0xff]   ;;  %v2891_v30 = vld [vmem:[#allocation10 + $0xc8] ss:$16 sps:$4 sm:$0xff]   ;;  %v2892_v31 = vld [vmem:[#allocation10 + $0xe4] ss:$16 sps:$4 sm:$0xff]  }
  0xe8   : > { %v2894_v32 = vld [vmem:[#allocation10 + $0xec] ss:$16 sps:$4 sm:$0xff]   ;;  %v2896_v33 = vld [vmem:[#allocation10 + $0xe0] ss:$16 sps:$4 sm:$0xff]   ;;  %v2897_v34 = vld [vmem:[#allocation10 + $0xe8] ss:$16 sps:$4 sm:$0xff]  }
  0xe9   : > { %730 = vmatpush1.bf16.msra.mxu0 %v2866_v13  ;;  %783 = vmatpush1.bf16.msra.mxu1 %v2867_v14  ;;  %v3700_v35 = vld [vmem:[#allocation12 + $0x4] ss:$16 sps:$4 sm:$0xff]   ;;  %v3702_v36 = vld [vmem:[#allocation12 + $0xc] ss:$16 sps:$4 sm:$0xff]   ;;  %v3705_v38 = vld [vmem:[#allocation12] ss:$16 sps:$4 sm:$0xff]  }
  0xea   : > { %731 = vmatprep.subr.bf16.mxu0 %v2868_v15  ;;  %784 = vmatprep.subr.bf16.mxu1 %v2870_v16  ;;  %v2898_v37 = vld [vmem:[%s3677_s12] sm:$0xff]   ;;  %v3707_v39 = vld [vmem:[#allocation12 + $0x8] ss:$16 sps:$4 sm:$0xff]   ;;  %v3713_v41 = vld [vmem:[#allocation12 + $0x2c] ss:$16 sps:$4 sm:$0xff]   ;;  %v534_v9 = vshrl.u32 %v533_v8, 7 }
  0xeb   : > { %v3709_v40 = vld [vmem:[#allocation12 + $0x24] ss:$16 sps:$4 sm:$0xff]   ;;  %v3715_v42 = vld [vmem:[#allocation12 + $0x20] ss:$16 sps:$4 sm:$0xff]   ;;  %v3719_v43 = vld [vmem:[#allocation12 + $0x28] ss:$16 sps:$4 sm:$0xff]  }
  0xec   : > { %v3721_v44 = vld [vmem:[#allocation12 + $0x44] ss:$16 sps:$4 sm:$0xff]   ;;  %v3725_v45 = vld [vmem:[#allocation12 + $0x4c] ss:$16 sps:$4 sm:$0xff]   ;;  %v3732_v47 = vld [vmem:[#allocation12 + $0x40] ss:$16 sps:$4 sm:$0xff]  }
  0xed   : > { %732 = vmatpush1.bf16.msra.mxu0 %v2872_v17  ;;  %785 = vmatpush1.bf16.msra.mxu1 %v2873_v18  ;;  %v2935_v46 = vld [vmem:[%s3677_s12 + $0x8] sm:$0xff]   ;;  %v3738_v49 = vld [vmem:[#allocation12 + $0x64] ss:$16 sps:$4 sm:$0xff]   ;;  %v3744_v51 = vld [vmem:[#allocation12 + $0x60] ss:$16 sps:$4 sm:$0xff]   ;;  %v535_v10 = vsub.s32 0, %v534_v9 }
  0xee   : > { %733 = vmatprep.subr.bf16.mxu0 %v2874_v19  ;;  %786 = vmatprep.subr.bf16.mxu1 %v2876_v20  ;;  %v3734_v48 = vld [vmem:[#allocation12 + $0x48] ss:$16 sps:$4 sm:$0xff]   ;;  %v3740_v50 = vld [vmem:[#allocation12 + $0x6c] ss:$16 sps:$4 sm:$0xff]   ;;  %v3748_v53 = vld [vmem:[#allocation12 + $0x84] ss:$16 sps:$4 sm:$0xff]  }
  0xef   : > { %v3746_v52 = vld [vmem:[#allocation12 + $0x68] ss:$16 sps:$4 sm:$0xff]   ;;  %v3752_v54 = vld [vmem:[#allocation12 + $0x8c] ss:$16 sps:$4 sm:$0xff]   ;;  %v3754_v55 = vld [vmem:[#allocation12 + $0x80] ss:$16 sps:$4 sm:$0xff]  }
  0xf0   : > { %v3756_v56 = vld [vmem:[#allocation12 + $0x88] ss:$16 sps:$4 sm:$0xff]   ;;  %v3760_v57 = vld [vmem:[#allocation12 + $0xa4] ss:$16 sps:$4 sm:$0xff]   ;;  %v3762_v58 = vld [vmem:[#allocation12 + $0xac] ss:$16 sps:$4 sm:$0xff]  }
  0xf1   : > { %734 = vmatpush1.bf16.msra.mxu0 %v2878_v21  ;;  %787 = vmatpush1.bf16.msra.mxu1 %v2879_v22  ;;  %v3770_v59 = vld [vmem:[#allocation12 + $0xa0] ss:$16 sps:$4 sm:$0xff]   ;;  %v3772_v60 = vld [vmem:[#allocation12 + $0xa8] ss:$16 sps:$4 sm:$0xff]   ;;  %v3776_v61 = vld [vmem:[#allocation12 + $0xc4] ss:$16 sps:$4 sm:$0xff]  }
  0xf2   : > { %735 = vmatprep.subr.bf16.mxu0 %v2880_v23  ;;  %788 = vmatprep.subr.bf16.mxu1 %v2882_v24  ;;  %v3778_v62 = vld [vmem:[#allocation12 + $0xcc] ss:$16 sps:$4 sm:$0xff]   ;;  %v3782_v63 = vld [vmem:[#allocation12 + $0xc0] ss:$16 sps:$4 sm:$0xff]   ;;  %v3784_v0 = vld [vmem:[#allocation12 + $0xc8] ss:$16 sps:$4 sm:$0xff]  }
  0xf3   : > { %v3788_v1 = vld [vmem:[#allocation12 + $0xe4] ss:$16 sps:$4 sm:$0xff]   ;;  %v3790_v2 = vld [vmem:[#allocation12 + $0xec] ss:$16 sps:$4 sm:$0xff]   ;;  %v3794_v3 = vld [vmem:[#allocation12 + $0xe0] ss:$16 sps:$4 sm:$0xff]  }
  0xf4   : > { %v3796_v5 = vld [vmem:[#allocation12 + $0xe8] ss:$16 sps:$4 sm:$0xff]   ;;  %v847_v6 = vld [vmem:[#allocation16] sm:$0xff]  ;;  %v543_v11 = vsub.s32 2, %v534_v9  ;;  %v547_v13 = vsub.s32 3, %v534_v9  ;;  %v539_v14 = vsub.s32 1, %v534_v9 }
  0xf5   : > { %736 = vmatpush1.bf16.msra.mxu0 %v2884_v25  ;;  %789 = vmatpush1.bf16.msra.mxu1 %v2885_v26  ;;  %v848_v7 = vpack.c.bf16 %v847_v6, %v847_v6  ;;  %v531_v12 = vld [vmem:[%s4061_s5] sm:$0xf]  ;;  %s2278_s22 = sshll.u32 %s3355_s21, 4  ;;  %p4122_p5 = scmp.ne.s32.totalorder %s4099_s30, 0  ;;  %s2279_s22 = int_to_ptr.vmem [resolvable:$true] %s2278_s22 }
  0xf6   : > { %737 = vmatprep.subr.bf16.mxu0 %v2886_v27  ;;  %790 = vmatprep.subr.bf16.mxu1 %v2888_v28  ;;  %v536_v15 = vrot.slane %v531_v12, %v535_v10  ;;  %v544_v16 = vrot.slane %v531_v12, %v543_v11  ;;  %v548_v19 = vrot.slane %v531_v12, %v547_v13  ;;  %s3192_s29 = scalar_lea.vmem %s2279_s22, 128  ;;  %p3199_p12 = scmp.lt.s32.totalorder %s2279_s22, %s2279_s22 }
  0xf7   : > { %v540_v22 = vrot.slane %v531_v12, %v539_v14  ;;  %p3193_p13 = scmp.ne.s32.totalorder %s2279_s22, %s3192_s29  ;;  %p3200_p0 = scmp.lt.s32.totalorder %s3192_s29, %s3192_s29 }
  0xf9   : > { %738 = vmatpush1.bf16.msra.mxu0 %v2890_v29  ;;  %791 = vmatpush1.bf16.msra.mxu1 %v2891_v30  ;;  %p3194_p7 = pnand %p3193_p13, %p4122_p5  ;;  %p3201_p8 = por %p3200_p0, %p3199_p12 }
  0xfa   : > { %739 = vmatprep.subr.bf16.mxu0 %v2892_v31  ;;  %792 = vmatprep.subr.bf16.mxu1 %v2894_v32 }
  0xfb   : > { %p3195_p4 = pneg %p3194_p7 }
  0xfd   : > { %740 = vmatpush1.bf16.msra.mxu0 %v2896_v33  ;;  %793 = vmatpush1.bf16.msra.mxu1 %v2897_v34  ;;  %p3202_p9 = pnand %p3201_p8, %p3195_p4 }
  0xfe   : > { %1042 = vmatprep.subr.bf16.mxu0 %v3700_v35  ;;  %1083 = vmatprep.subr.bf16.mxu1 %v3702_v36 }
 0x100   : > { %758 = vmatmul.mubr.bf16.vlgmr.msra.gmra.mrb[0].mxu0 %v2898_v37  ;;  %811 = vmatmul.mubr.bf16.vlgmr.msra.gmra.mrb[0].mxu1 %v2898_v37 }
 0x101   : > { %1043 = vmatpush1.bf16.msra.mxu0 %v3705_v38  ;;  %1084 = vmatpush1.bf16.msra.mxu1 %v3707_v39 }
 0x102   : > { %1044 = vmatprep.subr.bf16.mxu0 %v3709_v40  ;;  %1085 = vmatprep.subr.bf16.mxu1 %v3713_v41 }
 0x103   : > { %767 = vmatprep.mubr.bf16.mxu0 %v4079_v4  ;;  %820 = vmatprep.mubr.bf16.mxu1 %v4079_v4 }
 0x105   : > { %1045 = vmatpush1.bf16.msra.mxu0 %v3715_v42  ;;  %1086 = vmatpush1.bf16.msra.mxu1 %v3719_v43 }
 0x106   : > { %1046 = vmatprep.subr.bf16.mxu0 %v3721_v44  ;;  %1087 = vmatprep.subr.bf16.mxu1 %v3725_v45 }
 0x108   : > { %768 = vmatmul.mubr.bf16.gmra.mrb[4].mxu0 %v2935_v46  ;;  %821 = vmatmul.mubr.bf16.gmra.mrb[4].mxu1 %v2935_v46 }
 0x109   : > { %1047 = vmatpush1.bf16.msra.mxu0 %v3732_v47  ;;  %1088 = vmatpush1.bf16.msra.mxu1 %v3734_v48 }
 0x10a   : > { %1048 = vmatprep.subr.bf16.mxu0 %v3738_v49  ;;  %1089 = vmatprep.subr.bf16.mxu1 %v3740_v50 }
 0x10b   : > { %1074 = vmatprep.mubr.bf16.mxu0 %v4079_v4  ;;  %1115 = vmatprep.mubr.bf16.mxu1 %v4079_v4 }
 0x10d   : > { %1049 = vmatpush1.bf16.msra.mxu0 %v3744_v51  ;;  %1090 = vmatpush1.bf16.msra.mxu1 %v3746_v52 }
 0x10e   : > { %1050 = vmatprep.subr.bf16.mxu0 %v3748_v53  ;;  %1091 = vmatprep.subr.bf16.mxu1 %v3752_v54 }
 0x111   : > { %1051 = vmatpush1.bf16.msra.mxu0 %v3754_v55  ;;  %1092 = vmatpush1.bf16.msra.mxu1 %v3756_v56 }
 0x112   : > { %1052 = vmatprep.subr.bf16.mxu0 %v3760_v57  ;;  %1093 = vmatprep.subr.bf16.mxu1 %v3762_v58 }
 0x115   : > { %1053 = vmatpush1.bf16.msra.mxu0 %v3770_v59  ;;  %1094 = vmatpush1.bf16.msra.mxu1 %v3772_v60 }
 0x116   : > { %1054 = vmatprep.subr.bf16.mxu0 %v3776_v61  ;;  %1095 = vmatprep.subr.bf16.mxu1 %v3778_v62 }
 0x119   : > { %1055 = vmatpush1.bf16.msra.mxu0 %v3782_v63  ;;  %1096 = vmatpush1.bf16.msra.mxu1 %v3784_v0 }
 0x11a   : > { %1056 = vmatprep.subr.bf16.mxu0 %v3788_v1  ;;  %1097 = vmatprep.subr.bf16.mxu1 %v3790_v2 }
 0x11d   : > { %1057 = vmatpush1.bf16.msra.mxu0 %v3794_v3  ;;  %1098 = vmatpush1.bf16.msra.mxu1 %v3796_v5 }
 0x11e   : > { %1350 = vmatprep.subr.bf16.mxu0 %v3700_v35  ;;  %1391 = vmatprep.subr.bf16.mxu1 %v3702_v36 }
 0x120   : > { %1075 = vmatmul.mubr.bf16.vlgmr.msra.gmra.mrb[8].mxu0 %v848_v7  ;;  %1116 = vmatmul.mubr.bf16.vlgmr.msra.gmra.mrb[8].mxu1 %v848_v7 }
 0x121   : > { %1351 = vmatpush1.bf16.msra.mxu0 %v3705_v38  ;;  %1392 = vmatpush1.bf16.msra.mxu1 %v3707_v39 }
 0x122   : > { %1352 = vmatprep.subr.bf16.mxu0 %v3709_v40  ;;  %1393 = vmatprep.subr.bf16.mxu1 %v3713_v41 }
 0x123   : > { %1382 = vmatprep.mubr.bf16.mxu0 %v4079_v4  ;;  %1423 = vmatprep.mubr.bf16.mxu1 %v4079_v4 }
 0x125   : > { %1353 = vmatpush1.bf16.msra.mxu0 %v3715_v42  ;;  %1394 = vmatpush1.bf16.msra.mxu1 %v3719_v43 }
 0x126   : > { %1354 = vmatprep.subr.bf16.mxu0 %v3721_v44  ;;  %1395 = vmatprep.subr.bf16.mxu1 %v3725_v45 }
 0x129   : > { %1355 = vmatpush1.bf16.msra.mxu0 %v3732_v47  ;;  %1396 = vmatpush1.bf16.msra.mxu1 %v3734_v48 }
 0x12a   : > { %1356 = vmatprep.subr.bf16.mxu0 %v3738_v49  ;;  %1397 = vmatprep.subr.bf16.mxu1 %v3740_v50 }
 0x12d   : > { %1357 = vmatpush1.bf16.msra.mxu0 %v3744_v51  ;;  %1398 = vmatpush1.bf16.msra.mxu1 %v3746_v52 }
 0x12e   : > { %1358 = vmatprep.subr.bf16.mxu0 %v3748_v53  ;;  %1399 = vmatprep.subr.bf16.mxu1 %v3752_v54 }
 0x131   : > { %1359 = vmatpush1.bf16.msra.mxu0 %v3754_v55  ;;  %1400 = vmatpush1.bf16.msra.mxu1 %v3756_v56 }
 0x132   : > { %1360 = vmatprep.subr.bf16.mxu0 %v3760_v57  ;;  %1401 = vmatprep.subr.bf16.mxu1 %v3762_v58 }
 0x135   : > { %1361 = vmatpush1.bf16.msra.mxu0 %v3770_v59  ;;  %1402 = vmatpush1.bf16.msra.mxu1 %v3772_v60 }
 0x136   : > { %1362 = vmatprep.subr.bf16.mxu0 %v3776_v61  ;;  %1403 = vmatprep.subr.bf16.mxu1 %v3778_v62 }
 0x139   : > { %1363 = vmatpush1.bf16.msra.mxu0 %v3782_v63  ;;  %1404 = vmatpush1.bf16.msra.mxu1 %v3784_v0 }
 0x13a   : > { %1364 = vmatprep.subr.bf16.mxu0 %v3788_v1  ;;  %1405 = vmatprep.subr.bf16.mxu1 %v3790_v2 }
 0x13d   : > { %1365 = vmatpush1.bf16.msra.mxu0 %v3794_v3  ;;  %1406 = vmatpush1.bf16.msra.mxu1 %v3796_v5 }
 0x13e   : > { %1660 = vmatprep.subr.bf16.mxu0 %v3700_v35  ;;  %1701 = vmatprep.subr.bf16.mxu1 %v3702_v36 }
 0x1d3   : > { %v759_v17 = vpop.f32.mrb[0].mxu0  ;;  %v812_v18 = vpop.f32.mrb[0].mxu1 }
 0x1d4   : > { %v761_v20 = vpop.f32.mrb[1].mxu0  ;;  %v814_v21 = vpop.f32.mrb[1].mxu1 }
 0x1d5   : > { %v763_v23 = vpop.f32.mrb[2].mxu0  ;;  %v816_v24 = vpop.f32.mrb[2].mxu1 }
 0x1d6   : > { %v3841_v25 = vadd.f32 %v763_v23, %v536_v15  ;;  %v765_v26 = vpop.f32.mrb[3].mxu0  ;;  %v3843_v27 = vadd.f32 %v816_v24, %v544_v16  ;;  %v818_v28 = vpop.f32.mrb[3].mxu1  ;;  %v760_v24 = vadd.f32 %v759_v17, %v536_v15 }
 0x1d7   : > { %v3845_v29 = vadd.f32 %v765_v26, %v540_v22  ;;  %v3847_v30 = vadd.f32 %v818_v28, %v548_v19  ;;  %v813_v26 = vadd.f32 %v812_v18, %v544_v16  ;;  %v762_v28 = vadd.f32 %v761_v20, %v540_v22 }
 0x1db   : > { %v769_v31 = vpop.f32.mrb[4].mxu0  ;;  %v822_v32 = vpop.f32.mrb[4].mxu1 }
 0x1dc   : > { %v3849_v33 = vadd.f32 %v769_v31, %v536_v15  ;;  %v771_v34 = vpop.f32.mrb[5].mxu0  ;;  %v3851_v37 = vadd.f32 %v822_v32, %v544_v16  ;;  %v824_v46 = vpop.f32.mrb[5].mxu1  ;;  %v815_v31 = vadd.f32 %v814_v21, %v548_v19 }
 0x1dd   : > { %v3853_v6 = vadd.f32 %v771_v34, %v540_v22  ;;  %v773_v7 = vpop.f32.mrb[6].mxu0  ;;  %v3855_v8 = vadd.f32 %v824_v46, %v548_v19  ;;  %v826_v9 = vpop.f32.mrb[6].mxu1 }
 0x1de   : > { %4107 = vst [vmem:[#allocation25_spill] sm:$0xff] %v3849_v33  ;;  %4108 = vst [vmem:[#allocation26_spill] sm:$0xff] %v3851_v37  ;;  %v3857_v10 = vadd.f32 %v773_v7, %v536_v15  ;;  %v775_v11 = vpop.f32.mrb[7].mxu0  ;;  %v3859_v12 = vadd.f32 %v826_v9, %v544_v16  ;;  %v828_v13 = vpop.f32.mrb[7].mxu1 }
 0x1df   : > { %4109 = vst [vmem:[#allocation27_spill] sm:$0xff] %v3853_v6  ;;  %4110 = vst [vmem:[#allocation28_spill] sm:$0xff] %v3855_v8  ;;  %v3861_v14 = vadd.f32 %v775_v11, %v540_v22  ;;  %v3863_v23 = vadd.f32 %v828_v13, %v548_v19 }
 0x1e0   : > { %4111 = vst [vmem:[#allocation29_spill] sm:$0xff] %v3857_v10  ;;  %4112 = vst [vmem:[#allocation30_spill] sm:$0xff] %v3859_v12 }
 0x1e1   : > { %4113 = vst [vmem:[#allocation31_spill] sm:$0xff] %v3861_v14 }
 0x1f3   : > { %v1076_v32 = vpop.f32.mrb[8].mxu0  ;;  %v1117_v34 = vpop.f32.mrb[8].mxu1 }
 0x1f4   : > { %v1128_v4 = vadd.f32 %v1076_v32, %v760_v24  ;;  %v1130_v46 = vadd.f32 %v1117_v34, %v813_v26  ;;  %v1078_v8 = vpop.f32.mrb[9].mxu0  ;;  %v1119_v6 = vpop.f32.mrb[9].mxu1  ;;  %v4114_v26 = vmov 0  }
 0x1f5   : > { %v1129_v7 = vadd.f32 %v1078_v8, %v762_v28  ;;  %v1131_v10 = vadd.f32 %v1119_v6, %v815_v31  ;;  %v1080_v37 = vpop.f32.mrb[10].mxu0  ;;  %v1121_v9 = vpop.f32.mrb[10].mxu1 }
 0x1f6   : > { %v2537_v12 = vmul.f32 -1.442695, %v1128_v4  ;;  %v1081_v33 = vpop.f32.mrb[11].mxu0  ;;  %v1122_v11 = vpop.f32.mrb[11].mxu1  ;;  %v2539_v15 = vmul.f32 -1.442695, %v1130_v46 }
 0x1f7   : > { %v2538_v14 = vmul.f32 -1.442695, %v1129_v7  ;;  %v849_v37 = vld [vmem:[#allocation18] sm:$0xff] }
 0x1f8   : > { %2958 = vpow2.f32 %v2537_v12 }
 0x1f9   : > { %2960 = vpow2.f32 %v2538_v14 }
 0x1fa   : > { %2962 = vtanh.f32 %v1131_v10 }
 0x1fb   : > { %2964 = vpow2.f32 %v2539_v15 }
 0x202   : > { %v2959_v16 = vpop.eup %2958 }
 0x203   : > { %v1141_v17 = vadd.f32 1.0, %v2959_v16  ;;  %v2961_v18 = vpop.eup %2960 }
 0x204   : > { %v1142_v19 = vadd.f32 1.0, %v2961_v18  ;;  %v2963_v20 = vpop.eup %2962 }
 0x205   : > { %2966 = vrcp.f32 %v1141_v17  ;;  %v2965_v21 = vpop.eup %2964 }
 0x206   : > { %2968 = vrcp.f32 %v1142_v19  ;;  %v1143_v33 = vadd.f32 1.0, %v2965_v21 }
 0x208   : > { %2970 = vrcp.f32 %v1143_v33 }
 0x20f   : > { %v2967_v22 = vpop.eup %2966 }
 0x210   : > { %v1152_v6 = vmul.f32 %v2967_v22, %v2963_v20  ;;  %v2969_v4 = vpop.eup %2968 }
 0x211   : > { %v1151_v8 = vmul.f32 %v2969_v4, %v849_v37 }
 0x212   : > { %v2971_v12 = vpop.eup %2970 }
 0x213   : > { %v3865_v13 = vadd.f32 %v1152_v6, %v1151_v8 }
 0x215   : > { %2972 = vtanh.f32 %v3865_v13 }
 0x21f   : > { %v2973_v10 = vpop.eup %2972 }
 0x220   : > { %v1155_v14 = vmul.f32 %v2973_v10, %v2971_v12 }
 0x222   : > { %v1156_v24 = vpack.c.bf16 %v1155_v14, %v1155_v14 }
 0x224   : > { %1157 = vst [vmem:[#allocation3] sm:$0xf] %v1156_v24  ;;  %1383 = vmatmul.mubr.bf16.vlgmr.msra.gmra.mrb[12].mxu0 %v1156_v24  ;;  %1424 = vmatmul.mubr.bf16.vlgmr.msra.gmra.mrb[12].mxu1 %v1156_v24 }
 0x225   : > { %1661 = vmatpush1.bf16.msra.mxu0 %v3705_v38  ;;  %1702 = vmatpush1.bf16.msra.mxu1 %v3707_v39 }
 0x226   : > { %1662 = vmatprep.subr.bf16.mxu0 %v3709_v40  ;;  %1703 = vmatprep.subr.bf16.mxu1 %v3713_v41 }
 0x227   : > { %1692 = vmatprep.mubr.bf16.mxu0 %v4114_v26  ;;  %1733 = vmatprep.mubr.bf16.mxu1 %v4114_v26 }
 0x229   : > { %1663 = vmatpush1.bf16.msra.mxu0 %v3715_v42  ;;  %1704 = vmatpush1.bf16.msra.mxu1 %v3719_v43 }
 0x22a   : > { %1664 = vmatprep.subr.bf16.mxu0 %v3721_v44  ;;  %1705 = vmatprep.subr.bf16.mxu1 %v3725_v45 }
 0x22d   : > { %1665 = vmatpush1.bf16.msra.mxu0 %v3732_v47  ;;  %1706 = vmatpush1.bf16.msra.mxu1 %v3734_v48 }
 0x22e   : > { %1666 = vmatprep.subr.bf16.mxu0 %v3738_v49  ;;  %1707 = vmatprep.subr.bf16.mxu1 %v3740_v50 }
 0x231   : > { %1667 = vmatpush1.bf16.msra.mxu0 %v3744_v51  ;;  %1708 = vmatpush1.bf16.msra.mxu1 %v3746_v52 }
 0x232   : > { %1668 = vmatprep.subr.bf16.mxu0 %v3748_v53  ;;  %1709 = vmatprep.subr.bf16.mxu1 %v3752_v54 }
 0x235   : > { %1669 = vmatpush1.bf16.msra.mxu0 %v3754_v55  ;;  %1710 = vmatpush1.bf16.msra.mxu1 %v3756_v56 }
 0x236   : > { %1670 = vmatprep.subr.bf16.mxu0 %v3760_v57  ;;  %1711 = vmatprep.subr.bf16.mxu1 %v3762_v58 }
 0x239   : > { %1671 = vmatpush1.bf16.msra.mxu0 %v3770_v59  ;;  %1712 = vmatpush1.bf16.msra.mxu1 %v3772_v60 }
 0x23a   : > { %1672 = vmatprep.subr.bf16.mxu0 %v3776_v61  ;;  %1713 = vmatprep.subr.bf16.mxu1 %v3778_v62 }
 0x23d   : > { %1673 = vmatpush1.bf16.msra.mxu0 %v3782_v63  ;;  %1714 = vmatpush1.bf16.msra.mxu1 %v3784_v0 }
 0x23e   : > { %1674 = vmatprep.subr.bf16.mxu0 %v3788_v1  ;;  %1715 = vmatprep.subr.bf16.mxu1 %v3790_v2 }
 0x241   : > { %1675 = vmatpush1.bf16.msra.mxu0 %v3794_v3  ;;  %1716 = vmatpush1.bf16.msra.mxu1 %v3796_v5 }
 0x242   : > { %1970 = vmatprep.subr.bf16.mxu0 %v3700_v35  ;;  %2011 = vmatprep.subr.bf16.mxu1 %v3702_v36 }
 0x2f7   : > { %v1384_v28 = vpop.f32.mrb[12].mxu0  ;;  %v1425_v31 = vpop.f32.mrb[12].mxu1 }
 0x2f8   : > { %v1437_v32 = vadd.f32 %v1384_v28, %v3841_v25  ;;  %v1439_v34 = vadd.f32 %v1425_v31, %v3843_v27  ;;  %v1386_v46 = vpop.f32.mrb[13].mxu0  ;;  %v1427_v7 = vpop.f32.mrb[13].mxu1 }
 0x2f9   : > { %v1438_v9 = vadd.f32 %v1386_v46, %v3845_v29  ;;  %v1440_v11 = vadd.f32 %v1427_v7, %v3847_v30  ;;  %v1388_v15 = vpop.f32.mrb[14].mxu0  ;;  %v1429_v16 = vpop.f32.mrb[14].mxu1  ;;  %v2949_v46 = vld [vmem:[#allocation13] sm:$0xff]   ;;  %v2950_v7 = vld [vmem:[#allocation13 + $0x8] sm:$0xff]  }
 0x2fa   : > { %v2572_v17 = vmul.f32 -1.442695, %v1437_v32  ;;  %v1389_v18 = vpop.f32.mrb[15].mxu0  ;;  %v1430_v19 = vpop.f32.mrb[15].mxu1  ;;  %v2574_v36 = vmul.f32 -1.442695, %v1439_v34 }
 0x2fb   : > { %v2573_v35 = vmul.f32 -1.442695, %v1438_v9  ;;  %v2951_v9 = vld [vmem:[#allocation13 + $0x10] sm:$0xff]   ;;  %v2953_v15 = vld [vmem:[#allocation13 + $0x20] sm:$0xff]   ;;  %v2954_v16 = vld [vmem:[#allocation13 + $0x28] sm:$0xff]  }
 0x2fc   : > { %2974 = vpow2.f32 %v2572_v17  ;;  %v2955_v17 = vld [vmem:[#allocation13 + $0x30] sm:$0xff]   ;;  %v2956_v18 = vld [vmem:[#allocation13 + $0x38] sm:$0xff]  }
 0x2fd   : > { %2976 = vpow2.f32 %v2573_v35 }
 0x2fe   : > { %2978 = vtanh.f32 %v1440_v11  ;;  %v2952_v11 = vld [vmem:[#allocation13 + $0x18] sm:$0xff]  }
 0x2ff   : > { %2980 = vpow2.f32 %v2574_v36  ;;  %v4119_v36 = vld [vmem:[#allocation29_spill] sm:$0xff] }
 0x306   : > { %v2975_v20 = vpop.eup %2974 }
 0x307   : > { %v1450_v21 = vadd.f32 1.0, %v2975_v20  ;;  %v2977_v25 = vpop.eup %2976 }
 0x308   : > { %v1451_v27 = vadd.f32 1.0, %v2977_v25  ;;  %v2979_v29 = vpop.eup %2978 }
 0x309   : > { %2982 = vrcp.f32 %v1450_v21  ;;  %v2981_v22 = vpop.eup %2980  ;;  %v4120_v21 = vld [vmem:[#allocation30_spill] sm:$0xff] }
 0x30a   : > { %2984 = vrcp.f32 %v1451_v27  ;;  %v1452_v4 = vadd.f32 1.0, %v2981_v22  ;;  %v4121_v22 = vld [vmem:[#allocation31_spill] sm:$0xff] }
 0x30c   : > { %2986 = vrcp.f32 %v1452_v4 }
 0x313   : > { %v2983_v30 = vpop.eup %2982 }
 0x314   : > { %v1461_v37 = vmul.f32 %v2983_v30, %v2979_v29  ;;  %v2985_v6 = vpop.eup %2984 }
 0x315   : > { %v1460_v33 = vmul.f32 %v2985_v6, %v3865_v13 }
 0x316   : > { %v2987_v12 = vpop.eup %2986 }
 0x317   : > { %v3907_v8 = vadd.f32 %v1461_v37, %v1460_v33 }
 0x319   : > { %2988 = vtanh.f32 %v3907_v8 }
 0x323   : > { %v2989_v10 = vpop.eup %2988 }
 0x324   : > { %v1464_v14 = vmul.f32 %v2989_v10, %v2987_v12 }
 0x326   : > { %v1465_v24 = vpack.c.bf16 %v1464_v14, %v1464_v14 }
 0x328   : > { %1467 = vst [vmem:[#allocation3 + $0x4] sm:$0xf] %v1465_v24  ;;  %1693 = vmatmul.mubr.bf16.vlgmr.msra.gmra.mrb[16].mxu0 %v1465_v24  ;;  %1734 = vmatmul.mubr.bf16.vlgmr.msra.gmra.mrb[16].mxu1 %v1465_v24 }
 0x329   : > { %1971 = vmatpush1.bf16.msra.mxu0 %v3705_v38  ;;  %2012 = vmatpush1.bf16.msra.mxu1 %v3707_v39 }
 0x32a   : > { %1972 = vmatprep.subr.bf16.mxu0 %v3709_v40  ;;  %2013 = vmatprep.subr.bf16.mxu1 %v3713_v41  ;;  %v4115_v40 = vld [vmem:[#allocation25_spill] sm:$0xff] }
 0x32b   : > { %2002 = vmatprep.mubr.bf16.mxu0 %v4114_v26  ;;  %2043 = vmatprep.mubr.bf16.mxu1 %v4114_v26 }
 0x32d   : > { %1973 = vmatpush1.bf16.msra.mxu0 %v3715_v42  ;;  %2014 = vmatpush1.bf16.msra.mxu1 %v3719_v43  ;;  %v4116_v42 = vld [vmem:[#allocation26_spill] sm:$0xff] }
 0x32e   : > { %1974 = vmatprep.subr.bf16.mxu0 %v3721_v44  ;;  %2015 = vmatprep.subr.bf16.mxu1 %v3725_v45 }
 0x32f   : > { %v2948_v34 = vld [vmem:[#allocation3] sm:$0xff]  }
 0x331   : > { %1975 = vmatpush1.bf16.msra.mxu0 %v3732_v47  ;;  %2016 = vmatpush1.bf16.msra.mxu1 %v3734_v48  ;;  %v4117_v47 = vld [vmem:[#allocation27_spill] sm:$0xff] }
 0x332   : > { %1976 = vmatprep.subr.bf16.mxu0 %v3738_v49  ;;  %2017 = vmatprep.subr.bf16.mxu1 %v3740_v50  ;;  %v4118_v49 = vld [vmem:[#allocation28_spill] sm:$0xff] }
 0x335   : > { %1977 = vmatpush1.bf16.msra.mxu0 %v3744_v51  ;;  %2018 = vmatpush1.bf16.msra.mxu1 %v3746_v52 }
 0x336   : > { %1978 = vmatprep.subr.bf16.mxu0 %v3748_v53  ;;  %2019 = vmatprep.subr.bf16.mxu1 %v3752_v54 }
 0x339   : > { %1979 = vmatpush1.bf16.msra.mxu0 %v3754_v55  ;;  %2020 = vmatpush1.bf16.msra.mxu1 %v3756_v56 }
 0x33a   : > { %1980 = vmatprep.subr.bf16.mxu0 %v3760_v57  ;;  %2021 = vmatprep.subr.bf16.mxu1 %v3762_v58 }
 0x33d   : > { %1981 = vmatpush1.bf16.msra.mxu0 %v3770_v59  ;;  %2022 = vmatpush1.bf16.msra.mxu1 %v3772_v60 }
 0x33e   : > { %1982 = vmatprep.subr.bf16.mxu0 %v3776_v61  ;;  %2023 = vmatprep.subr.bf16.mxu1 %v3778_v62 }
 0x341   : > { %1983 = vmatpush1.bf16.msra.mxu0 %v3782_v63  ;;  %2024 = vmatpush1.bf16.msra.mxu1 %v3784_v0 }
 0x342   : > { %1984 = vmatprep.subr.bf16.mxu0 %v3788_v1  ;;  %2025 = vmatprep.subr.bf16.mxu1 %v3790_v2 }
 0x345   : > { %1985 = vmatpush1.bf16.msra.mxu0 %v3794_v3  ;;  %2026 = vmatpush1.bf16.msra.mxu1 %v3796_v5 }
 0x346   : > { %2696 = vmatprep.subr.bf16.mxu0 %v2949_v46 }
 0x3fb   : > { %v1694_v38 = vpop.f32.mrb[16].mxu0  ;;  %v1735_v39 = vpop.f32.mrb[16].mxu1 }
 0x3fc   : > { %v1747_v41 = vadd.f32 %v1694_v38, %v4115_v40  ;;  %v1749_v43 = vadd.f32 %v1735_v39, %v4116_v42  ;;  %v1696_v44 = vpop.f32.mrb[17].mxu0  ;;  %v1737_v45 = vpop.f32.mrb[17].mxu1 }
 0x3fd   : > { %v1748_v48 = vadd.f32 %v1696_v44, %v4117_v47  ;;  %v1750_v50 = vadd.f32 %v1737_v45, %v4118_v49  ;;  %v1698_v51 = vpop.f32.mrb[18].mxu0  ;;  %v1739_v52 = vpop.f32.mrb[18].mxu1 }
 0x3fe   : > { %v2607_v53 = vmul.f32 -1.442695, %v1747_v41  ;;  %v1699_v54 = vpop.f32.mrb[19].mxu0  ;;  %v1740_v55 = vpop.f32.mrb[19].mxu1  ;;  %v2609_v57 = vmul.f32 -1.442695, %v1749_v43 }
 0x3ff   : > { %v2608_v56 = vmul.f32 -1.442695, %v1748_v48 }
 0x400   : > { %2990 = vpow2.f32 %v2607_v53 }
 0x401   : > { %2992 = vpow2.f32 %v2608_v56 }
 0x402   : > { %2994 = vtanh.f32 %v1750_v50 }
 0x403   : > { %2996 = vpow2.f32 %v2609_v57 }
 0x40a   : > { %v2991_v58 = vpop.eup %2990 }
 0x40b   : > { %v1760_v59 = vadd.f32 1.0, %v2991_v58  ;;  %v2993_v60 = vpop.eup %2992 }
 0x40c   : > { %v1761_v61 = vadd.f32 1.0, %v2993_v60  ;;  %v2995_v62 = vpop.eup %2994 }
 0x40d   : > { %2998 = vrcp.f32 %v1760_v59  ;;  %v2997_v63 = vpop.eup %2996 }
 0x40e   : > { %3000 = vrcp.f32 %v1761_v61  ;;  %v1762_v3 = vadd.f32 1.0, %v2997_v63 }
 0x410   : > { %3002 = vrcp.f32 %v1762_v3 }
 0x417   : > { %v2999_v0 = vpop.eup %2998 }
 0x418   : > { %v1771_v1 = vmul.f32 %v2999_v0, %v2995_v62  ;;  %v3001_v2 = vpop.eup %3000 }
 0x419   : > { %v1770_v5 = vmul.f32 %v3001_v2, %v3907_v8 }
 0x41a   : > { %v3003_v26 = vpop.eup %3002 }
 0x41b   : > { %v3947_v13 = vadd.f32 %v1771_v1, %v1770_v5 }
 0x41d   : > { %3004 = vtanh.f32 %v3947_v13 }
 0x427   : > { %v3005_v28 = vpop.eup %3004 }
 0x428   : > { %v1774_v31 = vmul.f32 %v3005_v28, %v3003_v26 }
 0x42a   : > { %v1775_v32 = vpack.c.bf16 %v1774_v31, %v1774_v31 }
 0x42c   : > { %1777 = vst [vmem:[#allocation3 + $0x8] sm:$0xf] %v1775_v32  ;;  %2003 = vmatmul.mubr.bf16.vlgmr.msra.gmra.mrb[20].mxu0 %v1775_v32  ;;  %2044 = vmatmul.mubr.bf16.vlgmr.msra.gmra.mrb[20].mxu1 %v1775_v32 }
 0x42d   : > { %2712 = vmatprep.mubr.bf16.mxu0 %v2948_v34  ;;  %2697 = vmatpush3.bf16.msra.mxu0 %v2949_v46 }
 0x42e   : > { %2698 = vmatprep.subr.bf16.mxu0 %v2950_v7 }
 0x431   : > { %2699 = vmatpush3.bf16.msra.mxu0 %v2950_v7 }
 0x432   : > { %2700 = vmatprep.subr.bf16.mxu0 %v2951_v9 }
 0x435   : > { %2701 = vmatpush3.bf16.msra.mxu0 %v2951_v9 }
 0x436   : > { %2702 = vmatprep.subr.bf16.mxu0 %v2952_v11 }
 0x439   : > { %2703 = vmatpush3.bf16.msra.mxu0 %v2952_v11 }
 0x43a   : > { %2704 = vmatprep.subr.bf16.mxu0 %v2953_v15 }
 0x43d   : > { %2705 = vmatpush3.bf16.msra.mxu0 %v2953_v15 }
 0x43e   : > { %2706 = vmatprep.subr.bf16.mxu0 %v2954_v16 }
 0x441   : > { %2707 = vmatpush3.bf16.msra.mxu0 %v2954_v16 }
 0x442   : > { %2708 = vmatprep.subr.bf16.mxu0 %v2955_v17 }
 0x445   : > { %2709 = vmatpush3.bf16.msra.mxu0 %v2955_v17 }
 0x446   : > { %2710 = vmatprep.subr.bf16.mxu0 %v2956_v18 }
 0x449   : > { %2711 = vmatpush3.bf16.msra.mxu0 %v2956_v18 }
 0x4ff   : > { %v2004_v19 = vpop.f32.mrb[20].mxu0  ;;  %v2045_v35 = vpop.f32.mrb[20].mxu1 }
 0x500   : > { %v2057_v20 = vadd.f32 %v2004_v19, %v4119_v36  ;;  %v2059_v25 = vadd.f32 %v2045_v35, %v4120_v21  ;;  %v2006_v27 = vpop.f32.mrb[21].mxu0  ;;  %v2047_v29 = vpop.f32.mrb[21].mxu1 }
 0x501   : > { %v2058_v30 = vadd.f32 %v2006_v27, %v4121_v22  ;;  %v2060_v37 = vadd.f32 %v2047_v29, %v3863_v23  ;;  %v2008_v6 = vpop.f32.mrb[22].mxu0  ;;  %v2049_v4 = vpop.f32.mrb[22].mxu1 }
 0x502   : > { %v2642_v33 = vmul.f32 -1.442695, %v2057_v20  ;;  %v2009_v8 = vpop.f32.mrb[23].mxu0  ;;  %v2050_v12 = vpop.f32.mrb[23].mxu1  ;;  %v2644_v14 = vmul.f32 -1.442695, %v2059_v25 }
 0x503   : > { %v2643_v10 = vmul.f32 -1.442695, %v2058_v30 }
 0x504   : > { %3006 = vpow2.f32 %v2642_v33 }
 0x505   : > { %3008 = vpow2.f32 %v2643_v10 }
 0x506   : > { %3010 = vtanh.f32 %v2060_v37 }
 0x507   : > { %3012 = vpow2.f32 %v2644_v14 }
 0x50e   : > { %v3007_v24 = vpop.eup %3006 }
 0x50f   : > { %v2070_v38 = vadd.f32 1.0, %v3007_v24  ;;  %v3009_v39 = vpop.eup %3008 }
 0x510   : > { %v2071_v40 = vadd.f32 1.0, %v3009_v39  ;;  %v3011_v41 = vpop.eup %3010 }
 0x511   : > { %3014 = vrcp.f32 %v2070_v38  ;;  %v3013_v42 = vpop.eup %3012 }
 0x512   : > { %3016 = vrcp.f32 %v2071_v40  ;;  %v2072_v45 = vadd.f32 1.0, %v3013_v42 }
 0x514   : > { %3018 = vrcp.f32 %v2072_v45 }
 0x51b   : > { %v3015_v23 = vpop.eup %3014 }
 0x51c   : > { %v2081_v43 = vmul.f32 %v3015_v23, %v3011_v41  ;;  %v3017_v44 = vpop.eup %3016 }
 0x51d   : > { %v2080_v47 = vmul.f32 %v3017_v44, %v3947_v13 }
 0x51e   : > { %v3019_v49 = vpop.eup %3018 }
 0x51f   : > { %v2082_v48 = vadd.f32 %v2081_v43, %v2080_v47 }
 0x521   : > { %3020 = vtanh.f32 %v2082_v48  ;;  %2090 = vst [vmem:[#allocation18] sm:$0xff] %v2082_v48 }
 0x52b   : > { %v3021_v50 = vpop.eup %3020 }
 0x52c   : > { %v2084_v51 = vmul.f32 %v3021_v50, %v3019_v49 }
 0x52e   : > { %v2085_v52 = vpack.c.bf16 %v2084_v51, %v2084_v51 }
 0x530   : > { %2087 = vst [vmem:[#allocation3 + $0xc] sm:$0xf] %v2085_v52  ;;  %v2088_v53 = vunpack.c.l.bf16 %v2085_v52 }
 0x532   : > { %2089 = vst [vmem:[#allocation16] sm:$0xff] %v2088_v53 }
 0x537   : > { %v2957_v54 = vld [vmem:[#allocation3 + $0x8] sm:$0xff]  }
 0x538   : > { %2713 = vmatmul.mubr.bf16.vlgmr.msra.gmra.mrb[24].mxu0 %v2957_v54 }
 0x539   : > { %3205 = shalt.err (!%p3202_p9)
}
 0x53a   : > { %s3206_s19 = scalar_lea.hbm %s4065_s9, 128 }
 0x53b   : > { %p3207_p1 = scmp.ne.s32.totalorder %s4065_s9, %s3206_s19  ;;  %p3212_p2 = scmp.lt.u32.totalorder %s3206_s19, %s4065_s9 }
 0x53d   : > { %p3208_p3 = pnand %p3207_p1, %p4122_p5 }
 0x53f   : > { %p3209_p11 = pneg %p3208_p3 }
 0x541   : > { %p3214_p10 = pnand %p3212_p2, %p3209_p11 }
 0x543   : > { %3217 = shalt.err (!%p3214_p10)
}
 0x544   : > { %2740 = dma.vmem_to_hbm [thread:$0]  (%p4122_p5), %s2279_s22, 128, %s4065_s9, [#allocation17]  }
 0x545   : > { %s3356_s21 = smov [#allocation18]  }
 0x546   : > { %s2291_s29 = sshll.u32 %s3356_s21, 4  ;;  %s2292_s29 = int_to_ptr.vmem [resolvable:$true] %s2291_s29 }
 0x547   : > { %s3218_s27 = scalar_lea.vmem %s2292_s29, 128  ;;  %p3225_p4 = scmp.lt.s32.totalorder %s2292_s29, %s2292_s29 }
 0x548   : > { %p3219_p6 = scmp.ne.s32.totalorder %s2292_s29, %s3218_s27  ;;  %p3226_p12 = scmp.lt.s32.totalorder %s3218_s27, %s3218_s27 }
 0x54a   : > { %p3220_p13 = pnand %p3219_p6, %p4122_p5  ;;  %p3227_p0 = por %p3226_p12, %p3225_p4 }
 0x54c   : > { %p3221_p7 = pneg %p3220_p13 }
 0x54e   : > { %p3228_p8 = pnand %p3227_p0, %p3221_p7 }
 0x550   : > { %3231 = shalt.err (!%p3228_p8)
}
 0x551   : > { %s3232_s26 = scalar_lea.hbm %s4066_s10, 128 }
 0x552   : > { %p3233_p9 = scmp.ne.s32.totalorder %s4066_s10, %s3232_s26  ;;  %p3238_p11 = scmp.lt.u32.totalorder %s3232_s26, %s4066_s10 }
 0x554   : > { %p3234_p1 = pnand %p3233_p9, %p4122_p5 }
 0x556   : > { %p3235_p3 = pneg %p3234_p1 }
 0x558   : > { %p3240_p2 = pnand %p3238_p11, %p3235_p3 }
 0x55a   : > { %3243 = shalt.err (!%p3240_p2)
}
 0x55b   : > { %2742 = dma.vmem_to_hbm [thread:$0]  (%p4122_p5), %s2292_s29, 128, %s4066_s10, [#allocation17]  }
 0x55c   : > { %s4123_s23 = sld [smem:[#allocation35_spill]]  ;;  %s2674_s19 = sshll.u32 %s3334_s16, 8 }
 0x55d   : > { %s2262_s26 = sshll.u32 %s3695_s2, 4  ;;  %s4124_s22 = sld [smem:[#allocation36_spill]]  ;;  %s4001_s26 = int_to_ptr.vmem [resolvable:$true] %s2262_s26 }
 0x55e   : > { %s2248_s16 = scalar_lea.sflag [#allocation6], %s3673_s1  ;;  %s3244_s12 = scalar_lea.vmem %s4001_s26, 256 }
 0x55f   : > { %p3245_p10 = scmp.ne.s32.totalorder %s4001_s26, %s3244_s12  ;;  %p4125_p6 = scmp.ne.s32.totalorder %s4100_s25, 0 }
 0x560   : > { %s3357_s3 = smov [#allocation15]  }
 0x561   : > { %p3246_p13 = pnand %p3245_p10, %p4125_p6  ;;  %s3248_s20 = sshll.u32 %s3357_s3, 4  ;;  %s3249_s20 = int_to_ptr.vmem [resolvable:$false] %s3248_s20 }
 0x562   : > { %v2645_v56 = vld [vmem:[%s4123_s23] ss:$0 sm:$0xff]  ;;  %s3250_s21 = scalar_lea.vmem %s3249_s20, 512  ;;  %p3251_p4 = scmp.lt.s32.totalorder %s4001_s26, %s3249_s20 }
 0x563   : > { %s3999_s24 = scalar_lea.hbm %s4124_s22, %s2674_s19  ;;  %p3247_p7 = pneg %p3246_p13 }
 0x564   : > { %p3252_p12 = scmp.lt.s32.totalorder %s3250_s21, %s3244_s12 }
 0x566   : > { %p3253_p0 = por %p3252_p12, %p3251_p4 }
 0x568   : > { %p3254_p8 = pnand %p3253_p0, %p3247_p7 }
 0x60b   : > { %v2714_v55 = vpop.f32.mrb[24].mxu0 }
 0x60c   : > { %v2212_v57 = vpop.f32.mrb[25].mxu0  ;;  %v2221_v59 = vadd.f32 %v2714_v55, %v2645_v56 }
 0x60d   : > { %v2715_v58 = vpop.f32.mrb[26].mxu0  ;;  %v2213_v62 = vadd.f32 %v2645_v56, %v2212_v57 }
 0x60e   : > { %v2224_v60 = vadd.f32 %v2715_v58, %v2645_v56  ;;  %v2215_v61 = vpop.f32.mrb[27].mxu0 }
 0x60f   : > { %v2216_v63 = vadd.f32 %v2645_v56, %v2215_v61 }
 0x610   : > { %v2683_v0 = vpack.c.bf16 %v2224_v60, %v2221_v59 }
 0x611   : > { %v2678_v1 = vpack.c.bf16 %v2216_v63, %v2213_v62 }
 0x612   : > { %2685 = vst [vmem:[%s3695_s2 + $0x8] sm:$0xff] %v2683_v0  }
 0x613   : > { %2679 = vst [vmem:[%s3695_s2] sm:$0xff] %v2678_v1  }
 0x614   : > { %3257 = shalt.err (!%p3254_p8)
}
 0x615   : > { %s3258_s2 = scalar_lea.hbm %s3999_s24, 256  ;;  %s3262_s19 = scalar_lea.hbm %s4124_s22, 512 }
 0x616   : > { %p3259_p9 = scmp.ne.s32.totalorder %s3999_s24, %s3258_s2  ;;  %p3263_p11 = scmp.lt.u32.totalorder %s3999_s24, %s4124_s22 }
 0x617   : > { %p3264_p2 = scmp.lt.u32.totalorder %s3262_s19, %s3258_s2  ;;  %p3266_p13 = scmp.lt.u32.totalorder %s3258_s2, %s3999_s24 }
 0x618   : > { %p3260_p1 = pnand %p3259_p9, %p4125_p6 }
 0x619   : > { %p3265_p10 = por %p3264_p2, %p3263_p11 }
 0x61a   : > { %p3261_p3 = pneg %p3260_p1 }
 0x61b   : > { %p3267_p7 = por %p3266_p13, %p3265_p10 }
 0x61d   : > { %p3268_p4 = pnand %p3267_p7, %p3261_p3 }
 0x61f   : > { %3271 = shalt.err (!%p3268_p4)
}
 0x620   : > { %s3358_s12 = smov 64   ;;  %s3359_s3 = smov 4  }
 0x621   : > { %2738 = dma.vmem_to_hbm [thread:$0]  (%p4125_p6), %s4001_s26, 256, %s3999_s24, %s2248_s16, %s3358_s12, %s3358_s12, %s3359_s3  }
 0x622   : > { %3313 = dma.done.wait (%p4122_p5), [#allocation17], 256  }
 0x623   : > { %3315 = vsyncadd (%p4122_p5), [#allocation17], 4294967040 }
 0x624 PF: > { %s2311_s20 = sand.u32 1, %s3322_s13   ;;  %p4126_p12 = scmp.ne.s32.totalorder %s4101_s7, 0 }
 0x625   : > { %p4127_p0 = scmp.ge.s32.totalorder %s3342_s18, 2  ;;  %s2312_s21 = scalar_lea.sflag [#allocation6], %s2311_s20 }
 0x627   : > { %p2769_p8 = pnand %p4127_p0, %p4126_p12 }
 0x629   : > { %3317 = dma.done.wait (!%p2769_p8), %s2312_s21, 256  }
 0x62a   : > { %3319 = vsyncadd (!%p2769_p8), %s2312_s21, 4294967040  ;;  %s31_s18 = sadd.s32 1, %s3342_s18   ;;  %s4128_s13 = smov %s3326_s14 }
 0x62b   : > { %p28_p9 = scmp.ge.s32.totalorder %s31_s18, 4   ;;  %s4129_s14 = smov %s3330_s15 }
 0x62c   : > { %s4130_s15 = smov %s3618_s28  ;;  %s4131_s16 = smov %s3338_s17 }
 0x62d   : > { %s4132_s17 = smov %s4134_s11  ;;  %30 = sbr.rel (!%p28_p9) target bundleno = 16 (0x10), region = 147 }
 0x634   :  { %2317 = vsyncpa [#allocation5], 1 }
 0x635   :  { %2319 = vsyncpa [#allocation5 + $0x1], 1 }
 0x636   :  { %2320 = vsyncpa [#allocation8], 1 }
 0x637   :  { %2321 = vsyncpa [#allocation11], 1 }
 0x638   :  { %2322 = vsyncpa [#allocation14], 1 }
 0x639   :  { %2323 = vsyncpa [#allocation6], 1 }
 0x63a   :  { %2325 = vsyncpa [#allocation6 + $0x1], 1 }
 0x63b   :  { %2326 = vsyncpa [#allocation17], 1 }

</bundles_post_ra>
